<compile_context>
chip_gen: v7x
topology: tpu7x:2x2x1
jax: 0.10.0
libtpu: 0.0.40
codegen_flags: <defaults>
</compile_context>

<pallas_src>
import functools
import random

import jax
import jax.numpy as jnp
from jax import lax
from jax.experimental import pallas as pl
from jax.experimental.pallas import tpu as pltpu


# ----------------------------------------------------------------------------
# helpers
# ----------------------------------------------------------------------------
def _nbytes(x):
    n = 1
    for d in x.shape:
        n *= int(d)
    return n * jnp.dtype(x.dtype).itemsize


def _vmem_limit(total_bytes):
    """Scoped-VMEM request sized from resident buffers, clamped to chip capacity."""
    try:
        cap = int(pltpu.get_tpu_info().vmem_capacity_bytes * 0.9)
    except Exception:
        cap = 96 * 1024 * 1024            # conservative fallback
    want = 2 * int(total_bytes) + (8 << 20)   # 2x for double-buffering + headroom
    return int(min(max(want, 32 << 20), cap))


# ----------------------------------------------------------------------------
# Encoder kernel: fused bidirectional GRU + fc bridge + hoisted attention keys,
# outputs emitted batch-major (no wrapper transposes).
# ----------------------------------------------------------------------------
def encoder_kernel(emb_ref, vmask_ref,
                   wxf_ref, whf_ref, bxf_ref, bhf_ref,
                   wxb_ref, whb_ref, bxb_ref, bhb_ref,
                   wfcf_ref, wfcb_ref, bfc_ref, wae_ref, ba_ref,
                   enc_ref, keys_ref, hid_ref,
                   gif_scr, gib_scr, *, S, B, E, H, Hd):
    # batched input-to-gate projections (one bf16 matmul per direction, f32 accum)
    emb2d = emb_ref[...].reshape(S * B, E)                                   # bf16
    gif_scr[...] = (jnp.dot(emb2d, wxf_ref[...], preferred_element_type=jnp.float32)
                    + bxf_ref[...]).reshape(S, B, 3 * H)
    gib_scr[...] = (jnp.dot(emb2d, wxb_ref[...], preferred_element_type=jnp.float32)
                    + bxb_ref[...]).reshape(S, B, 3 * H)

    # hoist weight loads out of the unrolled recurrence
    whf = whf_ref[...]
    bhf = bhf_ref[...]
    whb = whb_ref[...]
    bhb = bhb_ref[...]

    def gru_step(gi, h, wh, bh):
        # PyTorch GRU gate order: r, z, n; recurrent matmul in bf16, math in f32
        gh = jnp.dot(h.astype(jnp.bfloat16), wh,
                     preferred_element_type=jnp.float32) + bh               # (B, 3H)
        r = jax.nn.sigmoid(gi[:, 0:H] + gh[:, 0:H])
        z = jax.nn.sigmoid(gi[:, H:2 * H] + gh[:, H:2 * H])
        n = jnp.tanh(gi[:, 2 * H:3 * H] + r * gh[:, 2 * H:3 * H])
        return (1.0 - z) * n + z * h

    # Fused forward/backward recurrence, fully unrolled (S is static):
    # iteration i advances forward t=i and backward t=S-1-i together; per-step
    # length masking emulates pack_padded_sequence (pad rows -> 0, h frozen).
    h_f = jnp.zeros((B, H), jnp.float32)
    h_b = jnp.zeros((B, H), jnp.float32)
    for i in range(S):
        tf_ = i
        tb_ = S - 1 - i
        vf = vmask_ref[tf_]                                  # (B, 1) float
        vb = vmask_ref[tb_]
        hf_new = gru_step(gif_scr[tf_], h_f, whf, bhf)
        hb_new = gru_step(gib_scr[tb_], h_b, whb, bhb)
        enc_ref[:, tf_, 0:H] = vf * hf_new                   # batch-major, static idx
        enc_ref[:, tb_, H:2 * H] = vb * hb_new
        h_f = vf * hf_new + (1.0 - vf) * h_f                 # freeze past length
        h_b = vb * hb_new + (1.0 - vb) * h_b

    # bridge hidden: tanh([h_fwd; h_bwd] @ W_fc + b) via split bf16 dots
    hid_ref[...] = jnp.tanh(
        jnp.dot(h_f.astype(jnp.bfloat16), wfcf_ref[...], preferred_element_type=jnp.float32)
        + jnp.dot(h_b.astype(jnp.bfloat16), wfcb_ref[...], preferred_element_type=jnp.float32)
        + bfc_ref[...])

    # hoisted attention keys (computed ONCE, reused by every decoder step)
    enc2d = enc_ref[...].reshape(B * S, 2 * H).astype(jnp.bfloat16)
    keys_ref[...] = (jnp.dot(enc2d, wae_ref[...], preferred_element_type=jnp.float32)
                     + ba_ref[...]).reshape(B, S, Hd)


def run_encoder(emb_src, vmask, p):
    S, B, E = emb_src.shape
    H = p['enc_hidden']
    Hd = p['dec_hidden']
    bf16 = jnp.bfloat16

    # one-time bf16 casts of MXU operands (biases stay f32)
    wxf, whf = p['wxf'].astype(bf16), p['whf'].astype(bf16)
    wxb, whb = p['wxb'].astype(bf16), p['whb'].astype(bf16)
    wfc_f = p['wfc'][:H].astype(bf16)
    wfc_b = p['wfc'][H:].astype(bf16)
    wae = p['wae'].astype(bf16)

    ins = (emb_src, vmask, wxf, whf, p['bxf'], p['bhf'],
           wxb, whb, p['bxb'], p['bhb'],
           wfc_f, wfc_b, p['bfc'], wae, p['ba'])
    out_shapes = (jax.ShapeDtypeStruct((B, S, 2 * H), jnp.float32),   # enc (batch-major)
                  jax.ShapeDtypeStruct((B, S, Hd), jnp.float32),      # attention keys
                  jax.ShapeDtypeStruct((B, Hd), jnp.float32))         # bridged hidden
    scratch = [pltpu.VMEM((S, B, 3 * H), jnp.float32),
               pltpu.VMEM((S, B, 3 * H), jnp.float32)]

    total_bytes = (sum(_nbytes(x) for x in ins)
                   + sum(_nbytes(o) for o in out_shapes)
                   + 2 * S * B * 3 * H * 4)

    kern = functools.partial(encoder_kernel, S=S, B=B, E=E, H=H, Hd=Hd)
    vmem = pl.BlockSpec(memory_space=pltpu.MemorySpace.VMEM)
    enc, keys, hid = pl.pallas_call(
        kern,
        out_shape=out_shapes,
        in_specs=[vmem] * len(ins),
        out_specs=(vmem, vmem, vmem),
        scratch_shapes=scratch,
        compiler_params=pltpu.CompilerParams(
            vmem_limit_bytes=_vmem_limit(total_bytes)),
    )(*ins)
    return enc, keys, hid


# ----------------------------------------------------------------------------
# Fused decoder kernel: grid over target positions, state carried in VMEM
# ----------------------------------------------------------------------------
def decoder_kernel(tf_ref,                                      # SMEM (S_trg,) int32
                   keys_ref, enc_ref, mask_ref,                 # (B,S,Hd),(B,S,2He),(B,S) f32
                   emb_nxt_ref,                                 # (1,B,E) bf16, streamed @ g+1
                   emb0_ref,                                    # (B,E) bf16, trg[0] embedding
                   emb_tbl_ref, hid0_ref,                       # (V,E) bf16, (B,Hd) f32
                   wah_ref, v_ref,
                   wxd_e_ref, wxd_w_ref, whd_ref, bxd_ref, bhd_ref,
                   wout_h_ref, wout_w_ref, wout_e_ref, bout_ref,
                   pred_ref,                                    # out block (1,B,Vpad) f32
                   hid_scr, emb_scr,                            # VMEM state (f32 / bf16)
                   *, B, E, H, He2, V, Vpad):
    g = pl.program_id(0)

    @pl.when(g == 0)
    def _():
        hid_scr[...] = hid0_ref[...]          # encoder bridge hidden
        emb_scr[...] = emb0_ref[...]          # input = embed(trg[0, :])

    hidden = hid_scr[...]                     # (B, H) f32
    emb_in = emb_scr[...]                     # (B, E) bf16
    h_bf = hidden.astype(jnp.bfloat16)

    # --- additive attention, (B, S) layout: lane-axis softmax, no transposes ---
    h_proj = jnp.dot(h_bf, wah_ref[...], preferred_element_type=jnp.float32)      # (B, H)
    energy = jnp.tanh(keys_ref[...] + h_proj[:, None, :])                         # (B, S, H)
    scores = jnp.sum(energy * v_ref[...][None, :, :], axis=-1)                    # (B, S)
    scores = jnp.where(mask_ref[...] > 0.5, scores, jnp.float32(-1e10))
    m = jnp.max(scores, axis=-1, keepdims=True)
    e = jnp.exp(scores - m)
    a = e * pl.reciprocal(jnp.sum(e, axis=-1, keepdims=True), approx=True)        # EUP divide
    weighted = jnp.sum(a[:, :, None] * enc_ref[...], axis=1)                      # (B, 2He) f32
    w_bf = weighted.astype(jnp.bfloat16)

    # --- GRU cell on [embedded ; weighted] via split bf16 matmuls (f32 accum) ---
    gi = (jnp.dot(emb_in, wxd_e_ref[...], preferred_element_type=jnp.float32)
          + jnp.dot(w_bf, wxd_w_ref[...], preferred_element_type=jnp.float32)
          + bxd_ref[...])                                                         # (B, 3H)
    gh = jnp.dot(h_bf, whd_ref[...], preferred_element_type=jnp.float32) + bhd_ref[...]
    r = jax.nn.sigmoid(gi[:, 0:H] + gh[:, 0:H])
    z = jax.nn.sigmoid(gi[:, H:2 * H] + gh[:, H:2 * H])
    n = jnp.tanh(gi[:, 2 * H:3 * H] + r * gh[:, 2 * H:3 * H])
    h_new = (1.0 - z) * n + z * hidden
    hid_scr[...] = h_new

    # --- output projection on [output ; weighted ; embedded], lane-dense vocab ---
    logits = (jnp.dot(h_new.astype(jnp.bfloat16), wout_h_ref[...],
                      preferred_element_type=jnp.float32)
              + jnp.dot(w_bf, wout_w_ref[...], preferred_element_type=jnp.float32)
              + jnp.dot(emb_in, wout_e_ref[...], preferred_element_type=jnp.float32)
              + bout_ref[...])                                                    # (B, Vpad) f32
    pred_ref[0] = logits

    # --- next input: only when there IS a next step; greedy path only when not
    #     teacher forcing (precomputed flag in SMEM) ---
    nxt = g + 1
    not_last = nxt < pl.num_programs(0)
    use_tf = tf_ref[nxt] > 0

    @pl.when(jnp.logical_and(not_last, use_tf))
    def _():
        emb_scr[...] = emb_nxt_ref[0]                           # streamed embed(trg[g+1])

    @pl.when(jnp.logical_and(not_last, jnp.logical_not(use_tf)))
    def _():
        # greedy argmax over the (unpadded) vocab, then one-hot embedding lookup.
        # TODO(synk): at a realistic vocab size replace the one-hot matmul with a
        # DMA gather from an HBM-resident embedding table (pl.ANY + make_async_copy).
        col = lax.broadcasted_iota(jnp.int32, (B, Vpad), 1)
        masked = jnp.where(col < V, logits, jnp.float32(-1e30))
        mmax = jnp.max(masked, axis=-1, keepdims=True)
        top1 = jnp.min(jnp.where(masked == mmax, col, Vpad), axis=-1)             # first argmax
        onehot = (lax.broadcasted_iota(jnp.int32, (B, V), 1)
                  == top1[:, None]).astype(jnp.bfloat16)
        emb_top1 = jnp.dot(onehot, emb_tbl_ref[...], preferred_element_type=jnp.float32)
        emb_scr[...] = emb_top1.astype(jnp.bfloat16)


def run_decoder_loop(tf_flags, keys_bt, enc_bt, mask_bs, emb_seq, emb0, emb_tbl, hid0, p):
    B, S, Hd = keys_bt.shape
    He2 = enc_bt.shape[2]
    S_trg, _, E = emb_seq.shape
    V = emb_tbl.shape[0]
    H = p['dec_hidden']
    Vpad = ((V + 127) // 128) * 128                  # lane-dense output projection
    bf16 = jnp.bfloat16

    # one-time weight splits (avoid in-kernel lane concats), vocab padding, bf16 casts
    wxd_e = p['wxd'][:E].astype(bf16)
    wxd_w = p['wxd'][E:].astype(bf16)
    whd = p['whd'].astype(bf16)
    wah = p['wah'].astype(bf16)
    padV = ((0, 0), (0, Vpad - V))
    wout_h = jnp.pad(p['wout'][:H], padV).astype(bf16)
    wout_w = jnp.pad(p['wout'][H:H + He2], padV).astype(bf16)
    wout_e = jnp.pad(p['wout'][H + He2:], padV).astype(bf16)
    bout_p = jnp.pad(p['bout'], padV)                             # f32

    n_steps = S_trg - 1
    kern = functools.partial(decoder_kernel, B=B, E=E, H=H, He2=He2, V=V, Vpad=Vpad)

    ins = [keys_bt, enc_bt, mask_bs, emb_seq, emb0, emb_tbl, hid0,
           wah, p['v'], wxd_e, wxd_w, whd, p['bxd'], p['bhd'],
           wout_h, wout_w, wout_e, bout_p]

    def res_spec(x):
        nd = x.ndim
        return pl.BlockSpec(x.shape, lambda g, *_: (0,) * nd)    # resident, fetched once

    in_specs = []
    for idx, x in enumerate(ins):
        if idx == 3:
            # emb_seq: stream the NEXT step's teacher-forcing embedding through
            # the auto-pipeline (DMA overlapped with compute), not resident.
            in_specs.append(pl.BlockSpec((1, B, E), lambda g, *_: (g + 1, 0, 0)))
        else:
            in_specs.append(res_spec(x))

    out_sd = jax.ShapeDtypeStruct((n_steps, B, Vpad), jnp.float32)
    total_bytes = (sum(_nbytes(x) for x in ins) + _nbytes(out_sd)
                   + B * Hd * 4 + B * E * 2)

    grid_spec = pltpu.PrefetchScalarGridSpec(
        num_scalar_prefetch=1,                                   # tf_flags -> SMEM
        grid=(n_steps,),
        in_specs=in_specs,
        out_specs=pl.BlockSpec((1, B, Vpad), lambda g, *_: (g, 0, 0)),
        scratch_shapes=[pltpu.VMEM((B, Hd), jnp.float32),        # carried hidden
                        pltpu.VMEM((B, E), jnp.bfloat16)],       # carried input embedding
    )
    preds = pl.pallas_call(
        kern,
        out_shape=out_sd,
        grid_spec=grid_spec,
        compiler_params=pltpu.CompilerParams(
            dimension_semantics=("arbitrary",),
            vmem_limit_bytes=_vmem_limit(total_bytes)),
    )(tf_flags, *ins)
    return preds                                                 # (S_trg-1, B, Vpad)


# ----------------------------------------------------------------------------
# Seq2Seq.forward
# ----------------------------------------------------------------------------
def seq2seq_forward(src, src_len, trg, params, teacher_force=0.5, rng=None):
    S_trg, B = trg.shape
    S_src = src.shape[0]
    V = params['wout'].shape[1]
    bf16 = jnp.bfloat16

    # encoder (single Pallas call, keys hoisted inside, outputs batch-major)
    emb_src = params['emb_src'].astype(bf16)[src]                      # (S_src, B, E) bf16
    t_idx = jnp.arange(S_src, dtype=jnp.int32)[:, None]
    vmask = (t_idx < src_len[None, :]).astype(jnp.float32)[:, :, None] # (S_src, B, 1)
    enc_bt, keys_bt, hidden0 = run_encoder(emb_src, vmask, params)

    mask_bs = (src != params['src_pad_id']).astype(jnp.float32).T      # (B, S)

    # teacher-forced inputs: gather all target embeddings once (bf16)
    emb_tbl = params['emb_trg'].astype(bf16)                           # (V, E) bf16
    emb_seq = emb_tbl[trg]                                             # (S_trg, B, E) bf16
    emb0 = emb_seq[0]                                                  # (B, E) bf16

    # host-side teacher-forcing coin flips, precomputed into an int32 array
    # (same RNG consumption order as the PyTorch loop; flips[0] is unused).
    flips = [1]
    for _ in range(1, S_trg):
        use_tf = (rng.random() < teacher_force) if rng is not None else True
        flips.append(1 if use_tf else 0)
    tf_flags = jnp.asarray(flips, dtype=jnp.int32)                     # (S_trg,)

    preds_pad = run_decoder_loop(tf_flags, keys_bt, enc_bt, mask_bs, emb_seq,
                                 emb0, emb_tbl, hidden0, params)
    preds = preds_pad[:, :, :V]                                        # drop vocab padding
    return jnp.concatenate([jnp.zeros((1, B, V), jnp.float32), preds], axis=0)


# ----------------------------------------------------------------------------
# Deterministic parameter init + example run
# ----------------------------------------------------------------------------
def init_params(key, *, V_src, V_trg, E, H_enc, H_dec, src_pad_id):
    def nrm(k, shape, scale=0.1):
        return (scale * jax.random.normal(k, shape)).astype(jnp.float32)

    ks = jax.random.split(key, 24)
    p = {
        'src_pad_id': src_pad_id,
        'enc_hidden': H_enc,
        'dec_hidden': H_dec,
        'emb_src': nrm(ks[0], (V_src, E)),
        'emb_trg': nrm(ks[1], (V_trg, E)),
        # encoder forward GRU
        'wxf': nrm(ks[2], (E, 3 * H_enc)), 'whf': nrm(ks[3], (H_enc, 3 * H_enc)),
        'bxf': nrm(ks[4], (1, 3 * H_enc)), 'bhf': nrm(ks[5], (1, 3 * H_enc)),
        # encoder backward GRU
        'wxb': nrm(ks[6], (E, 3 * H_enc)), 'whb': nrm(ks[7], (H_enc, 3 * H_enc)),
        'bxb': nrm(ks[8], (1, 3 * H_enc)), 'bhb': nrm(ks[9], (1, 3 * H_enc)),
        # fc bridge: tanh(fc([h_fwd; h_bwd]))
        'wfc': nrm(ks[10], (2 * H_enc, H_dec)), 'bfc': nrm(ks[11], (1, H_dec)),
        # attention: Linear(2*H_enc + H_dec -> H_dec), v: Linear(H_dec -> 1)
        'wah': nrm(ks[12], (H_dec, H_dec)), 'wae': nrm(ks[13], (2 * H_enc, H_dec)),
        'ba': nrm(ks[14], (1, H_dec)), 'v': nrm(ks[15], (1, H_dec)),
        # decoder GRU: input = E + 2*H_enc
        'wxd': nrm(ks[16], (E + 2 * H_enc, 3 * H_dec)),
        'whd': nrm(ks[17], (H_dec, 3 * H_dec)),
        'bxd': nrm(ks[18], (1, 3 * H_dec)), 'bhd': nrm(ks[19], (1, 3 * H_dec)),
        # fc_out: Linear(H_dec + 2*H_enc + E -> V_trg)
        'wout': nrm(ks[20], (H_dec + 2 * H_enc + E, V_trg)),
        'bout': nrm(ks[21], (1, V_trg)),
    }
    return p


if __name__ == "__main__":
    V_SRC, V_TRG, E, H_ENC, H_DEC = 20, 20, 16, 32, 32
    S_SRC, S_TRG, B = 8, 8, 4
    SRC_PAD_ID = 1

    key = jax.random.PRNGKey(0)
    kp, ks, kt = jax.random.split(key, 3)
    params = init_params(kp, V_src=V_SRC, V_trg=V_TRG, E=E,
                         H_enc=H_ENC, H_dec=H_DEC, src_pad_id=SRC_PAD_ID)

    # build padded source batch + lengths
    src_len = jnp.array([8, 6, 7, 5], dtype=jnp.int32)            # (B,)
    src = jax.random.randint(ks, (S_SRC, B), 2, V_SRC, dtype=jnp.int32)
    t_idx = jnp.arange(S_SRC, dtype=jnp.int32)[:, None]           # (S_SRC, 1)
    src = jnp.where(t_idx < src_len[None, :], src, SRC_PAD_ID)    # pad tail
    trg = jax.random.randint(kt, (S_TRG, B), 2, V_TRG, dtype=jnp.int32)

    # TODO(synk): pack_padded_sequence has no direct Pallas equivalent; the
    # encoder kernel emulates it with per-timestep length masking.
    random.seed(0)  # deterministic teacher-forcing coin flips (host-side RNG)
    predicts = seq2seq_forward(src, src_len, trg, params,
                               teacher_force=0.5, rng=random)
    predicts = jax.block_until_ready(predicts)

    assert predicts.shape == (S_TRG, B, V_TRG), predicts.shape
    assert bool(jnp.all(jnp.isfinite(predicts)))
    assert bool(jnp.all(predicts[0] == 0.0))                      # predicts[0] untouched
    print("KERNEL_OK")
</pallas_src>

<mosaic_0001>
module attributes {stable_mosaic.version = 11 : i64} {
  func.func @encoder_kernel(%arg0: memref<8x4x16xbf16, #tpu.memory_space<vmem>>, %arg1: memref<8x4x1xf32, #tpu.memory_space<vmem>>, %arg2: memref<16x96xbf16, #tpu.memory_space<vmem>>, %arg3: memref<32x96xbf16, #tpu.memory_space<vmem>>, %arg4: memref<1x96xf32, #tpu.memory_space<vmem>>, %arg5: memref<1x96xf32, #tpu.memory_space<vmem>>, %arg6: memref<16x96xbf16, #tpu.memory_space<vmem>>, %arg7: memref<32x96xbf16, #tpu.memory_space<vmem>>, %arg8: memref<1x96xf32, #tpu.memory_space<vmem>>, %arg9: memref<1x96xf32, #tpu.memory_space<vmem>>, %arg10: memref<32x32xbf16, #tpu.memory_space<vmem>>, %arg11: memref<32x32xbf16, #tpu.memory_space<vmem>>, %arg12: memref<1x32xf32, #tpu.memory_space<vmem>>, %arg13: memref<64x32xbf16, #tpu.memory_space<vmem>>, %arg14: memref<1x32xf32, #tpu.memory_space<vmem>>, %arg15: memref<4x8x64xf32, #tpu.memory_space<vmem>>, %arg16: memref<4x8x32xf32, #tpu.memory_space<vmem>>, %arg17: memref<4x32xf32, #tpu.memory_space<vmem>>, %arg18: memref<8x4x96xf32, #tpu.memory_space<vmem>>, %arg19: memref<8x4x96xf32, #tpu.memory_space<vmem>>) attributes {dimension_semantics = [], scalar_prefetch = 0 : i64, scratch_operands = 2 : i64, tpu.core_type = #tpu.core_type<tc>} {
    %c0 = arith.constant 0 : index
    %c0_0 = arith.constant 0 : index
    %c0_1 = arith.constant 0 : index
    %0 = vector.load %arg0[%c0, %c0_0, %c0_1] : memref<8x4x16xbf16, #tpu.memory_space<vmem>>, vector<8x4x16xbf16>
    %1 = vector.shape_cast %0 : vector<8x4x16xbf16> to vector<32x16xbf16>
    %c0_2 = arith.constant 0 : index
    %c0_3 = arith.constant 0 : index
    %2 = vector.load %arg2[%c0_2, %c0_3] : memref<16x96xbf16, #tpu.memory_space<vmem>>, vector<16x96xbf16>
    %cst = arith.constant dense<0.000000e+00> : vector<32x96xf32>
    %3 = tpu.matmul %1, %2, %cst {dimension_numbers = #tpu.dot_dimension_numbers<[1], [0], [0], [1], [0, 0, 1, 1], [], []>} : vector<32x16xbf16>, vector<16x96xbf16>, vector<32x96xf32> -> vector<32x96xf32>
    %c0_4 = arith.constant 0 : index
    %c0_5 = arith.constant 0 : index
    %4 = vector.load %arg4[%c0_4, %c0_5] : memref<1x96xf32, #tpu.memory_space<vmem>>, vector<1x96xf32>
    %5 = vector.broadcast %4 : vector<1x96xf32> to vector<32x96xf32>
    %6 = arith.addf %3, %5 : vector<32x96xf32>
    %7 = vector.shape_cast %6 : vector<32x96xf32> to vector<8x4x96xf32>
    %c0_6 = arith.constant 0 : index
    %c0_7 = arith.constant 0 : index
    %c0_8 = arith.constant 0 : index
    %8 = vector.load %arg18[%c0_6, %c0_7, %c0_8] : memref<8x4x96xf32, #tpu.memory_space<vmem>>, vector<8x4x96xf32>
    tpu.vector_store %arg18[%c0_6, %c0_7, %c0_8], %7 {strides = array<i32>} : memref<8x4x96xf32, #tpu.memory_space<vmem>>, vector<8x4x96xf32>,
    %c0_9 = arith.constant 0 : index
    %c0_10 = arith.constant 0 : index
    %9 = vector.load %arg6[%c0_9, %c0_10] : memref<16x96xbf16, #tpu.memory_space<vmem>>, vector<16x96xbf16>
    %cst_11 = arith.constant dense<0.000000e+00> : vector<32x96xf32>
    %10 = tpu.matmul %1, %9, %cst_11 {dimension_numbers = #tpu.dot_dimension_numbers<[1], [0], [0], [1], [0, 0, 1, 1], [], []>} : vector<32x16xbf16>, vector<16x96xbf16>, vector<32x96xf32> -> vector<32x96xf32>
    %c0_12 = arith.constant 0 : index
    %c0_13 = arith.constant 0 : index
    %11 = vector.load %arg8[%c0_12, %c0_13] : memref<1x96xf32, #tpu.memory_space<vmem>>, vector<1x96xf32>
    %12 = vector.broadcast %11 : vector<1x96xf32> to vector<32x96xf32>
    %13 = arith.addf %10, %12 : vector<32x96xf32>
    %14 = vector.shape_cast %13 : vector<32x96xf32> to vector<8x4x96xf32>
    %c0_14 = arith.constant 0 : index
    %c0_15 = arith.constant 0 : index
    %c0_16 = arith.constant 0 : index
    %15 = vector.load %arg19[%c0_14, %c0_15, %c0_16] : memref<8x4x96xf32, #tpu.memory_space<vmem>>, vector<8x4x96xf32>
    tpu.vector_store %arg19[%c0_14, %c0_15, %c0_16], %14 {strides = array<i32>} : memref<8x4x96xf32, #tpu.memory_space<vmem>>, vector<8x4x96xf32>,
    %c0_17 = arith.constant 0 : index
    %c0_18 = arith.constant 0 : index
    %16 = vector.load %arg3[%c0_17, %c0_18] : memref<32x96xbf16, #tpu.memory_space<vmem>>, vector<32x96xbf16>
    %c0_19 = arith.constant 0 : index
    %c0_20 = arith.constant 0 : index
    %17 = vector.load %arg5[%c0_19, %c0_20] : memref<1x96xf32, #tpu.memory_space<vmem>>, vector<1x96xf32>
    %c0_21 = arith.constant 0 : index
    %c0_22 = arith.constant 0 : index
    %18 = vector.load %arg7[%c0_21, %c0_22] : memref<32x96xbf16, #tpu.memory_space<vmem>>, vector<32x96xbf16>
    %c0_23 = arith.constant 0 : index
    %c0_24 = arith.constant 0 : index
    %19 = vector.load %arg9[%c0_23, %c0_24] : memref<1x96xf32, #tpu.memory_space<vmem>>, vector<1x96xf32>
    %cst_25 = arith.constant 0.000000e+00 : f32
    %20 = vector.broadcast %cst_25 : f32 to vector<4x32xf32>
    %cst_26 = arith.constant 0.000000e+00 : f32
    %21 = vector.broadcast %cst_26 : f32 to vector<4x32xf32>
    %c0_27 = arith.constant 0 : index
    %c0_28 = arith.constant 0 : index
    %c0_29 = arith.constant 0 : index
    %22 = vector.load %arg1[%c0_27, %c0_28, %c0_29] : memref<8x4x1xf32, #tpu.memory_space<vmem>>, vector<1x4x1xf32>
    %23 = vector.shape_cast %22 : vector<1x4x1xf32> to vector<4x1xf32>
    %c7 = arith.constant 7 : index
    %c0_30 = arith.constant 0 : index
    %c0_31 = arith.constant 0 : index
    %24 = vector.load %arg1[%c7, %c0_30, %c0_31] : memref<8x4x1xf32, #tpu.memory_space<vmem>>, vector<1x4x1xf32>
    %25 = vector.shape_cast %24 : vector<1x4x1xf32> to vector<4x1xf32>
    %c0_32 = arith.constant 0 : index
    %c0_33 = arith.constant 0 : index
    %c0_34 = arith.constant 0 : index
    %26 = vector.load %arg18[%c0_32, %c0_33, %c0_34] : memref<8x4x96xf32, #tpu.memory_space<vmem>>, vector<1x4x96xf32>
    %27 = vector.shape_cast %26 : vector<1x4x96xf32> to vector<4x96xf32>
    %28 = arith.truncf %20 : vector<4x32xf32> to vector<4x32xbf16>
    %cst_35 = arith.constant dense<0.000000e+00> : vector<4x96xf32>
    %29 = tpu.matmul %28, %16, %cst_35 {dimension_numbers = #tpu.dot_dimension_numbers<[1], [0], [0], [1], [0, 0, 1, 1], [], []>} : vector<4x32xbf16>, vector<32x96xbf16>, vector<4x96xf32> -> vector<4x96xf32>
    %30 = vector.broadcast %17 : vector<1x96xf32> to vector<4x96xf32>
    %31 = arith.addf %29, %30 : vector<4x96xf32>
    %32 = vector.extract_strided_slice %27 {offsets = [0, 0], sizes = [4, 32], strides = [1, 1]} : vector<4x96xf32> to vector<4x32xf32>
    %33 = vector.extract_strided_slice %31 {offsets = [0, 0], sizes = [4, 32], strides = [1, 1]} : vector<4x96xf32> to vector<4x32xf32>
    %34 = arith.addf %32, %33 : vector<4x32xf32>
    %35 = arith.negf %34 : vector<4x32xf32>
    %36 = math.exp %35 : vector<4x32xf32>
    %cst_36 = arith.constant 1.000000e+00 : f32
    %37 = vector.broadcast %cst_36 : f32 to vector<4x32xf32>
    %38 = arith.addf %37, %36 : vector<4x32xf32>
    %39 = arith.divf %37, %38 : vector<4x32xf32>
    %40 = vector.extract_strided_slice %27 {offsets = [0, 32], sizes = [4, 32], strides = [1, 1]} : vector<4x96xf32> to vector<4x32xf32>
    %41 = vector.extract_strided_slice %31 {offsets = [0, 32], sizes = [4, 32], strides = [1, 1]} : vector<4x96xf32> to vector<4x32xf32>
    %42 = arith.addf %40, %41 : vector<4x32xf32>
    %43 = arith.negf %42 : vector<4x32xf32>
    %44 = math.exp %43 : vector<4x32xf32>
    %cst_37 = arith.constant 1.000000e+00 : f32
    %45 = vector.broadcast %cst_37 : f32 to vector<4x32xf32>
    %46 = arith.addf %45, %44 : vector<4x32xf32>
    %47 = arith.divf %45, %46 : vector<4x32xf32>
    %48 = vector.extract_strided_slice %27 {offsets = [0, 64], sizes = [4, 32], strides = [1, 1]} : vector<4x96xf32> to vector<4x32xf32>
    %49 = vector.extract_strided_slice %31 {offsets = [0, 64], sizes = [4, 32], strides = [1, 1]} : vector<4x96xf32> to vector<4x32xf32>
    %50 = arith.mulf %39, %49 : vector<4x32xf32>
    %51 = arith.addf %48, %50 : vector<4x32xf32>
    %52 = math.tanh %51 : vector<4x32xf32>
    %cst_38 = arith.constant 1.000000e+00 : f32
    %53 = vector.broadcast %cst_38 : f32 to vector<4x32xf32>
    %54 = arith.subf %53, %47 : vector<4x32xf32>
    %55 = arith.mulf %54, %52 : vector<4x32xf32>
    %56 = arith.mulf %47, %20 : vector<4x32xf32>
    %57 = arith.addf %55, %56 : vector<4x32xf32>
    %c7_39 = arith.constant 7 : index
    %c0_40 = arith.constant 0 : index
    %c0_41 = arith.constant 0 : index
    %58 = vector.load %arg19[%c7_39, %c0_40, %c0_41] : memref<8x4x96xf32, #tpu.memory_space<vmem>>, vector<1x4x96xf32>
    %59 = vector.shape_cast %58 : vector<1x4x96xf32> to vector<4x96xf32>
    %60 = arith.truncf %21 : vector<4x32xf32> to vector<4x32xbf16>
    %cst_42 = arith.constant dense<0.000000e+00> : vector<4x96xf32>
    %61 = tpu.matmul %60, %18, %cst_42 {dimension_numbers = #tpu.dot_dimension_numbers<[1], [0], [0], [1], [0, 0, 1, 1], [], []>} : vector<4x32xbf16>, vector<32x96xbf16>, vector<4x96xf32> -> vector<4x96xf32>
    %62 = vector.broadcast %19 : vector<1x96xf32> to vector<4x96xf32>
    %63 = arith.addf %61, %62 : vector<4x96xf32>
    %64 = vector.extract_strided_slice %59 {offsets = [0, 0], sizes = [4, 32], strides = [1, 1]} : vector<4x96xf32> to vector<4x32xf32>
    %65 = vector.extract_strided_slice %63 {offsets = [0, 0], sizes = [4, 32], strides = [1, 1]} : vector<4x96xf32> to vector<4x32xf32>
    %66 = arith.addf %64, %65 : vector<4x32xf32>
    %67 = arith.negf %66 : vector<4x32xf32>
    %68 = math.exp %67 : vector<4x32xf32>
    %cst_43 = arith.constant 1.000000e+00 : f32
    %69 = vector.broadcast %cst_43 : f32 to vector<4x32xf32>
    %70 = arith.addf %69, %68 : vector<4x32xf32>
    %71 = arith.divf %69, %70 : vector<4x32xf32>
    %72 = vector.extract_strided_slice %59 {offsets = [0, 32], sizes = [4, 32], strides = [1, 1]} : vector<4x96xf32> to vector<4x32xf32>
    %73 = vector.extract_strided_slice %63 {offsets = [0, 32], sizes = [4, 32], strides = [1, 1]} : vector<4x96xf32> to vector<4x32xf32>
    %74 = arith.addf %72, %73 : vector<4x32xf32>
    %75 = arith.negf %74 : vector<4x32xf32>
    %76 = math.exp %75 : vector<4x32xf32>
    %cst_44 = arith.constant 1.000000e+00 : f32
    %77 = vector.broadcast %cst_44 : f32 to vector<4x32xf32>
    %78 = arith.addf %77, %76 : vector<4x32xf32>
    %79 = arith.divf %77, %78 : vector<4x32xf32>
    %80 = vector.extract_strided_slice %59 {offsets = [0, 64], sizes = [4, 32], strides = [1, 1]} : vector<4x96xf32> to vector<4x32xf32>
    %81 = vector.extract_strided_slice %63 {offsets = [0, 64], sizes = [4, 32], strides = [1, 1]} : vector<4x96xf32> to vector<4x32xf32>
    %82 = arith.mulf %71, %81 : vector<4x32xf32>
    %83 = arith.addf %80, %82 : vector<4x32xf32>
    %84 = math.tanh %83 : vector<4x32xf32>
    %cst_45 = arith.constant 1.000000e+00 : f32
    %85 = vector.broadcast %cst_45 : f32 to vector<4x32xf32>
    %86 = arith.subf %85, %79 : vector<4x32xf32>
    %87 = arith.mulf %86, %84 : vector<4x32xf32>
    %88 = arith.mulf %79, %21 : vector<4x32xf32>
    %89 = arith.addf %87, %88 : vector<4x32xf32>
    %90 = vector.broadcast %23 : vector<4x1xf32> to vector<4x32xf32>
    %91 = arith.mulf %90, %57 : vector<4x32xf32>
    %c0_46 = arith.constant 0 : index
    %c0_47 = arith.constant 0 : index
    %c0_48 = arith.constant 0 : index
    %92 = vector.load %arg15[%c0_46, %c0_47, %c0_48] : memref<4x8x64xf32, #tpu.memory_space<vmem>>, vector<4x1x32xf32>
    %93 = vector.shape_cast %92 : vector<4x1x32xf32> to vector<4x32xf32>
    %94 = vector.shape_cast %91 : vector<4x32xf32> to vector<4x1x32xf32>
    tpu.vector_store %arg15[%c0_46, %c0_47, %c0_48], %94 {strides = array<i32>} : memref<4x8x64xf32, #tpu.memory_space<vmem>>, vector<4x1x32xf32>,
    %95 = vector.broadcast %25 : vector<4x1xf32> to vector<4x32xf32>
    %96 = arith.mulf %95, %89 : vector<4x32xf32>
    %c0_49 = arith.constant 0 : index
    %c7_50 = arith.constant 7 : index
    %c32 = arith.constant 32 : index
    %97 = vector.load %arg15[%c0_49, %c7_50, %c32] : memref<4x8x64xf32, #tpu.memory_space<vmem>>, vector<4x1x32xf32>
    %98 = vector.shape_cast %97 : vector<4x1x32xf32> to vector<4x32xf32>
    %99 = vector.shape_cast %96 : vector<4x32xf32> to vector<4x1x32xf32>
    tpu.vector_store %arg15[%c0_49, %c7_50, %c32], %99 {strides = array<i32>} : memref<4x8x64xf32, #tpu.memory_space<vmem>>, vector<4x1x32xf32>,
    %100 = vector.broadcast %23 : vector<4x1xf32> to vector<4x32xf32>
    %101 = arith.mulf %100, %57 : vector<4x32xf32>
    %cst_51 = arith.constant 1.000000e+00 : f32
    %102 = vector.broadcast %cst_51 : f32 to vector<4x1xf32>
    %103 = arith.subf %102, %23 : vector<4x1xf32>
    %104 = vector.broadcast %103 : vector<4x1xf32> to vector<4x32xf32>
    %105 = arith.mulf %104, %20 : vector<4x32xf32>
    %106 = arith.addf %101, %105 : vector<4x32xf32>
    %107 = vector.broadcast %25 : vector<4x1xf32> to vector<4x32xf32>
    %108 = arith.mulf %107, %89 : vector<4x32xf32>
    %cst_52 = arith.constant 1.000000e+00 : f32
    %109 = vector.broadcast %cst_52 : f32 to vector<4x1xf32>
    %110 = arith.subf %109, %25 : vector<4x1xf32>
    %111 = vector.broadcast %110 : vector<4x1xf32> to vector<4x32xf32>
    %112 = arith.mulf %111, %21 : vector<4x32xf32>
    %113 = arith.addf %108, %112 : vector<4x32xf32>
    %c1 = arith.constant 1 : index
    %c0_53 = arith.constant 0 : index
    %c0_54 = arith.constant 0 : index
    %114 = vector.load %arg1[%c1, %c0_53, %c0_54] : memref<8x4x1xf32, #tpu.memory_space<vmem>>, vector<1x4x1xf32>
    %115 = vector.shape_cast %114 : vector<1x4x1xf32> to vector<4x1xf32>
    %c6 = arith.constant 6 : index
    %c0_55 = arith.constant 0 : index
    %c0_56 = arith.constant 0 : index
    %116 = vector.load %arg1[%c6, %c0_55, %c0_56] : memref<8x4x1xf32, #tpu.memory_space<vmem>>, vector<1x4x1xf32>
    %117 = vector.shape_cast %116 : vector<1x4x1xf32> to vector<4x1xf32>
    %c1_57 = arith.constant 1 : index
    %c0_58 = arith.constant 0 : index
    %c0_59 = arith.constant 0 : index
    %118 = vector.load %arg18[%c1_57, %c0_58, %c0_59] : memref<8x4x96xf32, #tpu.memory_space<vmem>>, vector<1x4x96xf32>
    %119 = vector.shape_cast %118 : vector<1x4x96xf32> to vector<4x96xf32>
    %120 = arith.truncf %106 : vector<4x32xf32> to vector<4x32xbf16>
    %cst_60 = arith.constant dense<0.000000e+00> : vector<4x96xf32>
    %121 = tpu.matmul %120, %16, %cst_60 {dimension_numbers = #tpu.dot_dimension_numbers<[1], [0], [0], [1], [0, 0, 1, 1], [], []>} : vector<4x32xbf16>, vector<32x96xbf16>, vector<4x96xf32> -> vector<4x96xf32>
    %122 = vector.broadcast %17 : vector<1x96xf32> to vector<4x96xf32>
    %123 = arith.addf %121, %122 : vector<4x96xf32>
    %124 = vector.extract_strided_slice %119 {offsets = [0, 0], sizes = [4, 32], strides = [1, 1]} : vector<4x96xf32> to vector<4x32xf32>
    %125 = vector.extract_strided_slice %123 {offsets = [0, 0], sizes = [4, 32], strides = [1, 1]} : vector<4x96xf32> to vector<4x32xf32>
    %126 = arith.addf %124, %125 : vector<4x32xf32>
    %127 = arith.negf %126 : vector<4x32xf32>
    %128 = math.exp %127 : vector<4x32xf32>
    %cst_61 = arith.constant 1.000000e+00 : f32
    %129 = vector.broadcast %cst_61 : f32 to vector<4x32xf32>
    %130 = arith.addf %129, %128 : vector<4x32xf32>
    %131 = arith.divf %129, %130 : vector<4x32xf32>
    %132 = vector.extract_strided_slice %119 {offsets = [0, 32], sizes = [4, 32], strides = [1, 1]} : vector<4x96xf32> to vector<4x32xf32>
    %133 = vector.extract_strided_slice %123 {offsets = [0, 32], sizes = [4, 32], strides = [1, 1]} : vector<4x96xf32> to vector<4x32xf32>
    %134 = arith.addf %132, %133 : vector<4x32xf32>
    %135 = arith.negf %134 : vector<4x32xf32>
    %136 = math.exp %135 : vector<4x32xf32>
    %cst_62 = arith.constant 1.000000e+00 : f32
    %137 = vector.broadcast %cst_62 : f32 to vector<4x32xf32>
    %138 = arith.addf %137, %136 : vector<4x32xf32>
    %139 = arith.divf %137, %138 : vector<4x32xf32>
    %140 = vector.extract_strided_slice %119 {offsets = [0, 64], sizes = [4, 32], strides = [1, 1]} : vector<4x96xf32> to vector<4x32xf32>
    %141 = vector.extract_strided_slice %123 {offsets = [0, 64], sizes = [4, 32], strides = [1, 1]} : vector<4x96xf32> to vector<4x32xf32>
    %142 = arith.mulf %131, %141 : vector<4x32xf32>
    %143 = arith.addf %140, %142 : vector<4x32xf32>
    %144 = math.tanh %143 : vector<4x32xf32>
    %cst_63 = arith.constant 1.000000e+00 : f32
    %145 = vector.broadcast %cst_63 : f32 to vector<4x32xf32>
    %146 = arith.subf %145, %139 : vector<4x32xf32>
    %147 = arith.mulf %146, %144 : vector<4x32xf32>
    %148 = arith.mulf %139, %106 : vector<4x32xf32>
    %149 = arith.addf %147, %148 : vector<4x32xf32>
    %c6_64 = arith.constant 6 : index
    %c0_65 = arith.constant 0 : index
    %c0_66 = arith.constant 0 : index
    %150 = vector.load %arg19[%c6_64, %c0_65, %c0_66] : memref<8x4x96xf32, #tpu.memory_space<vmem>>, vector<1x4x96xf32>
    %151 = vector.shape_cast %150 : vector<1x4x96xf32> to vector<4x96xf32>
    %152 = arith.truncf %113 : vector<4x32xf32> to vector<4x32xbf16>
    %cst_67 = arith.constant dense<0.000000e+00> : vector<4x96xf32>
    %153 = tpu.matmul %152, %18, %cst_67 {dimension_numbers = #tpu.dot_dimension_numbers<[1], [0], [0], [1], [0, 0, 1, 1], [], []>} : vector<4x32xbf16>, vector<32x96xbf16>, vector<4x96xf32> -> vector<4x96xf32>
    %154 = vector.broadcast %19 : vector<1x96xf32> to vector<4x96xf32>
    %155 = arith.addf %153, %154 : vector<4x96xf32>
    %156 = vector.extract_strided_slice %151 {offsets = [0, 0], sizes = [4, 32], strides = [1, 1]} : vector<4x96xf32> to vector<4x32xf32>
    %157 = vector.extract_strided_slice %155 {offsets = [0, 0], sizes = [4, 32], strides = [1, 1]} : vector<4x96xf32> to vector<4x32xf32>
    %158 = arith.addf %156, %157 : vector<4x32xf32>
    %159 = arith.negf %158 : vector<4x32xf32>
    %160 = math.exp %159 : vector<4x32xf32>
    %cst_68 = arith.constant 1.000000e+00 : f32
    %161 = vector.broadcast %cst_68 : f32 to vector<4x32xf32>
    %162 = arith.addf %161, %160 : vector<4x32xf32>
    %163 = arith.divf %161, %162 : vector<4x32xf32>
    %164 = vector.extract_strided_slice %151 {offsets = [0, 32], sizes = [4, 32], strides = [1, 1]} : vector<4x96xf32> to vector<4x32xf32>
    %165 = vector.extract_strided_slice %155 {offsets = [0, 32], sizes = [4, 32], strides = [1, 1]} : vector<4x96xf32> to vector<4x32xf32>
    %166 = arith.addf %164, %165 : vector<4x32xf32>
    %167 = arith.negf %166 : vector<4x32xf32>
    %168 = math.exp %167 : vector<4x32xf32>
    %cst_69 = arith.constant 1.000000e+00 : f32
    %169 = vector.broadcast %cst_69 : f32 to vector<4x32xf32>
    %170 = arith.addf %169, %168 : vector<4x32xf32>
    %171 = arith.divf %169, %170 : vector<4x32xf32>
    %172 = vector.extract_strided_slice %151 {offsets = [0, 64], sizes = [4, 32], strides = [1, 1]} : vector<4x96xf32> to vector<4x32xf32>
    %173 = vector.extract_strided_slice %155 {offsets = [0, 64], sizes = [4, 32], strides = [1, 1]} : vector<4x96xf32> to vector<4x32xf32>
    %174 = arith.mulf %163, %173 : vector<4x32xf32>
    %175 = arith.addf %172, %174 : vector<4x32xf32>
    %176 = math.tanh %175 : vector<4x32xf32>
    %cst_70 = arith.constant 1.000000e+00 : f32
    %177 = vector.broadcast %cst_70 : f32 to vector<4x32xf32>
    %178 = arith.subf %177, %171 : vector<4x32xf32>
    %179 = arith.mulf %178, %176 : vector<4x32xf32>
    %180 = arith.mulf %171, %113 : vector<4x32xf32>
    %181 = arith.addf %179, %180 : vector<4x32xf32>
    %182 = vector.broadcast %115 : vector<4x1xf32> to vector<4x32xf32>
    %183 = arith.mulf %182, %149 : vector<4x32xf32>
    %c0_71 = arith.constant 0 : index
    %c1_72 = arith.constant 1 : index
    %c0_73 = arith.constant 0 : index
    %184 = vector.load %arg15[%c0_71, %c1_72, %c0_73] : memref<4x8x64xf32, #tpu.memory_space<vmem>>, vector<4x1x32xf32>
    %185 = vector.shape_cast %184 : vector<4x1x32xf32> to vector<4x32xf32>
    %186 = vector.shape_cast %183 : vector<4x32xf32> to vector<4x1x32xf32>
    tpu.vector_store %arg15[%c0_71, %c1_72, %c0_73], %186 {strides = array<i32>} : memref<4x8x64xf32, #tpu.memory_space<vmem>>, vector<4x1x32xf32>,
    %187 = vector.broadcast %117 : vector<4x1xf32> to vector<4x32xf32>
    %188 = arith.mulf %187, %181 : vector<4x32xf32>
    %c0_74 = arith.constant 0 : index
    %c6_75 = arith.constant 6 : index
    %c32_76 = arith.constant 32 : index
    %189 = vector.load %arg15[%c0_74, %c6_75, %c32_76] : memref<4x8x64xf32, #tpu.memory_space<vmem>>, vector<4x1x32xf32>
    %190 = vector.shape_cast %189 : vector<4x1x32xf32> to vector<4x32xf32>
    %191 = vector.shape_cast %188 : vector<4x32xf32> to vector<4x1x32xf32>
    tpu.vector_store %arg15[%c0_74, %c6_75, %c32_76], %191 {strides = array<i32>} : memref<4x8x64xf32, #tpu.memory_space<vmem>>, vector<4x1x32xf32>,
    %192 = vector.broadcast %115 : vector<4x1xf32> to vector<4x32xf32>
    %193 = arith.mulf %192, %149 : vector<4x32xf32>
    %cst_77 = arith.constant 1.000000e+00 : f32
    %194 = vector.broadcast %cst_77 : f32 to vector<4x1xf32>
    %195 = arith.subf %194, %115 : vector<4x1xf32>
    %196 = vector.broadcast %195 : vector<4x1xf32> to vector<4x32xf32>
    %197 = arith.mulf %196, %106 : vector<4x32xf32>
    %198 = arith.addf %193, %197 : vector<4x32xf32>
    %199 = vector.broadcast %117 : vector<4x1xf32> to vector<4x32xf32>
    %200 = arith.mulf %199, %181 : vector<4x32xf32>
    %cst_78 = arith.constant 1.000000e+00 : f32
    %201 = vector.broadcast %cst_78 : f32 to vector<4x1xf32>
    %202 = arith.subf %201, %117 : vector<4x1xf32>
    %203 = vector.broadcast %202 : vector<4x1xf32> to vector<4x32xf32>
    %204 = arith.mulf %203, %113 : vector<4x32xf32>
    %205 = arith.addf %200, %204 : vector<4x32xf32>
    %c2 = arith.constant 2 : index
    %c0_79 = arith.constant 0 : index
    %c0_80 = arith.constant 0 : index
    %206 = vector.load %arg1[%c2, %c0_79, %c0_80] : memref<8x4x1xf32, #tpu.memory_space<vmem>>, vector<1x4x1xf32>
    %207 = vector.shape_cast %206 : vector<1x4x1xf32> to vector<4x1xf32>
    %c5 = arith.constant 5 : index
    %c0_81 = arith.constant 0 : index
    %c0_82 = arith.constant 0 : index
    %208 = vector.load %arg1[%c5, %c0_81, %c0_82] : memref<8x4x1xf32, #tpu.memory_space<vmem>>, vector<1x4x1xf32>
    %209 = vector.shape_cast %208 : vector<1x4x1xf32> to vector<4x1xf32>
    %c2_83 = arith.constant 2 : index
    %c0_84 = arith.constant 0 : index
    %c0_85 = arith.constant 0 : index
    %210 = vector.load %arg18[%c2_83, %c0_84, %c0_85] : memref<8x4x96xf32, #tpu.memory_space<vmem>>, vector<1x4x96xf32>
    %211 = vector.shape_cast %210 : vector<1x4x96xf32> to vector<4x96xf32>
    %212 = arith.truncf %198 : vector<4x32xf32> to vector<4x32xbf16>
    %cst_86 = arith.constant dense<0.000000e+00> : vector<4x96xf32>
    %213 = tpu.matmul %212, %16, %cst_86 {dimension_numbers = #tpu.dot_dimension_numbers<[1], [0], [0], [1], [0, 0, 1, 1], [], []>} : vector<4x32xbf16>, vector<32x96xbf16>, vector<4x96xf32> -> vector<4x96xf32>
    %214 = vector.broadcast %17 : vector<1x96xf32> to vector<4x96xf32>
    %215 = arith.addf %213, %214 : vector<4x96xf32>
    %216 = vector.extract_strided_slice %211 {offsets = [0, 0], sizes = [4, 32], strides = [1, 1]} : vector<4x96xf32> to vector<4x32xf32>
    %217 = vector.extract_strided_slice %215 {offsets = [0, 0], sizes = [4, 32], strides = [1, 1]} : vector<4x96xf32> to vector<4x32xf32>
    %218 = arith.addf %216, %217 : vector<4x32xf32>
    %219 = arith.negf %218 : vector<4x32xf32>
    %220 = math.exp %219 : vector<4x32xf32>
    %cst_87 = arith.constant 1.000000e+00 : f32
    %221 = vector.broadcast %cst_87 : f32 to vector<4x32xf32>
    %222 = arith.addf %221, %220 : vector<4x32xf32>
    %223 = arith.divf %221, %222 : vector<4x32xf32>
    %224 = vector.extract_strided_slice %211 {offsets = [0, 32], sizes = [4, 32], strides = [1, 1]} : vector<4x96xf32> to vector<4x32xf32>
    %225 = vector.extract_strided_slice %215 {offsets = [0, 32], sizes = [4, 32], strides = [1, 1]} : vector<4x96xf32> to vector<4x32xf32>
    %226 = arith.addf %224, %225 : vector<4x32xf32>
    %227 = arith.negf %226 : vector<4x32xf32>
    %228 = math.exp %227 : vector<4x32xf32>
    %cst_88 = arith.constant 1.000000e+00 : f32
    %229 = vector.broadcast %cst_88 : f32 to vector<4x32xf32>
    %230 = arith.addf %229, %228 : vector<4x32xf32>
    %231 = arith.divf %229, %230 : vector<4x32xf32>
    %232 = vector.extract_strided_slice %211 {offsets = [0, 64], sizes = [4, 32], strides = [1, 1]} : vector<4x96xf32> to vector<4x32xf32>
    %233 = vector.extract_strided_slice %215 {offsets = [0, 64], sizes = [4, 32], strides = [1, 1]} : vector<4x96xf32> to vector<4x32xf32>
    %234 = arith.mulf %223, %233 : vector<4x32xf32>
    %235 = arith.addf %232, %234 : vector<4x32xf32>
    %236 = math.tanh %235 : vector<4x32xf32>
    %cst_89 = arith.constant 1.000000e+00 : f32
    %237 = vector.broadcast %cst_89 : f32 to vector<4x32xf32>
    %238 = arith.subf %237, %231 : vector<4x32xf32>
    %239 = arith.mulf %238, %236 : vector<4x32xf32>
    %240 = arith.mulf %231, %198 : vector<4x32xf32>
    %241 = arith.addf %239, %240 : vector<4x32xf32>
    %c5_90 = arith.constant 5 : index
    %c0_91 = arith.constant 0 : index
    %c0_92 = arith.constant 0 : index
    %242 = vector.load %arg19[%c5_90, %c0_91, %c0_92] : memref<8x4x96xf32, #tpu.memory_space<vmem>>, vector<1x4x96xf32>
    %243 = vector.shape_cast %242 : vector<1x4x96xf32> to vector<4x96xf32>
    %244 = arith.truncf %205 : vector<4x32xf32> to vector<4x32xbf16>
    %cst_93 = arith.constant dense<0.000000e+00> : vector<4x96xf32>
    %245 = tpu.matmul %244, %18, %cst_93 {dimension_numbers = #tpu.dot_dimension_numbers<[1], [0], [0], [1], [0, 0, 1, 1], [], []>} : vector<4x32xbf16>, vector<32x96xbf16>, vector<4x96xf32> -> vector<4x96xf32>
    %246 = vector.broadcast %19 : vector<1x96xf32> to vector<4x96xf32>
    %247 = arith.addf %245, %246 : vector<4x96xf32>
    %248 = vector.extract_strided_slice %243 {offsets = [0, 0], sizes = [4, 32], strides = [1, 1]} : vector<4x96xf32> to vector<4x32xf32>
    %249 = vector.extract_strided_slice %247 {offsets = [0, 0], sizes = [4, 32], strides = [1, 1]} : vector<4x96xf32> to vector<4x32xf32>
    %250 = arith.addf %248, %249 : vector<4x32xf32>
    %251 = arith.negf %250 : vector<4x32xf32>
    %252 = math.exp %251 : vector<4x32xf32>
    %cst_94 = arith.constant 1.000000e+00 : f32
    %253 = vector.broadcast %cst_94 : f32 to vector<4x32xf32>
    %254 = arith.addf %253, %252 : vector<4x32xf32>
    %255 = arith.divf %253, %254 : vector<4x32xf32>
    %256 = vector.extract_strided_slice %243 {offsets = [0, 32], sizes = [4, 32], strides = [1, 1]} : vector<4x96xf32> to vector<4x32xf32>
    %257 = vector.extract_strided_slice %247 {offsets = [0, 32], sizes = [4, 32], strides = [1, 1]} : vector<4x96xf32> to vector<4x32xf32>
    %258 = arith.addf %256, %257 : vector<4x32xf32>
    %259 = arith.negf %258 : vector<4x32xf32>
    %260 = math.exp %259 : vector<4x32xf32>
    %cst_95 = arith.constant 1.000000e+00 : f32
    %261 = vector.broadcast %cst_95 : f32 to vector<4x32xf32>
    %262 = arith.addf %261, %260 : vector<4x32xf32>
    %263 = arith.divf %261, %262 : vector<4x32xf32>
    %264 = vector.extract_strided_slice %243 {offsets = [0, 64], sizes = [4, 32], strides = [1, 1]} : vector<4x96xf32> to vector<4x32xf32>
    %265 = vector.extract_strided_slice %247 {offsets = [0, 64], sizes = [4, 32], strides = [1, 1]} : vector<4x96xf32> to vector<4x32xf32>
    %266 = arith.mulf %255, %265 : vector<4x32xf32>
    %267 = arith.addf %264, %266 : vector<4x32xf32>
    %268 = math.tanh %267 : vector<4x32xf32>
    %cst_96 = arith.constant 1.000000e+00 : f32
    %269 = vector.broadcast %cst_96 : f32 to vector<4x32xf32>
    %270 = arith.subf %269, %263 : vector<4x32xf32>
    %271 = arith.mulf %270, %268 : vector<4x32xf32>
    %272 = arith.mulf %263, %205 : vector<4x32xf32>
    %273 = arith.addf %271, %272 : vector<4x32xf32>
    %274 = vector.broadcast %207 : vector<4x1xf32> to vector<4x32xf32>
    %275 = arith.mulf %274, %241 : vector<4x32xf32>
    %c0_97 = arith.constant 0 : index
    %c2_98 = arith.constant 2 : index
    %c0_99 = arith.constant 0 : index
    %276 = vector.load %arg15[%c0_97, %c2_98, %c0_99] : memref<4x8x64xf32, #tpu.memory_space<vmem>>, vector<4x1x32xf32>
    %277 = vector.shape_cast %276 : vector<4x1x32xf32> to vector<4x32xf32>
    %278 = vector.shape_cast %275 : vector<4x32xf32> to vector<4x1x32xf32>
    tpu.vector_store %arg15[%c0_97, %c2_98, %c0_99], %278 {strides = array<i32>} : memref<4x8x64xf32, #tpu.memory_space<vmem>>, vector<4x1x32xf32>,
    %279 = vector.broadcast %209 : vector<4x1xf32> to vector<4x32xf32>
    %280 = arith.mulf %279, %273 : vector<4x32xf32>
    %c0_100 = arith.constant 0 : index
    %c5_101 = arith.constant 5 : index
    %c32_102 = arith.constant 32 : index
    %281 = vector.load %arg15[%c0_100, %c5_101, %c32_102] : memref<4x8x64xf32, #tpu.memory_space<vmem>>, vector<4x1x32xf32>
    %282 = vector.shape_cast %281 : vector<4x1x32xf32> to vector<4x32xf32>
    %283 = vector.shape_cast %280 : vector<4x32xf32> to vector<4x1x32xf32>
    tpu.vector_store %arg15[%c0_100, %c5_101, %c32_102], %283 {strides = array<i32>} : memref<4x8x64xf32, #tpu.memory_space<vmem>>, vector<4x1x32xf32>,
    %284 = vector.broadcast %207 : vector<4x1xf32> to vector<4x32xf32>
    %285 = arith.mulf %284, %241 : vector<4x32xf32>
    %cst_103 = arith.constant 1.000000e+00 : f32
    %286 = vector.broadcast %cst_103 : f32 to vector<4x1xf32>
    %287 = arith.subf %286, %207 : vector<4x1xf32>
    %288 = vector.broadcast %287 : vector<4x1xf32> to vector<4x32xf32>
    %289 = arith.mulf %288, %198 : vector<4x32xf32>
    %290 = arith.addf %285, %289 : vector<4x32xf32>
    %291 = vector.broadcast %209 : vector<4x1xf32> to vector<4x32xf32>
    %292 = arith.mulf %291, %273 : vector<4x32xf32>
    %cst_104 = arith.constant 1.000000e+00 : f32
    %293 = vector.broadcast %cst_104 : f32 to vector<4x1xf32>
    %294 = arith.subf %293, %209 : vector<4x1xf32>
    %295 = vector.broadcast %294 : vector<4x1xf32> to vector<4x32xf32>
    %296 = arith.mulf %295, %205 : vector<4x32xf32>
    %297 = arith.addf %292, %296 : vector<4x32xf32>
    %c3 = arith.constant 3 : index
    %c0_105 = arith.constant 0 : index
    %c0_106 = arith.constant 0 : index
    %298 = vector.load %arg1[%c3, %c0_105, %c0_106] : memref<8x4x1xf32, #tpu.memory_space<vmem>>, vector<1x4x1xf32>
    %299 = vector.shape_cast %298 : vector<1x4x1xf32> to vector<4x1xf32>
    %c4 = arith.constant 4 : index
    %c0_107 = arith.constant 0 : index
    %c0_108 = arith.constant 0 : index
    %300 = vector.load %arg1[%c4, %c0_107, %c0_108] : memref<8x4x1xf32, #tpu.memory_space<vmem>>, vector<1x4x1xf32>
    %301 = vector.shape_cast %300 : vector<1x4x1xf32> to vector<4x1xf32>
    %c3_109 = arith.constant 3 : index
    %c0_110 = arith.constant 0 : index
    %c0_111 = arith.constant 0 : index
    %302 = vector.load %arg18[%c3_109, %c0_110, %c0_111] : memref<8x4x96xf32, #tpu.memory_space<vmem>>, vector<1x4x96xf32>
    %303 = vector.shape_cast %302 : vector<1x4x96xf32> to vector<4x96xf32>
    %304 = arith.truncf %290 : vector<4x32xf32> to vector<4x32xbf16>
    %cst_112 = arith.constant dense<0.000000e+00> : vector<4x96xf32>
    %305 = tpu.matmul %304, %16, %cst_112 {dimension_numbers = #tpu.dot_dimension_numbers<[1], [0], [0], [1], [0, 0, 1, 1], [], []>} : vector<4x32xbf16>, vector<32x96xbf16>, vector<4x96xf32> -> vector<4x96xf32>
    %306 = vector.broadcast %17 : vector<1x96xf32> to vector<4x96xf32>
    %307 = arith.addf %305, %306 : vector<4x96xf32>
    %308 = vector.extract_strided_slice %303 {offsets = [0, 0], sizes = [4, 32], strides = [1, 1]} : vector<4x96xf32> to vector<4x32xf32>
    %309 = vector.extract_strided_slice %307 {offsets = [0, 0], sizes = [4, 32], strides = [1, 1]} : vector<4x96xf32> to vector<4x32xf32>
    %310 = arith.addf %308, %309 : vector<4x32xf32>
    %311 = arith.negf %310 : vector<4x32xf32>
    %312 = math.exp %311 : vector<4x32xf32>
    %cst_113 = arith.constant 1.000000e+00 : f32
    %313 = vector.broadcast %cst_113 : f32 to vector<4x32xf32>
    %314 = arith.addf %313, %312 : vector<4x32xf32>
    %315 = arith.divf %313, %314 : vector<4x32xf32>
    %316 = vector.extract_strided_slice %303 {offsets = [0, 32], sizes = [4, 32], strides = [1, 1]} : vector<4x96xf32> to vector<4x32xf32>
    %317 = vector.extract_strided_slice %307 {offsets = [0, 32], sizes = [4, 32], strides = [1, 1]} : vector<4x96xf32> to vector<4x32xf32>
    %318 = arith.addf %316, %317 : vector<4x32xf32>
    %319 = arith.negf %318 : vector<4x32xf32>
    %320 = math.exp %319 : vector<4x32xf32>
    %cst_114 = arith.constant 1.000000e+00 : f32
    %321 = vector.broadcast %cst_114 : f32 to vector<4x32xf32>
    %322 = arith.addf %321, %320 : vector<4x32xf32>
    %323 = arith.divf %321, %322 : vector<4x32xf32>
    %324 = vector.extract_strided_slice %303 {offsets = [0, 64], sizes = [4, 32], strides = [1, 1]} : vector<4x96xf32> to vector<4x32xf32>
    %325 = vector.extract_strided_slice %307 {offsets = [0, 64], sizes = [4, 32], strides = [1, 1]} : vector<4x96xf32> to vector<4x32xf32>
    %326 = arith.mulf %315, %325 : vector<4x32xf32>
    %327 = arith.addf %324, %326 : vector<4x32xf32>
    %328 = math.tanh %327 : vector<4x32xf32>
    %cst_115 = arith.constant 1.000000e+00 : f32
    %329 = vector.broadcast %cst_115 : f32 to vector<4x32xf32>
    %330 = arith.subf %329, %323 : vector<4x32xf32>
    %331 = arith.mulf %330, %328 : vector<4x32xf32>
    %332 = arith.mulf %323, %290 : vector<4x32xf32>
    %333 = arith.addf %331, %332 : vector<4x32xf32>
    %c4_116 = arith.constant 4 : index
    %c0_117 = arith.constant 0 : index
    %c0_118 = arith.constant 0 : index
    %334 = vector.load %arg19[%c4_116, %c0_117, %c0_118] : memref<8x4x96xf32, #tpu.memory_space<vmem>>, vector<1x4x96xf32>
    %335 = vector.shape_cast %334 : vector<1x4x96xf32> to vector<4x96xf32>
    %336 = arith.truncf %297 : vector<4x32xf32> to vector<4x32xbf16>
    %cst_119 = arith.constant dense<0.000000e+00> : vector<4x96xf32>
    %337 = tpu.matmul %336, %18, %cst_119 {dimension_numbers = #tpu.dot_dimension_numbers<[1], [0], [0], [1], [0, 0, 1, 1], [], []>} : vector<4x32xbf16>, vector<32x96xbf16>, vector<4x96xf32> -> vector<4x96xf32>
    %338 = vector.broadcast %19 : vector<1x96xf32> to vector<4x96xf32>
    %339 = arith.addf %337, %338 : vector<4x96xf32>
    %340 = vector.extract_strided_slice %335 {offsets = [0, 0], sizes = [4, 32], strides = [1, 1]} : vector<4x96xf32> to vector<4x32xf32>
    %341 = vector.extract_strided_slice %339 {offsets = [0, 0], sizes = [4, 32], strides = [1, 1]} : vector<4x96xf32> to vector<4x32xf32>
    %342 = arith.addf %340, %341 : vector<4x32xf32>
    %343 = arith.negf %342 : vector<4x32xf32>
    %344 = math.exp %343 : vector<4x32xf32>
    %cst_120 = arith.constant 1.000000e+00 : f32
    %345 = vector.broadcast %cst_120 : f32 to vector<4x32xf32>
    %346 = arith.addf %345, %344 : vector<4x32xf32>
    %347 = arith.divf %345, %346 : vector<4x32xf32>
    %348 = vector.extract_strided_slice %335 {offsets = [0, 32], sizes = [4, 32], strides = [1, 1]} : vector<4x96xf32> to vector<4x32xf32>
    %349 = vector.extract_strided_slice %339 {offsets = [0, 32], sizes = [4, 32], strides = [1, 1]} : vector<4x96xf32> to vector<4x32xf32>
    %350 = arith.addf %348, %349 : vector<4x32xf32>
    %351 = arith.negf %350 : vector<4x32xf32>
    %352 = math.exp %351 : vector<4x32xf32>
    %cst_121 = arith.constant 1.000000e+00 : f32
    %353 = vector.broadcast %cst_121 : f32 to vector<4x32xf32>
    %354 = arith.addf %353, %352 : vector<4x32xf32>
    %355 = arith.divf %353, %354 : vector<4x32xf32>
    %356 = vector.extract_strided_slice %335 {offsets = [0, 64], sizes = [4, 32], strides = [1, 1]} : vector<4x96xf32> to vector<4x32xf32>
    %357 = vector.extract_strided_slice %339 {offsets = [0, 64], sizes = [4, 32], strides = [1, 1]} : vector<4x96xf32> to vector<4x32xf32>
    %358 = arith.mulf %347, %357 : vector<4x32xf32>
    %359 = arith.addf %356, %358 : vector<4x32xf32>
    %360 = math.tanh %359 : vector<4x32xf32>
    %cst_122 = arith.constant 1.000000e+00 : f32
    %361 = vector.broadcast %cst_122 : f32 to vector<4x32xf32>
    %362 = arith.subf %361, %355 : vector<4x32xf32>
    %363 = arith.mulf %362, %360 : vector<4x32xf32>
    %364 = arith.mulf %355, %297 : vector<4x32xf32>
    %365 = arith.addf %363, %364 : vector<4x32xf32>
    %366 = vector.broadcast %299 : vector<4x1xf32> to vector<4x32xf32>
    %367 = arith.mulf %366, %333 : vector<4x32xf32>
    %c0_123 = arith.constant 0 : index
    %c3_124 = arith.constant 3 : index
    %c0_125 = arith.constant 0 : index
    %368 = vector.load %arg15[%c0_123, %c3_124, %c0_125] : memref<4x8x64xf32, #tpu.memory_space<vmem>>, vector<4x1x32xf32>
    %369 = vector.shape_cast %368 : vector<4x1x32xf32> to vector<4x32xf32>
    %370 = vector.shape_cast %367 : vector<4x32xf32> to vector<4x1x32xf32>
    tpu.vector_store %arg15[%c0_123, %c3_124, %c0_125], %370 {strides = array<i32>} : memref<4x8x64xf32, #tpu.memory_space<vmem>>, vector<4x1x32xf32>,
    %371 = vector.broadcast %301 : vector<4x1xf32> to vector<4x32xf32>
    %372 = arith.mulf %371, %365 : vector<4x32xf32>
    %c0_126 = arith.constant 0 : index
    %c4_127 = arith.constant 4 : index
    %c32_128 = arith.constant 32 : index
    %373 = vector.load %arg15[%c0_126, %c4_127, %c32_128] : memref<4x8x64xf32, #tpu.memory_space<vmem>>, vector<4x1x32xf32>
    %374 = vector.shape_cast %373 : vector<4x1x32xf32> to vector<4x32xf32>
    %375 = vector.shape_cast %372 : vector<4x32xf32> to vector<4x1x32xf32>
    tpu.vector_store %arg15[%c0_126, %c4_127, %c32_128], %375 {strides = array<i32>} : memref<4x8x64xf32, #tpu.memory_space<vmem>>, vector<4x1x32xf32>,
    %376 = vector.broadcast %299 : vector<4x1xf32> to vector<4x32xf32>
    %377 = arith.mulf %376, %333 : vector<4x32xf32>
    %cst_129 = arith.constant 1.000000e+00 : f32
    %378 = vector.broadcast %cst_129 : f32 to vector<4x1xf32>
    %379 = arith.subf %378, %299 : vector<4x1xf32>
    %380 = vector.broadcast %379 : vector<4x1xf32> to vector<4x32xf32>
    %381 = arith.mulf %380, %290 : vector<4x32xf32>
    %382 = arith.addf %377, %381 : vector<4x32xf32>
    %383 = vector.broadcast %301 : vector<4x1xf32> to vector<4x32xf32>
    %384 = arith.mulf %383, %365 : vector<4x32xf32>
    %cst_130 = arith.constant 1.000000e+00 : f32
    %385 = vector.broadcast %cst_130 : f32 to vector<4x1xf32>
    %386 = arith.subf %385, %301 : vector<4x1xf32>
    %387 = vector.broadcast %386 : vector<4x1xf32> to vector<4x32xf32>
    %388 = arith.mulf %387, %297 : vector<4x32xf32>
    %389 = arith.addf %384, %388 : vector<4x32xf32>
    %c4_131 = arith.constant 4 : index
    %c0_132 = arith.constant 0 : index
    %c0_133 = arith.constant 0 : index
    %390 = vector.load %arg1[%c4_131, %c0_132, %c0_133] : memref<8x4x1xf32, #tpu.memory_space<vmem>>, vector<1x4x1xf32>
    %391 = vector.shape_cast %390 : vector<1x4x1xf32> to vector<4x1xf32>
    %c3_134 = arith.constant 3 : index
    %c0_135 = arith.constant 0 : index
    %c0_136 = arith.constant 0 : index
    %392 = vector.load %arg1[%c3_134, %c0_135, %c0_136] : memref<8x4x1xf32, #tpu.memory_space<vmem>>, vector<1x4x1xf32>
    %393 = vector.shape_cast %392 : vector<1x4x1xf32> to vector<4x1xf32>
    %c4_137 = arith.constant 4 : index
    %c0_138 = arith.constant 0 : index
    %c0_139 = arith.constant 0 : index
    %394 = vector.load %arg18[%c4_137, %c0_138, %c0_139] : memref<8x4x96xf32, #tpu.memory_space<vmem>>, vector<1x4x96xf32>
    %395 = vector.shape_cast %394 : vector<1x4x96xf32> to vector<4x96xf32>
    %396 = arith.truncf %382 : vector<4x32xf32> to vector<4x32xbf16>
    %cst_140 = arith.constant dense<0.000000e+00> : vector<4x96xf32>
    %397 = tpu.matmul %396, %16, %cst_140 {dimension_numbers = #tpu.dot_dimension_numbers<[1], [0], [0], [1], [0, 0, 1, 1], [], []>} : vector<4x32xbf16>, vector<32x96xbf16>, vector<4x96xf32> -> vector<4x96xf32>
    %398 = vector.broadcast %17 : vector<1x96xf32> to vector<4x96xf32>
    %399 = arith.addf %397, %398 : vector<4x96xf32>
    %400 = vector.extract_strided_slice %395 {offsets = [0, 0], sizes = [4, 32], strides = [1, 1]} : vector<4x96xf32> to vector<4x32xf32>
    %401 = vector.extract_strided_slice %399 {offsets = [0, 0], sizes = [4, 32], strides = [1, 1]} : vector<4x96xf32> to vector<4x32xf32>
    %402 = arith.addf %400, %401 : vector<4x32xf32>
    %403 = arith.negf %402 : vector<4x32xf32>
    %404 = math.exp %403 : vector<4x32xf32>
    %cst_141 = arith.constant 1.000000e+00 : f32
    %405 = vector.broadcast %cst_141 : f32 to vector<4x32xf32>
    %406 = arith.addf %405, %404 : vector<4x32xf32>
    %407 = arith.divf %405, %406 : vector<4x32xf32>
    %408 = vector.extract_strided_slice %395 {offsets = [0, 32], sizes = [4, 32], strides = [1, 1]} : vector<4x96xf32> to vector<4x32xf32>
    %409 = vector.extract_strided_slice %399 {offsets = [0, 32], sizes = [4, 32], strides = [1, 1]} : vector<4x96xf32> to vector<4x32xf32>
    %410 = arith.addf %408, %409 : vector<4x32xf32>
    %411 = arith.negf %410 : vector<4x32xf32>
    %412 = math.exp %411 : vector<4x32xf32>
    %cst_142 = arith.constant 1.000000e+00 : f32
    %413 = vector.broadcast %cst_142 : f32 to vector<4x32xf32>
    %414 = arith.addf %413, %412 : vector<4x32xf32>
    %415 = arith.divf %413, %414 : vector<4x32xf32>
    %416 = vector.extract_strided_slice %395 {offsets = [0, 64], sizes = [4, 32], strides = [1, 1]} : vector<4x96xf32> to vector<4x32xf32>
    %417 = vector.extract_strided_slice %399 {offsets = [0, 64], sizes = [4, 32], strides = [1, 1]} : vector<4x96xf32> to vector<4x32xf32>
    %418 = arith.mulf %407, %417 : vector<4x32xf32>
    %419 = arith.addf %416, %418 : vector<4x32xf32>
    %420 = math.tanh %419 : vector<4x32xf32>
    %cst_143 = arith.constant 1.000000e+00 : f32
    %421 = vector.broadcast %cst_143 : f32 to vector<4x32xf32>
    %422 = arith.subf %421, %415 : vector<4x32xf32>
    %423 = arith.mulf %422, %420 : vector<4x32xf32>
    %424 = arith.mulf %415, %382 : vector<4x32xf32>
    %425 = arith.addf %423, %424 : vector<4x32xf32>
    %c3_144 = arith.constant 3 : index
    %c0_145 = arith.constant 0 : index
    %c0_146 = arith.constant 0 : index
    %426 = vector.load %arg19[%c3_144, %c0_145, %c0_146] : memref<8x4x96xf32, #tpu.memory_space<vmem>>, vector<1x4x96xf32>
    %427 = vector.shape_cast %426 : vector<1x4x96xf32> to vector<4x96xf32>
    %428 = arith.truncf %389 : vector<4x32xf32> to vector<4x32xbf16>
    %cst_147 = arith.constant dense<0.000000e+00> : vector<4x96xf32>
    %429 = tpu.matmul %428, %18, %cst_147 {dimension_numbers = #tpu.dot_dimension_numbers<[1], [0], [0], [1], [0, 0, 1, 1], [], []>} : vector<4x32xbf16>, vector<32x96xbf16>, vector<4x96xf32> -> vector<4x96xf32>
    %430 = vector.broadcast %19 : vector<1x96xf32> to vector<4x96xf32>
    %431 = arith.addf %429, %430 : vector<4x96xf32>
    %432 = vector.extract_strided_slice %427 {offsets = [0, 0], sizes = [4, 32], strides = [1, 1]} : vector<4x96xf32> to vector<4x32xf32>
    %433 = vector.extract_strided_slice %431 {offsets = [0, 0], sizes = [4, 32], strides = [1, 1]} : vector<4x96xf32> to vector<4x32xf32>
    %434 = arith.addf %432, %433 : vector<4x32xf32>
    %435 = arith.negf %434 : vector<4x32xf32>
    %436 = math.exp %435 : vector<4x32xf32>
    %cst_148 = arith.constant 1.000000e+00 : f32
    %437 = vector.broadcast %cst_148 : f32 to vector<4x32xf32>
    %438 = arith.addf %437, %436 : vector<4x32xf32>
    %439 = arith.divf %437, %438 : vector<4x32xf32>
    %440 = vector.extract_strided_slice %427 {offsets = [0, 32], sizes = [4, 32], strides = [1, 1]} : vector<4x96xf32> to vector<4x32xf32>
    %441 = vector.extract_strided_slice %431 {offsets = [0, 32], sizes = [4, 32], strides = [1, 1]} : vector<4x96xf32> to vector<4x32xf32>
    %442 = arith.addf %440, %441 : vector<4x32xf32>
    %443 = arith.negf %442 : vector<4x32xf32>
    %444 = math.exp %443 : vector<4x32xf32>
    %cst_149 = arith.constant 1.000000e+00 : f32
    %445 = vector.broadcast %cst_149 : f32 to vector<4x32xf32>
    %446 = arith.addf %445, %444 : vector<4x32xf32>
    %447 = arith.divf %445, %446 : vector<4x32xf32>
    %448 = vector.extract_strided_slice %427 {offsets = [0, 64], sizes = [4, 32], strides = [1, 1]} : vector<4x96xf32> to vector<4x32xf32>
    %449 = vector.extract_strided_slice %431 {offsets = [0, 64], sizes = [4, 32], strides = [1, 1]} : vector<4x96xf32> to vector<4x32xf32>
    %450 = arith.mulf %439, %449 : vector<4x32xf32>
    %451 = arith.addf %448, %450 : vector<4x32xf32>
    %452 = math.tanh %451 : vector<4x32xf32>
    %cst_150 = arith.constant 1.000000e+00 : f32
    %453 = vector.broadcast %cst_150 : f32 to vector<4x32xf32>
    %454 = arith.subf %453, %447 : vector<4x32xf32>
    %455 = arith.mulf %454, %452 : vector<4x32xf32>
    %456 = arith.mulf %447, %389 : vector<4x32xf32>
    %457 = arith.addf %455, %456 : vector<4x32xf32>
    %458 = vector.broadcast %391 : vector<4x1xf32> to vector<4x32xf32>
    %459 = arith.mulf %458, %425 : vector<4x32xf32>
    %c0_151 = arith.constant 0 : index
    %c4_152 = arith.constant 4 : index
    %c0_153 = arith.constant 0 : index
    %460 = vector.load %arg15[%c0_151, %c4_152, %c0_153] : memref<4x8x64xf32, #tpu.memory_space<vmem>>, vector<4x1x32xf32>
    %461 = vector.shape_cast %460 : vector<4x1x32xf32> to vector<4x32xf32>
    %462 = vector.shape_cast %459 : vector<4x32xf32> to vector<4x1x32xf32>
    tpu.vector_store %arg15[%c0_151, %c4_152, %c0_153], %462 {strides = array<i32>} : memref<4x8x64xf32, #tpu.memory_space<vmem>>, vector<4x1x32xf32>,
    %463 = vector.broadcast %393 : vector<4x1xf32> to vector<4x32xf32>
    %464 = arith.mulf %463, %457 : vector<4x32xf32>
    %c0_154 = arith.constant 0 : index
    %c3_155 = arith.constant 3 : index
    %c32_156 = arith.constant 32 : index
    %465 = vector.load %arg15[%c0_154, %c3_155, %c32_156] : memref<4x8x64xf32, #tpu.memory_space<vmem>>, vector<4x1x32xf32>
    %466 = vector.shape_cast %465 : vector<4x1x32xf32> to vector<4x32xf32>
    %467 = vector.shape_cast %464 : vector<4x32xf32> to vector<4x1x32xf32>
    tpu.vector_store %arg15[%c0_154, %c3_155, %c32_156], %467 {strides = array<i32>} : memref<4x8x64xf32, #tpu.memory_space<vmem>>, vector<4x1x32xf32>,
    %468 = vector.broadcast %391 : vector<4x1xf32> to vector<4x32xf32>
    %469 = arith.mulf %468, %425 : vector<4x32xf32>
    %cst_157 = arith.constant 1.000000e+00 : f32
    %470 = vector.broadcast %cst_157 : f32 to vector<4x1xf32>
    %471 = arith.subf %470, %391 : vector<4x1xf32>
    %472 = vector.broadcast %471 : vector<4x1xf32> to vector<4x32xf32>
    %473 = arith.mulf %472, %382 : vector<4x32xf32>
    %474 = arith.addf %469, %473 : vector<4x32xf32>
    %475 = vector.broadcast %393 : vector<4x1xf32> to vector<4x32xf32>
    %476 = arith.mulf %475, %457 : vector<4x32xf32>
    %cst_158 = arith.constant 1.000000e+00 : f32
    %477 = vector.broadcast %cst_158 : f32 to vector<4x1xf32>
    %478 = arith.subf %477, %393 : vector<4x1xf32>
    %479 = vector.broadcast %478 : vector<4x1xf32> to vector<4x32xf32>
    %480 = arith.mulf %479, %389 : vector<4x32xf32>
    %481 = arith.addf %476, %480 : vector<4x32xf32>
    %c5_159 = arith.constant 5 : index
    %c0_160 = arith.constant 0 : index
    %c0_161 = arith.constant 0 : index
    %482 = vector.load %arg1[%c5_159, %c0_160, %c0_161] : memref<8x4x1xf32, #tpu.memory_space<vmem>>, vector<1x4x1xf32>
    %483 = vector.shape_cast %482 : vector<1x4x1xf32> to vector<4x1xf32>
    %c2_162 = arith.constant 2 : index
    %c0_163 = arith.constant 0 : index
    %c0_164 = arith.constant 0 : index
    %484 = vector.load %arg1[%c2_162, %c0_163, %c0_164] : memref<8x4x1xf32, #tpu.memory_space<vmem>>, vector<1x4x1xf32>
    %485 = vector.shape_cast %484 : vector<1x4x1xf32> to vector<4x1xf32>
    %c5_165 = arith.constant 5 : index
    %c0_166 = arith.constant 0 : index
    %c0_167 = arith.constant 0 : index
    %486 = vector.load %arg18[%c5_165, %c0_166, %c0_167] : memref<8x4x96xf32, #tpu.memory_space<vmem>>, vector<1x4x96xf32>
    %487 = vector.shape_cast %486 : vector<1x4x96xf32> to vector<4x96xf32>
    %488 = arith.truncf %474 : vector<4x32xf32> to vector<4x32xbf16>
    %cst_168 = arith.constant dense<0.000000e+00> : vector<4x96xf32>
    %489 = tpu.matmul %488, %16, %cst_168 {dimension_numbers = #tpu.dot_dimension_numbers<[1], [0], [0], [1], [0, 0, 1, 1], [], []>} : vector<4x32xbf16>, vector<32x96xbf16>, vector<4x96xf32> -> vector<4x96xf32>
    %490 = vector.broadcast %17 : vector<1x96xf32> to vector<4x96xf32>
    %491 = arith.addf %489, %490 : vector<4x96xf32>
    %492 = vector.extract_strided_slice %487 {offsets = [0, 0], sizes = [4, 32], strides = [1, 1]} : vector<4x96xf32> to vector<4x32xf32>
    %493 = vector.extract_strided_slice %491 {offsets = [0, 0], sizes = [4, 32], strides = [1, 1]} : vector<4x96xf32> to vector<4x32xf32>
    %494 = arith.addf %492, %493 : vector<4x32xf32>
    %495 = arith.negf %494 : vector<4x32xf32>
    %496 = math.exp %495 : vector<4x32xf32>
    %cst_169 = arith.constant 1.000000e+00 : f32
    %497 = vector.broadcast %cst_169 : f32 to vector<4x32xf32>
    %498 = arith.addf %497, %496 : vector<4x32xf32>
    %499 = arith.divf %497, %498 : vector<4x32xf32>
    %500 = vector.extract_strided_slice %487 {offsets = [0, 32], sizes = [4, 32], strides = [1, 1]} : vector<4x96xf32> to vector<4x32xf32>
    %501 = vector.extract_strided_slice %491 {offsets = [0, 32], sizes = [4, 32], strides = [1, 1]} : vector<4x96xf32> to vector<4x32xf32>
    %502 = arith.addf %500, %501 : vector<4x32xf32>
    %503 = arith.negf %502 : vector<4x32xf32>
    %504 = math.exp %503 : vector<4x32xf32>
    %cst_170 = arith.constant 1.000000e+00 : f32
    %505 = vector.broadcast %cst_170 : f32 to vector<4x32xf32>
    %506 = arith.addf %505, %504 : vector<4x32xf32>
    %507 = arith.divf %505, %506 : vector<4x32xf32>
    %508 = vector.extract_strided_slice %487 {offsets = [0, 64], sizes = [4, 32], strides = [1, 1]} : vector<4x96xf32> to vector<4x32xf32>
    %509 = vector.extract_strided_slice %491 {offsets = [0, 64], sizes = [4, 32], strides = [1, 1]} : vector<4x96xf32> to vector<4x32xf32>
    %510 = arith.mulf %499, %509 : vector<4x32xf32>
    %511 = arith.addf %508, %510 : vector<4x32xf32>
    %512 = math.tanh %511 : vector<4x32xf32>
    %cst_171 = arith.constant 1.000000e+00 : f32
    %513 = vector.broadcast %cst_171 : f32 to vector<4x32xf32>
    %514 = arith.subf %513, %507 : vector<4x32xf32>
    %515 = arith.mulf %514, %512 : vector<4x32xf32>
    %516 = arith.mulf %507, %474 : vector<4x32xf32>
    %517 = arith.addf %515, %516 : vector<4x32xf32>
    %c2_172 = arith.constant 2 : index
    %c0_173 = arith.constant 0 : index
    %c0_174 = arith.constant 0 : index
    %518 = vector.load %arg19[%c2_172, %c0_173, %c0_174] : memref<8x4x96xf32, #tpu.memory_space<vmem>>, vector<1x4x96xf32>
    %519 = vector.shape_cast %518 : vector<1x4x96xf32> to vector<4x96xf32>
    %520 = arith.truncf %481 : vector<4x32xf32> to vector<4x32xbf16>
    %cst_175 = arith.constant dense<0.000000e+00> : vector<4x96xf32>
    %521 = tpu.matmul %520, %18, %cst_175 {dimension_numbers = #tpu.dot_dimension_numbers<[1], [0], [0], [1], [0, 0, 1, 1], [], []>} : vector<4x32xbf16>, vector<32x96xbf16>, vector<4x96xf32> -> vector<4x96xf32>
    %522 = vector.broadcast %19 : vector<1x96xf32> to vector<4x96xf32>
    %523 = arith.addf %521, %522 : vector<4x96xf32>
    %524 = vector.extract_strided_slice %519 {offsets = [0, 0], sizes = [4, 32], strides = [1, 1]} : vector<4x96xf32> to vector<4x32xf32>
    %525 = vector.extract_strided_slice %523 {offsets = [0, 0], sizes = [4, 32], strides = [1, 1]} : vector<4x96xf32> to vector<4x32xf32>
    %526 = arith.addf %524, %525 : vector<4x32xf32>
    %527 = arith.negf %526 : vector<4x32xf32>
    %528 = math.exp %527 : vector<4x32xf32>
    %cst_176 = arith.constant 1.000000e+00 : f32
    %529 = vector.broadcast %cst_176 : f32 to vector<4x32xf32>
    %530 = arith.addf %529, %528 : vector<4x32xf32>
    %531 = arith.divf %529, %530 : vector<4x32xf32>
    %532 = vector.extract_strided_slice %519 {offsets = [0, 32], sizes = [4, 32], strides = [1, 1]} : vector<4x96xf32> to vector<4x32xf32>
    %533 = vector.extract_strided_slice %523 {offsets = [0, 32], sizes = [4, 32], strides = [1, 1]} : vector<4x96xf32> to vector<4x32xf32>
    %534 = arith.addf %532, %533 : vector<4x32xf32>
    %535 = arith.negf %534 : vector<4x32xf32>
    %536 = math.exp %535 : vector<4x32xf32>
    %cst_177 = arith.constant 1.000000e+00 : f32
    %537 = vector.broadcast %cst_177 : f32 to vector<4x32xf32>
    %538 = arith.addf %537, %536 : vector<4x32xf32>
    %539 = arith.divf %537, %538 : vector<4x32xf32>
    %540 = vector.extract_strided_slice %519 {offsets = [0, 64], sizes = [4, 32], strides = [1, 1]} : vector<4x96xf32> to vector<4x32xf32>
    %541 = vector.extract_strided_slice %523 {offsets = [0, 64], sizes = [4, 32], strides = [1, 1]} : vector<4x96xf32> to vector<4x32xf32>
    %542 = arith.mulf %531, %541 : vector<4x32xf32>
    %543 = arith.addf %540, %542 : vector<4x32xf32>
    %544 = math.tanh %543 : vector<4x32xf32>
    %cst_178 = arith.constant 1.000000e+00 : f32
    %545 = vector.broadcast %cst_178 : f32 to vector<4x32xf32>
    %546 = arith.subf %545, %539 : vector<4x32xf32>
    %547 = arith.mulf %546, %544 : vector<4x32xf32>
    %548 = arith.mulf %539, %481 : vector<4x32xf32>
    %549 = arith.addf %547, %548 : vector<4x32xf32>
    %550 = vector.broadcast %483 : vector<4x1xf32> to vector<4x32xf32>
    %551 = arith.mulf %550, %517 : vector<4x32xf32>
    %c0_179 = arith.constant 0 : index
    %c5_180 = arith.constant 5 : index
    %c0_181 = arith.constant 0 : index
    %552 = vector.load %arg15[%c0_179, %c5_180, %c0_181] : memref<4x8x64xf32, #tpu.memory_space<vmem>>, vector<4x1x32xf32>
    %553 = vector.shape_cast %552 : vector<4x1x32xf32> to vector<4x32xf32>
    %554 = vector.shape_cast %551 : vector<4x32xf32> to vector<4x1x32xf32>
    tpu.vector_store %arg15[%c0_179, %c5_180, %c0_181], %554 {strides = array<i32>} : memref<4x8x64xf32, #tpu.memory_space<vmem>>, vector<4x1x32xf32>,
    %555 = vector.broadcast %485 : vector<4x1xf32> to vector<4x32xf32>
    %556 = arith.mulf %555, %549 : vector<4x32xf32>
    %c0_182 = arith.constant 0 : index
    %c2_183 = arith.constant 2 : index
    %c32_184 = arith.constant 32 : index
    %557 = vector.load %arg15[%c0_182, %c2_183, %c32_184] : memref<4x8x64xf32, #tpu.memory_space<vmem>>, vector<4x1x32xf32>
    %558 = vector.shape_cast %557 : vector<4x1x32xf32> to vector<4x32xf32>
    %559 = vector.shape_cast %556 : vector<4x32xf32> to vector<4x1x32xf32>
    tpu.vector_store %arg15[%c0_182, %c2_183, %c32_184], %559 {strides = array<i32>} : memref<4x8x64xf32, #tpu.memory_space<vmem>>, vector<4x1x32xf32>,
    %560 = vector.broadcast %483 : vector<4x1xf32> to vector<4x32xf32>
    %561 = arith.mulf %560, %517 : vector<4x32xf32>
    %cst_185 = arith.constant 1.000000e+00 : f32
    %562 = vector.broadcast %cst_185 : f32 to vector<4x1xf32>
    %563 = arith.subf %562, %483 : vector<4x1xf32>
    %564 = vector.broadcast %563 : vector<4x1xf32> to vector<4x32xf32>
    %565 = arith.mulf %564, %474 : vector<4x32xf32>
    %566 = arith.addf %561, %565 : vector<4x32xf32>
    %567 = vector.broadcast %485 : vector<4x1xf32> to vector<4x32xf32>
    %568 = arith.mulf %567, %549 : vector<4x32xf32>
    %cst_186 = arith.constant 1.000000e+00 : f32
    %569 = vector.broadcast %cst_186 : f32 to vector<4x1xf32>
    %570 = arith.subf %569, %485 : vector<4x1xf32>
    %571 = vector.broadcast %570 : vector<4x1xf32> to vector<4x32xf32>
    %572 = arith.mulf %571, %481 : vector<4x32xf32>
    %573 = arith.addf %568, %572 : vector<4x32xf32>
    %c6_187 = arith.constant 6 : index
    %c0_188 = arith.constant 0 : index
    %c0_189 = arith.constant 0 : index
    %574 = vector.load %arg1[%c6_187, %c0_188, %c0_189] : memref<8x4x1xf32, #tpu.memory_space<vmem>>, vector<1x4x1xf32>
    %575 = vector.shape_cast %574 : vector<1x4x1xf32> to vector<4x1xf32>
    %c1_190 = arith.constant 1 : index
    %c0_191 = arith.constant 0 : index
    %c0_192 = arith.constant 0 : index
    %576 = vector.load %arg1[%c1_190, %c0_191, %c0_192] : memref<8x4x1xf32, #tpu.memory_space<vmem>>, vector<1x4x1xf32>
    %577 = vector.shape_cast %576 : vector<1x4x1xf32> to vector<4x1xf32>
    %c6_193 = arith.constant 6 : index
    %c0_194 = arith.constant 0 : index
    %c0_195 = arith.constant 0 : index
    %578 = vector.load %arg18[%c6_193, %c0_194, %c0_195] : memref<8x4x96xf32, #tpu.memory_space<vmem>>, vector<1x4x96xf32>
    %579 = vector.shape_cast %578 : vector<1x4x96xf32> to vector<4x96xf32>
    %580 = arith.truncf %566 : vector<4x32xf32> to vector<4x32xbf16>
    %cst_196 = arith.constant dense<0.000000e+00> : vector<4x96xf32>
    %581 = tpu.matmul %580, %16, %cst_196 {dimension_numbers = #tpu.dot_dimension_numbers<[1], [0], [0], [1], [0, 0, 1, 1], [], []>} : vector<4x32xbf16>, vector<32x96xbf16>, vector<4x96xf32> -> vector<4x96xf32>
    %582 = vector.broadcast %17 : vector<1x96xf32> to vector<4x96xf32>
    %583 = arith.addf %581, %582 : vector<4x96xf32>
    %584 = vector.extract_strided_slice %579 {offsets = [0, 0], sizes = [4, 32], strides = [1, 1]} : vector<4x96xf32> to vector<4x32xf32>
    %585 = vector.extract_strided_slice %583 {offsets = [0, 0], sizes = [4, 32], strides = [1, 1]} : vector<4x96xf32> to vector<4x32xf32>
    %586 = arith.addf %584, %585 : vector<4x32xf32>
    %587 = arith.negf %586 : vector<4x32xf32>
    %588 = math.exp %587 : vector<4x32xf32>
    %cst_197 = arith.constant 1.000000e+00 : f32
    %589 = vector.broadcast %cst_197 : f32 to vector<4x32xf32>
    %590 = arith.addf %589, %588 : vector<4x32xf32>
    %591 = arith.divf %589, %590 : vector<4x32xf32>
    %592 = vector.extract_strided_slice %579 {offsets = [0, 32], sizes = [4, 32], strides = [1, 1]} : vector<4x96xf32> to vector<4x32xf32>
    %593 = vector.extract_strided_slice %583 {offsets = [0, 32], sizes = [4, 32], strides = [1, 1]} : vector<4x96xf32> to vector<4x32xf32>
    %594 = arith.addf %592, %593 : vector<4x32xf32>
    %595 = arith.negf %594 : vector<4x32xf32>
    %596 = math.exp %595 : vector<4x32xf32>
    %cst_198 = arith.constant 1.000000e+00 : f32
    %597 = vector.broadcast %cst_198 : f32 to vector<4x32xf32>
    %598 = arith.addf %597, %596 : vector<4x32xf32>
    %599 = arith.divf %597, %598 : vector<4x32xf32>
    %600 = vector.extract_strided_slice %579 {offsets = [0, 64], sizes = [4, 32], strides = [1, 1]} : vector<4x96xf32> to vector<4x32xf32>
    %601 = vector.extract_strided_slice %583 {offsets = [0, 64], sizes = [4, 32], strides = [1, 1]} : vector<4x96xf32> to vector<4x32xf32>
    %602 = arith.mulf %591, %601 : vector<4x32xf32>
    %603 = arith.addf %600, %602 : vector<4x32xf32>
    %604 = math.tanh %603 : vector<4x32xf32>
    %cst_199 = arith.constant 1.000000e+00 : f32
    %605 = vector.broadcast %cst_199 : f32 to vector<4x32xf32>
    %606 = arith.subf %605, %599 : vector<4x32xf32>
    %607 = arith.mulf %606, %604 : vector<4x32xf32>
    %608 = arith.mulf %599, %566 : vector<4x32xf32>
    %609 = arith.addf %607, %608 : vector<4x32xf32>
    %c1_200 = arith.constant 1 : index
    %c0_201 = arith.constant 0 : index
    %c0_202 = arith.constant 0 : index
    %610 = vector.load %arg19[%c1_200, %c0_201, %c0_202] : memref<8x4x96xf32, #tpu.memory_space<vmem>>, vector<1x4x96xf32>
    %611 = vector.shape_cast %610 : vector<1x4x96xf32> to vector<4x96xf32>
    %612 = arith.truncf %573 : vector<4x32xf32> to vector<4x32xbf16>
    %cst_203 = arith.constant dense<0.000000e+00> : vector<4x96xf32>
    %613 = tpu.matmul %612, %18, %cst_203 {dimension_numbers = #tpu.dot_dimension_numbers<[1], [0], [0], [1], [0, 0, 1, 1], [], []>} : vector<4x32xbf16>, vector<32x96xbf16>, vector<4x96xf32> -> vector<4x96xf32>
    %614 = vector.broadcast %19 : vector<1x96xf32> to vector<4x96xf32>
    %615 = arith.addf %613, %614 : vector<4x96xf32>
    %616 = vector.extract_strided_slice %611 {offsets = [0, 0], sizes = [4, 32], strides = [1, 1]} : vector<4x96xf32> to vector<4x32xf32>
    %617 = vector.extract_strided_slice %615 {offsets = [0, 0], sizes = [4, 32], strides = [1, 1]} : vector<4x96xf32> to vector<4x32xf32>
    %618 = arith.addf %616, %617 : vector<4x32xf32>
    %619 = arith.negf %618 : vector<4x32xf32>
    %620 = math.exp %619 : vector<4x32xf32>
    %cst_204 = arith.constant 1.000000e+00 : f32
    %621 = vector.broadcast %cst_204 : f32 to vector<4x32xf32>
    %622 = arith.addf %621, %620 : vector<4x32xf32>
    %623 = arith.divf %621, %622 : vector<4x32xf32>
    %624 = vector.extract_strided_slice %611 {offsets = [0, 32], sizes = [4, 32], strides = [1, 1]} : vector<4x96xf32> to vector<4x32xf32>
    %625 = vector.extract_strided_slice %615 {offsets = [0, 32], sizes = [4, 32], strides = [1, 1]} : vector<4x96xf32> to vector<4x32xf32>
    %626 = arith.addf %624, %625 : vector<4x32xf32>
    %627 = arith.negf %626 : vector<4x32xf32>
    %628 = math.exp %627 : vector<4x32xf32>
    %cst_205 = arith.constant 1.000000e+00 : f32
    %629 = vector.broadcast %cst_205 : f32 to vector<4x32xf32>
    %630 = arith.addf %629, %628 : vector<4x32xf32>
    %631 = arith.divf %629, %630 : vector<4x32xf32>
    %632 = vector.extract_strided_slice %611 {offsets = [0, 64], sizes = [4, 32], strides = [1, 1]} : vector<4x96xf32> to vector<4x32xf32>
    %633 = vector.extract_strided_slice %615 {offsets = [0, 64], sizes = [4, 32], strides = [1, 1]} : vector<4x96xf32> to vector<4x32xf32>
    %634 = arith.mulf %623, %633 : vector<4x32xf32>
    %635 = arith.addf %632, %634 : vector<4x32xf32>
    %636 = math.tanh %635 : vector<4x32xf32>
    %cst_206 = arith.constant 1.000000e+00 : f32
    %637 = vector.broadcast %cst_206 : f32 to vector<4x32xf32>
    %638 = arith.subf %637, %631 : vector<4x32xf32>
    %639 = arith.mulf %638, %636 : vector<4x32xf32>
    %640 = arith.mulf %631, %573 : vector<4x32xf32>
    %641 = arith.addf %639, %640 : vector<4x32xf32>
    %642 = vector.broadcast %575 : vector<4x1xf32> to vector<4x32xf32>
    %643 = arith.mulf %642, %609 : vector<4x32xf32>
    %c0_207 = arith.constant 0 : index
    %c6_208 = arith.constant 6 : index
    %c0_209 = arith.constant 0 : index
    %644 = vector.load %arg15[%c0_207, %c6_208, %c0_209] : memref<4x8x64xf32, #tpu.memory_space<vmem>>, vector<4x1x32xf32>
    %645 = vector.shape_cast %644 : vector<4x1x32xf32> to vector<4x32xf32>
    %646 = vector.shape_cast %643 : vector<4x32xf32> to vector<4x1x32xf32>
    tpu.vector_store %arg15[%c0_207, %c6_208, %c0_209], %646 {strides = array<i32>} : memref<4x8x64xf32, #tpu.memory_space<vmem>>, vector<4x1x32xf32>,
    %647 = vector.broadcast %577 : vector<4x1xf32> to vector<4x32xf32>
    %648 = arith.mulf %647, %641 : vector<4x32xf32>
    %c0_210 = arith.constant 0 : index
    %c1_211 = arith.constant 1 : index
    %c32_212 = arith.constant 32 : index
    %649 = vector.load %arg15[%c0_210, %c1_211, %c32_212] : memref<4x8x64xf32, #tpu.memory_space<vmem>>, vector<4x1x32xf32>
    %650 = vector.shape_cast %649 : vector<4x1x32xf32> to vector<4x32xf32>
    %651 = vector.shape_cast %648 : vector<4x32xf32> to vector<4x1x32xf32>
    tpu.vector_store %arg15[%c0_210, %c1_211, %c32_212], %651 {strides = array<i32>} : memref<4x8x64xf32, #tpu.memory_space<vmem>>, vector<4x1x32xf32>,
    %652 = vector.broadcast %575 : vector<4x1xf32> to vector<4x32xf32>
    %653 = arith.mulf %652, %609 : vector<4x32xf32>
    %cst_213 = arith.constant 1.000000e+00 : f32
    %654 = vector.broadcast %cst_213 : f32 to vector<4x1xf32>
    %655 = arith.subf %654, %575 : vector<4x1xf32>
    %656 = vector.broadcast %655 : vector<4x1xf32> to vector<4x32xf32>
    %657 = arith.mulf %656, %566 : vector<4x32xf32>
    %658 = arith.addf %653, %657 : vector<4x32xf32>
    %659 = vector.broadcast %577 : vector<4x1xf32> to vector<4x32xf32>
    %660 = arith.mulf %659, %641 : vector<4x32xf32>
    %cst_214 = arith.constant 1.000000e+00 : f32
    %661 = vector.broadcast %cst_214 : f32 to vector<4x1xf32>
    %662 = arith.subf %661, %577 : vector<4x1xf32>
    %663 = vector.broadcast %662 : vector<4x1xf32> to vector<4x32xf32>
    %664 = arith.mulf %663, %573 : vector<4x32xf32>
    %665 = arith.addf %660, %664 : vector<4x32xf32>
    %c7_215 = arith.constant 7 : index
    %c0_216 = arith.constant 0 : index
    %c0_217 = arith.constant 0 : index
    %666 = vector.load %arg1[%c7_215, %c0_216, %c0_217] : memref<8x4x1xf32, #tpu.memory_space<vmem>>, vector<1x4x1xf32>
    %667 = vector.shape_cast %666 : vector<1x4x1xf32> to vector<4x1xf32>
    %c0_218 = arith.constant 0 : index
    %c0_219 = arith.constant 0 : index
    %c0_220 = arith.constant 0 : index
    %668 = vector.load %arg1[%c0_218, %c0_219, %c0_220] : memref<8x4x1xf32, #tpu.memory_space<vmem>>, vector<1x4x1xf32>
    %669 = vector.shape_cast %668 : vector<1x4x1xf32> to vector<4x1xf32>
    %c7_221 = arith.constant 7 : index
    %c0_222 = arith.constant 0 : index
    %c0_223 = arith.constant 0 : index
    %670 = vector.load %arg18[%c7_221, %c0_222, %c0_223] : memref<8x4x96xf32, #tpu.memory_space<vmem>>, vector<1x4x96xf32>
    %671 = vector.shape_cast %670 : vector<1x4x96xf32> to vector<4x96xf32>
    %672 = arith.truncf %658 : vector<4x32xf32> to vector<4x32xbf16>
    %cst_224 = arith.constant dense<0.000000e+00> : vector<4x96xf32>
    %673 = tpu.matmul %672, %16, %cst_224 {dimension_numbers = #tpu.dot_dimension_numbers<[1], [0], [0], [1], [0, 0, 1, 1], [], []>} : vector<4x32xbf16>, vector<32x96xbf16>, vector<4x96xf32> -> vector<4x96xf32>
    %674 = vector.broadcast %17 : vector<1x96xf32> to vector<4x96xf32>
    %675 = arith.addf %673, %674 : vector<4x96xf32>
    %676 = vector.extract_strided_slice %671 {offsets = [0, 0], sizes = [4, 32], strides = [1, 1]} : vector<4x96xf32> to vector<4x32xf32>
    %677 = vector.extract_strided_slice %675 {offsets = [0, 0], sizes = [4, 32], strides = [1, 1]} : vector<4x96xf32> to vector<4x32xf32>
    %678 = arith.addf %676, %677 : vector<4x32xf32>
    %679 = arith.negf %678 : vector<4x32xf32>
    %680 = math.exp %679 : vector<4x32xf32>
    %cst_225 = arith.constant 1.000000e+00 : f32
    %681 = vector.broadcast %cst_225 : f32 to vector<4x32xf32>
    %682 = arith.addf %681, %680 : vector<4x32xf32>
    %683 = arith.divf %681, %682 : vector<4x32xf32>
    %684 = vector.extract_strided_slice %671 {offsets = [0, 32], sizes = [4, 32], strides = [1, 1]} : vector<4x96xf32> to vector<4x32xf32>
    %685 = vector.extract_strided_slice %675 {offsets = [0, 32], sizes = [4, 32], strides = [1, 1]} : vector<4x96xf32> to vector<4x32xf32>
    %686 = arith.addf %684, %685 : vector<4x32xf32>
    %687 = arith.negf %686 : vector<4x32xf32>
    %688 = math.exp %687 : vector<4x32xf32>
    %cst_226 = arith.constant 1.000000e+00 : f32
    %689 = vector.broadcast %cst_226 : f32 to vector<4x32xf32>
    %690 = arith.addf %689, %688 : vector<4x32xf32>
    %691 = arith.divf %689, %690 : vector<4x32xf32>
    %692 = vector.extract_strided_slice %671 {offsets = [0, 64], sizes = [4, 32], strides = [1, 1]} : vector<4x96xf32> to vector<4x32xf32>
    %693 = vector.extract_strided_slice %675 {offsets = [0, 64], sizes = [4, 32], strides = [1, 1]} : vector<4x96xf32> to vector<4x32xf32>
    %694 = arith.mulf %683, %693 : vector<4x32xf32>
    %695 = arith.addf %692, %694 : vector<4x32xf32>
    %696 = math.tanh %695 : vector<4x32xf32>
    %cst_227 = arith.constant 1.000000e+00 : f32
    %697 = vector.broadcast %cst_227 : f32 to vector<4x32xf32>
    %698 = arith.subf %697, %691 : vector<4x32xf32>
    %699 = arith.mulf %698, %696 : vector<4x32xf32>
    %700 = arith.mulf %691, %658 : vector<4x32xf32>
    %701 = arith.addf %699, %700 : vector<4x32xf32>
    %c0_228 = arith.constant 0 : index
    %c0_229 = arith.constant 0 : index
    %c0_230 = arith.constant 0 : index
    %702 = vector.load %arg19[%c0_228, %c0_229, %c0_230] : memref<8x4x96xf32, #tpu.memory_space<vmem>>, vector<1x4x96xf32>
    %703 = vector.shape_cast %702 : vector<1x4x96xf32> to vector<4x96xf32>
    %704 = arith.truncf %665 : vector<4x32xf32> to vector<4x32xbf16>
    %cst_231 = arith.constant dense<0.000000e+00> : vector<4x96xf32>
    %705 = tpu.matmul %704, %18, %cst_231 {dimension_numbers = #tpu.dot_dimension_numbers<[1], [0], [0], [1], [0, 0, 1, 1], [], []>} : vector<4x32xbf16>, vector<32x96xbf16>, vector<4x96xf32> -> vector<4x96xf32>
    %706 = vector.broadcast %19 : vector<1x96xf32> to vector<4x96xf32>
    %707 = arith.addf %705, %706 : vector<4x96xf32>
    %708 = vector.extract_strided_slice %703 {offsets = [0, 0], sizes = [4, 32], strides = [1, 1]} : vector<4x96xf32> to vector<4x32xf32>
    %709 = vector.extract_strided_slice %707 {offsets = [0, 0], sizes = [4, 32], strides = [1, 1]} : vector<4x96xf32> to vector<4x32xf32>
    %710 = arith.addf %708, %709 : vector<4x32xf32>
    %711 = arith.negf %710 : vector<4x32xf32>
    %712 = math.exp %711 : vector<4x32xf32>
    %cst_232 = arith.constant 1.000000e+00 : f32
    %713 = vector.broadcast %cst_232 : f32 to vector<4x32xf32>
    %714 = arith.addf %713, %712 : vector<4x32xf32>
    %715 = arith.divf %713, %714 : vector<4x32xf32>
    %716 = vector.extract_strided_slice %703 {offsets = [0, 32], sizes = [4, 32], strides = [1, 1]} : vector<4x96xf32> to vector<4x32xf32>
    %717 = vector.extract_strided_slice %707 {offsets = [0, 32], sizes = [4, 32], strides = [1, 1]} : vector<4x96xf32> to vector<4x32xf32>
    %718 = arith.addf %716, %717 : vector<4x32xf32>
    %719 = arith.negf %718 : vector<4x32xf32>
    %720 = math.exp %719 : vector<4x32xf32>
    %cst_233 = arith.constant 1.000000e+00 : f32
    %721 = vector.broadcast %cst_233 : f32 to vector<4x32xf32>
    %722 = arith.addf %721, %720 : vector<4x32xf32>
    %723 = arith.divf %721, %722 : vector<4x32xf32>
    %724 = vector.extract_strided_slice %703 {offsets = [0, 64], sizes = [4, 32], strides = [1, 1]} : vector<4x96xf32> to vector<4x32xf32>
    %725 = vector.extract_strided_slice %707 {offsets = [0, 64], sizes = [4, 32], strides = [1, 1]} : vector<4x96xf32> to vector<4x32xf32>
    %726 = arith.mulf %715, %725 : vector<4x32xf32>
    %727 = arith.addf %724, %726 : vector<4x32xf32>
    %728 = math.tanh %727 : vector<4x32xf32>
    %cst_234 = arith.constant 1.000000e+00 : f32
    %729 = vector.broadcast %cst_234 : f32 to vector<4x32xf32>
    %730 = arith.subf %729, %723 : vector<4x32xf32>
    %731 = arith.mulf %730, %728 : vector<4x32xf32>
    %732 = arith.mulf %723, %665 : vector<4x32xf32>
    %733 = arith.addf %731, %732 : vector<4x32xf32>
    %734 = vector.broadcast %667 : vector<4x1xf32> to vector<4x32xf32>
    %735 = arith.mulf %734, %701 : vector<4x32xf32>
    %c0_235 = arith.constant 0 : index
    %c7_236 = arith.constant 7 : index
    %c0_237 = arith.constant 0 : index
    %736 = vector.load %arg15[%c0_235, %c7_236, %c0_237] : memref<4x8x64xf32, #tpu.memory_space<vmem>>, vector<4x1x32xf32>
    %737 = vector.shape_cast %736 : vector<4x1x32xf32> to vector<4x32xf32>
    %738 = vector.shape_cast %735 : vector<4x32xf32> to vector<4x1x32xf32>
    tpu.vector_store %arg15[%c0_235, %c7_236, %c0_237], %738 {strides = array<i32>} : memref<4x8x64xf32, #tpu.memory_space<vmem>>, vector<4x1x32xf32>,
    %739 = vector.broadcast %669 : vector<4x1xf32> to vector<4x32xf32>
    %740 = arith.mulf %739, %733 : vector<4x32xf32>
    %c0_238 = arith.constant 0 : index
    %c0_239 = arith.constant 0 : index
    %c32_240 = arith.constant 32 : index
    %741 = vector.load %arg15[%c0_238, %c0_239, %c32_240] : memref<4x8x64xf32, #tpu.memory_space<vmem>>, vector<4x1x32xf32>
    %742 = vector.shape_cast %741 : vector<4x1x32xf32> to vector<4x32xf32>
    %743 = vector.shape_cast %740 : vector<4x32xf32> to vector<4x1x32xf32>
    tpu.vector_store %arg15[%c0_238, %c0_239, %c32_240], %743 {strides = array<i32>} : memref<4x8x64xf32, #tpu.memory_space<vmem>>, vector<4x1x32xf32>,
    %744 = vector.broadcast %667 : vector<4x1xf32> to vector<4x32xf32>
    %745 = arith.mulf %744, %701 : vector<4x32xf32>
    %cst_241 = arith.constant 1.000000e+00 : f32
    %746 = vector.broadcast %cst_241 : f32 to vector<4x1xf32>
    %747 = arith.subf %746, %667 : vector<4x1xf32>
    %748 = vector.broadcast %747 : vector<4x1xf32> to vector<4x32xf32>
    %749 = arith.mulf %748, %658 : vector<4x32xf32>
    %750 = arith.addf %745, %749 : vector<4x32xf32>
    %751 = vector.broadcast %669 : vector<4x1xf32> to vector<4x32xf32>
    %752 = arith.mulf %751, %733 : vector<4x32xf32>
    %cst_242 = arith.constant 1.000000e+00 : f32
    %753 = vector.broadcast %cst_242 : f32 to vector<4x1xf32>
    %754 = arith.subf %753, %669 : vector<4x1xf32>
    %755 = vector.broadcast %754 : vector<4x1xf32> to vector<4x32xf32>
    %756 = arith.mulf %755, %665 : vector<4x32xf32>
    %757 = arith.addf %752, %756 : vector<4x32xf32>
    %758 = arith.truncf %750 : vector<4x32xf32> to vector<4x32xbf16>
    %c0_243 = arith.constant 0 : index
    %c0_244 = arith.constant 0 : index
    %759 = vector.load %arg10[%c0_243, %c0_244] : memref<32x32xbf16, #tpu.memory_space<vmem>>, vector<32x32xbf16>
    %cst_245 = arith.constant dense<0.000000e+00> : vector<4x32xf32>
    %760 = tpu.matmul %758, %759, %cst_245 {dimension_numbers = #tpu.dot_dimension_numbers<[1], [0], [0], [1], [0, 0, 1, 1], [], []>} : vector<4x32xbf16>, vector<32x32xbf16>, vector<4x32xf32> -> vector<4x32xf32>
    %761 = arith.truncf %757 : vector<4x32xf32> to vector<4x32xbf16>
    %c0_246 = arith.constant 0 : index
    %c0_247 = arith.constant 0 : index
    %762 = vector.load %arg11[%c0_246, %c0_247] : memref<32x32xbf16, #tpu.memory_space<vmem>>, vector<32x32xbf16>
    %cst_248 = arith.constant dense<0.000000e+00> : vector<4x32xf32>
    %763 = tpu.matmul %761, %762, %cst_248 {dimension_numbers = #tpu.dot_dimension_numbers<[1], [0], [0], [1], [0, 0, 1, 1], [], []>} : vector<4x32xbf16>, vector<32x32xbf16>, vector<4x32xf32> -> vector<4x32xf32>
    %764 = arith.addf %760, %763 : vector<4x32xf32>
    %c0_249 = arith.constant 0 : index
    %c0_250 = arith.constant 0 : index
    %765 = vector.load %arg12[%c0_249, %c0_250] : memref<1x32xf32, #tpu.memory_space<vmem>>, vector<1x32xf32>
    %766 = vector.broadcast %765 : vector<1x32xf32> to vector<4x32xf32>
    %767 = arith.addf %764, %766 : vector<4x32xf32>
    %768 = math.tanh %767 : vector<4x32xf32>
    %c0_251 = arith.constant 0 : index
    %c0_252 = arith.constant 0 : index
    %769 = vector.load %arg17[%c0_251, %c0_252] : memref<4x32xf32, #tpu.memory_space<vmem>>, vector<4x32xf32>
    tpu.vector_store %arg17[%c0_251, %c0_252], %768 {strides = array<i32>} : memref<4x32xf32, #tpu.memory_space<vmem>>, vector<4x32xf32>,
    %c0_253 = arith.constant 0 : index
    %c0_254 = arith.constant 0 : index
    %c0_255 = arith.constant 0 : index
    %770 = vector.load %arg15[%c0_253, %c0_254, %c0_255] : memref<4x8x64xf32, #tpu.memory_space<vmem>>, vector<4x8x64xf32>
    %771 = vector.shape_cast %770 : vector<4x8x64xf32> to vector<32x64xf32>
    %772 = arith.truncf %771 : vector<32x64xf32> to vector<32x64xbf16>
    %c0_256 = arith.constant 0 : index
    %c0_257 = arith.constant 0 : index
    %773 = vector.load %arg13[%c0_256, %c0_257] : memref<64x32xbf16, #tpu.memory_space<vmem>>, vector<64x32xbf16>
    %cst_258 = arith.constant dense<0.000000e+00> : vector<32x32xf32>
    %774 = tpu.matmul %772, %773, %cst_258 {dimension_numbers = #tpu.dot_dimension_numbers<[1], [0], [0], [1], [0, 0, 1, 1], [], []>} : vector<32x64xbf16>, vector<64x32xbf16>, vector<32x32xf32> -> vector<32x32xf32>
    %c0_259 = arith.constant 0 : index
    %c0_260 = arith.constant 0 : index
    %775 = vector.load %arg14[%c0_259, %c0_260] : memref<1x32xf32, #tpu.memory_space<vmem>>, vector<1x32xf32>
    %776 = vector.broadcast %775 : vector<1x32xf32> to vector<32x32xf32>
    %777 = arith.addf %774, %776 : vector<32x32xf32>
    %778 = vector.shape_cast %777 : vector<32x32xf32> to vector<4x8x32xf32>
    %c0_261 = arith.constant 0 : index
    %c0_262 = arith.constant 0 : index
    %c0_263 = arith.constant 0 : index
    %779 = vector.load %arg16[%c0_261, %c0_262, %c0_263] : memref<4x8x32xf32, #tpu.memory_space<vmem>>, vector<4x8x32xf32>
    tpu.vector_store %arg16[%c0_261, %c0_262, %c0_263], %778 {strides = array<i32>} : memref<4x8x32xf32, #tpu.memory_space<vmem>>, vector<4x8x32xf32>,
    return
  }
}

</mosaic_0001>

<bundles_post_ra>
// kernel: tpu_custom_call.1
= control target key start
LH: loop header
LB: loop body
LE: loop exit
PB: predicated region body
PF: predicated region fallthrough
CT: control target
= control target key end

     0   :  { %s4202_s0 = inlined_call_operand.vmem [shape: bf16[8,4,16], index: 0, kind: input, shape index: {}]   ;;  %s4203_s1 = inlined_call_operand.vmem [shape: f32[8,4,1], index: 1, kind: input, shape index: {}]   ;;  %s4204_s2 = inlined_call_operand.hbm [shape: bf16[16,96], index: 2, kind: input, shape index: {}]   ;;  %s4205_s3 = inlined_call_operand.vmem [shape: bf16[32,96], index: 3, kind: input, shape index: {}]   ;;  %s4206_s4 = inlined_call_operand.vmem [shape: f32[1,96], index: 4, kind: input, shape index: {}]   ;;  %s4207_s5 = inlined_call_operand.vmem [shape: f32[1,96], index: 5, kind: input, shape index: {}]   ;;  %s4208_s6 = inlined_call_operand.vmem [shape: bf16[16,96], index: 6, kind: input, shape index: {}]   ;;  %s4209_s7 = inlined_call_operand.vmem [shape: bf16[32,96], index: 7, kind: input, shape index: {}]   ;;  %s4210_s8 = inlined_call_operand.vmem [shape: f32[1,96], index: 8, kind: input, shape index: {}]   ;;  %s4211_s9 = inlined_call_operand.vmem [shape: f32[1,96], index: 9, kind: input, shape index: {}]   ;;  %s4212_s10 = inlined_call_operand.vmem [shape: bf16[32,32], index: 10, kind: input, shape index: {}]   ;;  %s4213_s11 = inlined_call_operand.vmem [shape: bf16[32,32], index: 11, kind: input, shape index: {}]   ;;  %s4214_s12 = inlined_call_operand.vmem [shape: f32[1,32], index: 12, kind: input, shape index: {}]   ;;  %s4215_s13 = inlined_call_operand.vmem [shape: bf16[64,32], index: 13, kind: input, shape index: {}]   ;;  %s4216_s14 = inlined_call_operand.vmem [shape: f32[1,32], index: 14, kind: input, shape index: {}]   ;;  %s4217_s15 = inlined_call_operand.hbm [shape: f32[4,8,64], index: 15, kind: output, shape index: {0}]   ;;  %s4218_s16 = inlined_call_operand.hbm [shape: f32[4,8,32], index: 16, kind: output, shape index: {1}]   ;;  %s4219_s17 = inlined_call_operand.hbm [shape: f32[4,32], index: 17, kind: output, shape index: {2}]  }
   0x1   :  { %4222 = sst [smem:[#allocation14_spill]] %s4202_s0 }
   0x2   :  { %4223 = sst [smem:[#allocation15_spill]] %s4203_s1 }
   0x3   :  { %23 = vsyncpa [#allocation5], 0 }
   0x4   :  { %24 = vsyncpa [#allocation6], 0 }
   0x5   :  { %25 = vsyncpa [#allocation9], 0  ;;  %s3321_s24 = smov [#allocation4]   ;;  %s3227_s28 = scalar_lea.hbm %s4204_s2, 128 }
   0x6   :  { %s35_s25 = sshll.u32 %s3321_s24, 4  ;;  %p3228_p0 = scmp.ne.s32.totalorder %s4204_s2, %s3227_s28  ;;  %s36_s25 = int_to_ptr.vmem [resolvable:$true] %s35_s25 }
   0x7   :  { %p3231_p1 = scmp.lt.u32.totalorder %s3227_s28, %s4204_s2 }
   0x9   :  { %p3233_p2 = pnand %p3231_p1, %p3228_p0 }
   0xb   :  { %3236 = shalt.err (!%p3233_p2)
}
   0xc   :  { %s3237_s19 = scalar_lea.vmem %s36_s25, 128  ;;  %p3242_p4 = scmp.lt.s32.totalorder %s36_s25, %s36_s25 }
   0xd   :  { %p3238_p3 = scmp.ne.s32.totalorder %s36_s25, %s3237_s19  ;;  %p3243_p5 = scmp.lt.s32.totalorder %s3237_s19, %s3237_s19 }
   0xf   :  { %p3244_p6 = por %p3243_p5, %p3242_p4 }
  0x11   :  { %p3245_p7 = pnand %p3244_p6, %p3238_p3 }
  0x13   :  { %3248 = shalt.err (!%p3245_p7)
}
  0x14   :  { %s3322_s1 = smov 64   ;;  %s3323_s20 = smov 4  }
  0x15   :  { %41 = dma.hbm_to_vmem [thread:$0]  %s4204_s2, 128, %s36_s25, [#allocation5], %s3322_s1, %s3322_s1, %s3323_s20  }
  0x16   :  { %3315 = dma.done.wait [#allocation5], 128  }
  0x17   :  { %3316 = vsyncadd [#allocation5], 4294967168  ;;  %v100_v0 = vlaneseq  ;;  %v3324_v1 = vmov 1983009808   ;;  %v3325_v3 = vmov 0   ;;  %v3109_v6 = vld [vmem:[%s4208_s6] sm:$0xff]  }
  0x18   :  { %v98_v2 = vunpack.c.l.s4 %v3324_v1  ;;  %3108 = vset.pattern.permute.xlu1 %v3325_v3  ;;  %3107 = vset.pattern.permute.xlu0 %v3325_v3  ;;  %v3110_v7 = vld [vmem:[#allocation4] sm:$0xff]   ;;  %s4224_s26 = sld [smem:[#allocation14_spill]]  ;;  %v3326_v17 = vmov 0.0   ;;  %vm135_vm0 = vcmask 130048   ;;  %v3479_v29 = vld [vmem:[%s4205_s3 + $0x8] sm:$0xff]   ;;  %vm3327_vm1 = vmmov 0  }
  0x19   :  { %v3439_v5 = vshrl.u32 %v100_v0, 7  ;;  %2931 = vmatprep.subr.bf16.mxu1 %v3109_v6  ;;  %2925 = vmatprep.subr.bf16.mxu0 %v3110_v7  ;;  %v3474_v27 = vld [vmem:[%s4205_s3] sm:$0xff]   ;;  %v3502_v31 = vld [vmem:[%s4209_s7 + $0x8] sm:$0xff]   ;;  %vm203_vm2 = vcmask 781312   ;;  %s4225_s25 = sld [smem:[#allocation15_spill]]  ;;  %vm583_vm3 = vcmask 516352  }
  0x1a   :  { %v99_v4 = vunpack.c.0.s8 %v98_v2  ;;  %2932 = vmatpush3.bf16.msra.mxu1 %v3109_v6  ;;  %2926 = vmatpush3.bf16.msra.mxu0 %v3110_v7  ;;  %v3493_v30 = vld [vmem:[%s4209_s7] sm:$0xff]   ;;  %vm328_vm4 = vcmask 261120   ;;  %vm543_vm5 = vcmask 253952   ;;  %vm2681_vm6 = vcmask 523264   ;;  %s3330_s2 = smov [#allocation7]  }
  0x1b   :  { %2937 = vmatprep.subr.bf16.mxu1 %v3326_v17  ;;  %2953 = vmatprep.subr.bf16.mxu0 %v3326_v17  ;;  %v2791_v32 = vld [vmem:[%s4210_s8] ss:$0 sm:$0xff] }
  0x1c   :  { %v102_v8 = vsub.s32 %v99_v4, %v3439_v5  ;;  %v2787_v33 = vld [vmem:[%s4206_s4] ss:$0 sm:$0xff] }
  0x1d   :  { %v3535_v57 = vld [vmem:[%s4207_s5] ss:$0 sm:$0xff] }
  0x1e   :  { %v70_v9 = vld [vmem:[%s4224_s26] sm:$0x3]  ;;  %v71_v10 = vld [vmem:[%s4224_s26 + $0x2] sm:$0x3]  ;;  %v72_v11 = vld [vmem:[%s4224_s26 + $0x4] sm:$0x3] }
  0x1f   :  { %v73_v12 = vld [vmem:[%s4224_s26 + $0x6] sm:$0x3]  ;;  %v95_v13 = vcombine.low %v70_v9, %v71_v10  ;;  %v74_v14 = vld [vmem:[%s4224_s26 + $0x8] sm:$0x3]  ;;  %v75_v15 = vld [vmem:[%s4224_s26 + $0xa] sm:$0x3] }
  0x20   :  { %v96_v16 = vcombine.low %v72_v11, %v73_v12  ;;  %v76_v18 = vld [vmem:[%s4224_s26 + $0xc] sm:$0x3]  ;;  %v77_v19 = vld [vmem:[%s4224_s26 + $0xe] sm:$0x3]  ;;  %v112_v20 = vcombine.low %v74_v14, %v75_v15  ;;  %v3547_v0 = vld [vmem:[%s4211_s9] ss:$0 sm:$0xff] }
  0x21   :  { %v103_v21 = vrot.slane %v95_v13, %v102_v8  ;;  %v113_v22 = vcombine.low %v76_v18, %v77_v19  ;;  %v306_v7 = vld [vmem:[%s4225_s25] sm:$0xf]  ;;  %s3328_s26 = smov 96  }
  0x22   :  { %v110_v23 = vrot.slane %v96_v16, %v102_v8  ;;  %v120_v24 = vrot.slane %v112_v20, %v102_v8 }
  0x23   :  { %v127_v25 = vrot.slane %v113_v22, %v102_v8  ;;  %v2795_v8 = vld [vmem:[%s4225_s25 + $0x1c] sm:$0xf] }
  0x24   :  { %v111_v26 = vcombine.low %v103_v21, %v110_v23  ;;  %v596_v9 = vsub.f32 1.0, %v2795_v8 }
  0x25   :  { %v128_v28 = vcombine.low %v120_v24, %v127_v25 }
  0x26   :  { %2927 = vmatprep.mubr.msk.bf16.mxu0 %vm135_vm0, %v111_v26  ;;  %2933 = vmatprep.mubr.msk.bf16.mxu1 %vm135_vm0, %v111_v26 }
  0x27   :  { %2928 = vmatmul.mubr.msk.bf16.vlgmr.msra.gmra.mrb[0].mxu0 %vm135_vm0, %v128_v28  ;;  %2934 = vmatmul.mubr.msk.bf16.vlgmr.msra.gmra.mrb[0].mxu1 %vm135_vm0, %v128_v28  ;;  %v588_v28 = vsub.f32 1.0, %v306_v7 }
  0x28   :  { %2938 = vmatpush3.bf16.msra.mxu1 %v3474_v27  ;;  %2941 = vmatprep.mubr.msk.bf16.mxu1 %vm3327_vm1, %v3326_v17 }
  0x29   :  { %2939 = vmatprep.subr.bf16.mxu1 %v3326_v17  ;;  %2954 = vmatpush3.bf16.msra.mxu0 %v3474_v27 }
  0x2a   :  { %2955 = vmatprep.subr.bf16.mxu0 %v3326_v17  ;;  %2957 = vmatprep.mubr.msk.bf16.mxu0 %vm3327_vm1, %v3326_v17 }
  0x2c   :  { %2940 = vmatpush3.bf16.msra.mxu1 %v3479_v29 }
  0x2d   :  { %2945 = vmatprep.subr.bf16.mxu1 %v3326_v17  ;;  %2956 = vmatpush3.bf16.msra.mxu0 %v3479_v29 }
  0x2e   :  { %2969 = vmatprep.subr.bf16.mxu0 %v3326_v17 }
  0x2f   :  { %2942 = vmatmul.mubr.bf16.vlgmr.msra.gmra.mrb[4].mxu1 %v3325_v3 }
  0x30   :  { %2946 = vmatpush3.bf16.msra.mxu1 %v3493_v30  ;;  %2949 = vmatprep.mubr.msk.bf16.mxu1 %vm3327_vm1, %v3326_v17 }
  0x31   :  { %2947 = vmatprep.subr.bf16.mxu1 %v3326_v17 }
  0x34   :  { %2948 = vmatpush3.bf16.msra.mxu1 %v3502_v31 }
  0x35   :  { %2961 = vmatprep.subr.bf16.mxu1 %v3326_v17 }
  0x37   :  { %2950 = vmatmul.mubr.bf16.vlgmr.msra.gmra.mrb[8].mxu1 %v3325_v3 }
  0x38   :  { %2962 = vmatpush3.bf16.msra.mxu1 %v3493_v30  ;;  %2965 = vmatprep.mubr.msk.bf16.mxu1 %vm3327_vm1, %v3326_v17 }
  0x39   :  { %2963 = vmatprep.subr.bf16.mxu1 %v3326_v17 }
  0x3c   :  { %2964 = vmatpush3.bf16.msra.mxu1 %v3502_v31 }
  0x3d   :  { %2977 = vmatprep.subr.bf16.mxu1 %v3326_v17 }
  0xfa   :  { %v2929_v34 = vpop.f32.mrb[0].mxu0  ;;  %v2935_v35 = vpop.f32.mrb[0].mxu1 }
  0xfb   :  { %v185_v36 = vadd.f32 %v2929_v34, %v2787_v33  ;;  %v270_v37 = vadd.f32 %v2935_v35, %v2791_v32  ;;  %v176_v38 = vpop.f32.mrb[1].mxu0  ;;  %v261_v39 = vpop.f32.mrb[1].mxu1 }
  0xfc   :  { %v177_v40 = vadd.f32 %v2787_v33, %v176_v38  ;;  %v262_v41 = vadd.f32 %v2791_v32, %v261_v39  ;;  %v2936_v42 = vpop.f32.mrb[2].mxu1  ;;  %v2930_v43 = vpop.f32.mrb[2].mxu0 }
  0xfd   :  { %v197_v44 = vcombine.high %v185_v36, %v185_v36  ;;  %208 = vst.msk [vmem:[#allocation2 + $0x10] sm:$0xf] %vm203_vm2, %v185_v36  ;;  %v282_v45 = vcombine.high %v270_v37, %v270_v37  ;;  %292 = vst.msk [vmem:[#allocation3 + $0x10] sm:$0xf] %vm203_vm2, %v270_v37  ;;  %v273_v46 = vadd.f32 %v2936_v42, %v2791_v32  ;;  %v264_v47 = vpop.f32.mrb[3].mxu1  ;;  %v179_v49 = vpop.f32.mrb[3].mxu0 }
  0xfe   :  { %v188_v48 = vadd.f32 %v2930_v43, %v2787_v33  ;;  %v195_v50 = vcombine.high %v177_v40, %v177_v40  ;;  %204 = vst.msk [vmem:[#allocation2] sm:$0xf] %vm203_vm2, %v177_v40  ;;  %v280_v51 = vcombine.high %v262_v41, %v262_v41  ;;  %288 = vst.msk [vmem:[#allocation3] sm:$0xf] %vm203_vm2, %v262_v41 }
  0xff   :  { %v265_v52 = vadd.f32 %v2791_v32, %v264_v47  ;;  %v180_v53 = vadd.f32 %v2787_v33, %v179_v49  ;;  %209 = vst.msk [vmem:[#allocation2 + $0x14] sm:$0xf] %vm203_vm2, %v197_v44  ;;  %293 = vst.msk [vmem:[#allocation3 + $0x14] sm:$0xf] %vm203_vm2, %v282_v45  ;;  %v283_v54 = vcombine.high %v273_v46, %v273_v46  ;;  %v3329_v47 = vmov 1966171168  }
 0x100   :  { %294 = vst.msk [vmem:[#allocation3 + $0x18] sm:$0xf] %vm203_vm2, %v273_v46  ;;  %v198_v55 = vcombine.high %v188_v48, %v188_v48  ;;  %210 = vst.msk [vmem:[#allocation2 + $0x18] sm:$0xf] %vm203_vm2, %v188_v48  ;;  %v492_v48 = vunpack.c.l.s4 %v3329_v47 }
 0x101   :  { %205 = vst.msk [vmem:[#allocation2 + $0x4] sm:$0xf] %vm203_vm2, %v195_v50  ;;  %289 = vst.msk [vmem:[#allocation3 + $0x4] sm:$0xf] %vm203_vm2, %v280_v51  ;;  %v281_v56 = vcombine.high %v265_v52, %v265_v52  ;;  %v196_v58 = vcombine.high %v180_v53, %v180_v53 }
 0x102   :  { %290 = vst.msk [vmem:[#allocation3 + $0x8] sm:$0xf] %vm203_vm2, %v265_v52  ;;  %206 = vst.msk [vmem:[#allocation2 + $0x8] sm:$0xf] %vm203_vm2, %v180_v53  ;;  %v366_v59 = vpop.f32.mrb[4].mxu1 }
 0x103   :  { %295 = vst.msk [vmem:[#allocation3 + $0x1c] sm:$0xf] %vm203_vm2, %v283_v54  ;;  %211 = vst.msk [vmem:[#allocation2 + $0x1c] sm:$0xf] %vm203_vm2, %v198_v55  ;;  %v367_v60 = vadd.f32 %v3535_v57, %v366_v59  ;;  %v2943_v61 = vpop.f32.mrb[5].mxu1  ;;  %v493_v54 = vunpack.c.0.s8 %v492_v48 }
 0x104   :  { %291 = vst.msk [vmem:[#allocation3 + $0xc] sm:$0xf] %vm203_vm2, %v281_v56  ;;  %207 = vst.msk [vmem:[#allocation2 + $0xc] sm:$0xf] %vm203_vm2, %v196_v58  ;;  %v369_v62 = vpop.f32.mrb[6].mxu1 }
 0x105   :  { %380 = vrot.lane.b32.xlu0 %v367_v60, %s3322_s1  ;;  %v2944_v63 = vpop.f32.mrb[7].mxu1  ;;  %v309_v10 = vld [vmem:[#allocation2] sm:$0xf] }
 0x106   :  { %v372_v11 = vadd.f32 %v367_v60, %v309_v10  ;;  %v3570_v60 = vsub.s32 %v493_v54, %v3439_v5 }
 0x108   :  { %v2799_v12 = vmul.f32 -1.442695, %v372_v11 }
 0x10a   :  { %v452_v1 = vpop.f32.mrb[8].mxu1  ;;  %v399_v13 = vld [vmem:[#allocation3 + $0x1c] sm:$0xf]  ;;  %3123 = vpow2.f32 %v2799_v12 }
 0x10b   :  { %v453_v2 = vadd.f32 %v3547_v0, %v452_v1  ;;  %v2951_v3 = vpop.f32.mrb[9].mxu1 }
 0x10c   :  { %v455_v4 = vpop.f32.mrb[10].mxu1 }
 0x10d   :  { %466 = vrot.lane.b32.xlu0 %v453_v2, %s3322_s1  ;;  %v2952_v6 = vpop.f32.mrb[11].mxu1  ;;  %v458_v14 = vadd.f32 %v453_v2, %v399_v13 }
 0x10f   :  { %v2803_v15 = vmul.f32 -1.442695, %v458_v14 }
 0x111   :  { %486 = vperm.xlu0 %3107, %v306_v7   ;;  %3125 = vpow2.f32 %v2803_v15 }
 0x114   :  { %v3124_v16 = vpop.eup %3123 }
 0x115   :  { %599 = vperm.xlu0 %3107, %v596_v9   ;;  %v376_v18 = vadd.f32 1.0, %v3124_v16 }
 0x117   :  { %3127 = vrcp.f32 %v376_v18 }
 0x11b   :  { %v3126_v19 = vpop.eup %3125 }
 0x11c   :  { %v462_v20 = vadd.f32 1.0, %v3126_v19 }
 0x11e   :  { %3129 = vrcp.f32 %v462_v20 }
 0x121   :  { %v3128_v21 = vpop.eup %3127 }
 0x122   :  { %v390_v41 = vsub.f32 1.0, %v3128_v21  ;;  %v396_v43 = vmul.f32 0.0, %v3128_v21 }
 0x128   :  { %v3130_v24 = vpop.eup %3129 }
 0x129   :  { %v476_v52 = vsub.f32 1.0, %v3130_v24  ;;  %v482_v55 = vmul.f32 0.0, %v3130_v24 }
 0x177   :  { %v381_v22 = vpop.permute.xlu0 %380 }
 0x178   :  { %v383_v23 = vmul.f32 %v3128_v21, %v381_v22  ;;  %v609_v22 = vld [vmem:[#allocation2 + $0x4] sm:$0xf] }
 0x17a   :  { %385 = vrot.lane.b32.xlu1 %v383_v23, %s3322_s1 }
 0x17f   :  { %v467_v25 = vpop.permute.xlu0 %466 }
 0x180   :  { %v469_v26 = vmul.f32 %v3130_v24, %v467_v25  ;;  %v684_v25 = vld [vmem:[#allocation3 + $0x18] sm:$0xf] }
 0x182   :  { %471 = vrot.lane.b32.xlu1 %v469_v26, %s3322_s1 }
 0x186   :  { %591 = vperm.xlu1 %3108, %v588_v28  }
 0x18a   :  { %550 = vperm.xlu1 %3108, %v2795_v8  }
 0x190   :  { %v487_v40 = vpop.permute.xlu0 %486 }
 0x194   :  { %v600_v46 = vpop.permute.xlu0 %599 }
 0x195   :  { %v602_v61 = vmul.f32 0.0, %v600_v46 }
 0x1ec   :  { %v386_v32 = vpop.permute.xlu1 %385 }
 0x1ed   :  { %v388_v33 = vadd.f32 %v386_v32, %v309_v10 }
 0x1ef   :  { %3131 = vtanh.f32 %v388_v33 }
 0x1f4   :  { %v472_v34 = vpop.permute.xlu1 %471 }
 0x1f5   :  { %v474_v35 = vadd.f32 %v472_v34, %v399_v13 }
 0x1f7   :  { %3133 = vtanh.f32 %v474_v35 }
 0x1f9   :  { %v3132_v36 = vpop.eup %3131 }
 0x1fa   :  { %392 = vrot.lane.b32.xlu1 %v3132_v36, %s3328_s26 }
 0x201   :  { %v3134_v37 = vpop.eup %3133 }
 0x202   :  { %478 = vrot.lane.b32.xlu0 %v3134_v37, %s3328_s26 }
 0x205   :  { %v592_v38 = vpop.permute.xlu1 %591 }
 0x206   :  { %v594_v49 = vmul.f32 0.0, %v592_v38 }
 0x209   :  { %v551_v39 = vpop.permute.xlu1 %550 }
 0x26c   :  { %v393_v42 = vpop.permute.xlu1 %392 }
 0x26d   :  { %v395_v44 = vmul.f32 %v393_v42, %v390_v41  ;;  %v2805_v42 = vld [vmem:[%s4225_s25 + $0x18] sm:$0xf] }
 0x26f   :  { %v397_v45 = vadd.f32 %v396_v43, %v395_v44 }
 0x271   :  { %v3561_v50 = vmul.f32 %v487_v40, %v397_v45  ;;  %v868_v45 = vsub.f32 1.0, %v2805_v42 }
 0x273   :  { %v3564_v51 = vadd.f32 %v594_v49, %v3561_v50 }
 0x274   :  { %v479_v53 = vpop.permute.xlu0 %478 }
 0x275   :  { %v481_v56 = vmul.f32 %v479_v53, %v476_v52  ;;  %v610_v58 = vpack.c.bf16 %v3564_v51, %v3564_v51 }
 0x277   :  { %v483_v59 = vadd.f32 %v482_v55, %v481_v56  ;;  %612 = vrot.lane.b32.xlu1 %v610_v58, %s3328_s26 }
 0x279   :  { %v553_v62 = vmul.f32 %v551_v39, %v483_v59  ;;  %v2804_v39 = vld [vmem:[%s4225_s25 + $0x4] sm:$0xf] }
 0x27a   :  { %v860_v44 = vsub.f32 1.0, %v2804_v39 }
 0x27b   :  { %v561_v63 = vrot.slane %v553_v62, %v3570_v60  ;;  %v3573_v1 = vadd.f32 %v602_v61, %v553_v62 }
 0x27d   :  { %v562_v2 = vcombine.high %v561_v63, %v561_v63  ;;  %v569_v3 = vrot.slane %v561_v63, %v3570_v60  ;;  %v685_v4 = vpack.c.bf16 %v3573_v1, %v3573_v1 }
 0x27f   :  { %v576_v6 = vrot.slane %v562_v2, %v3570_v60  ;;  %v577_v7 = vcombine.high %v569_v3, %v569_v3  ;;  %687 = vrot.lane.b32.xlu0 %v685_v4, %s3328_s26  ;;  %584 = vst.msk [vmem:[#allocation7 + $0x7] sm:$0x1] %vm583_vm3, %v569_v3 }
 0x281   :  { %585 = vst.msk [vmem:[#allocation7 + $0xf] sm:$0x1] %vm583_vm3, %v576_v6  ;;  %586 = vst.msk [vmem:[#allocation7 + $0x17] sm:$0x1] %vm583_vm3, %v577_v7  ;;  %v578_v8 = vcombine.high %v576_v6, %v576_v6 }
 0x283   :  { %587 = vst.msk [vmem:[#allocation7 + $0x1f] sm:$0x1] %vm583_vm3, %v578_v8 }
 0x2e9   :  { %v613_v9 = vpop.permute.xlu1 %612 }
 0x2ea   :  { %2958 = vmatmul.mubr.msk.bf16.vlgmr.msra.gmra.mrb[4].mxu0 %vm328_vm4, %v613_v9 }
 0x2eb   :  { %2970 = vmatpush3.bf16.msra.mxu0 %v3474_v27  ;;  %2973 = vmatprep.mubr.msk.bf16.mxu0 %vm3327_vm1, %v3326_v17 }
 0x2ec   :  { %2971 = vmatprep.subr.bf16.mxu0 %v3326_v17 }
 0x2ef   :  { %2972 = vmatpush3.bf16.msra.mxu0 %v3479_v29 }
 0x2f0   :  { %2985 = vmatprep.subr.bf16.mxu0 %v3326_v17 }
 0x2f1   :  { %v688_v10 = vpop.permute.xlu0 %687 }
 0x2f2   :  { %2966 = vmatmul.mubr.msk.bf16.vlgmr.msra.gmra.mrb[12].mxu1 %vm328_vm4, %v688_v10 }
 0x2f3   :  { %2978 = vmatpush3.bf16.msra.mxu1 %v3493_v30  ;;  %2981 = vmatprep.mubr.msk.bf16.mxu1 %vm3327_vm1, %v3326_v17 }
 0x2f4   :  { %2979 = vmatprep.subr.bf16.mxu1 %v3326_v17 }
 0x2f7   :  { %2980 = vmatpush3.bf16.msra.mxu1 %v3502_v31 }
 0x2f8   :  { %2993 = vmatprep.subr.bf16.mxu1 %v3326_v17 }
 0x3bd   :  { %v651_v11 = vpop.f32.mrb[4].mxu0 }
 0x3be   :  { %v652_v12 = vadd.f32 %v3535_v57, %v651_v11  ;;  %v2959_v13 = vpop.f32.mrb[5].mxu0 }
 0x3bf   :  { %v654_v14 = vpop.f32.mrb[6].mxu0 }
 0x3c0   :  { %665 = vrot.lane.b32.xlu1 %v652_v12, %s3322_s1  ;;  %v2960_v15 = vpop.f32.mrb[7].mxu0  ;;  %v657_v23 = vadd.f32 %v652_v12, %v609_v22 }
 0x3c2   :  { %v2807_v24 = vmul.f32 -1.442695, %v657_v23 }
 0x3c4   :  { %3135 = vpow2.f32 %v2807_v24 }
 0x3c5   :  { %v726_v16 = vpop.f32.mrb[12].mxu1 }
 0x3c6   :  { %v727_v18 = vadd.f32 %v3547_v0, %v726_v16  ;;  %v2967_v19 = vpop.f32.mrb[13].mxu1 }
 0x3c7   :  { %v729_v20 = vpop.f32.mrb[14].mxu1 }
 0x3c8   :  { %740 = vrot.lane.b32.xlu0 %v727_v18, %s3322_s1  ;;  %v2968_v21 = vpop.f32.mrb[15].mxu1  ;;  %v732_v26 = vadd.f32 %v727_v18, %v684_v25 }
 0x3ca   :  { %v2809_v28 = vmul.f32 -1.442695, %v732_v26 }
 0x3cc   :  { %3137 = vpow2.f32 %v2809_v28 }
 0x3ce   :  { %v3136_v32 = vpop.eup %3135 }
 0x3cf   :  { %v661_v33 = vadd.f32 1.0, %v3136_v32 }
 0x3d1   :  { %3139 = vrcp.f32 %v661_v33 }
 0x3d6   :  { %v3138_v34 = vpop.eup %3137 }
 0x3d7   :  { %v736_v35 = vadd.f32 1.0, %v3138_v34 }
 0x3d9   :  { %3141 = vrcp.f32 %v736_v35 }
 0x3db   :  { %v3140_v36 = vpop.eup %3139 }
 0x3dc   :  { %v675_v58 = vsub.f32 1.0, %v3140_v36  ;;  %v681_v61 = vmul.f32 %v3140_v36, %v3564_v51 }
 0x3e3   :  { %v3142_v40 = vpop.eup %3141 }
 0x3e4   :  { %v750_v7 = vsub.f32 1.0, %v3142_v40  ;;  %v756_v9 = vmul.f32 %v3142_v40, %v3573_v1 }
 0x432   :  { %v666_v37 = vpop.permute.xlu1 %665 }
 0x433   :  { %v668_v38 = vmul.f32 %v3140_v36, %v666_v37 }
 0x435   :  { %670 = vrot.lane.b32.xlu1 %v668_v38, %s3322_s1  ;;  %v881_v38 = vld [vmem:[#allocation2 + $0x8] sm:$0xf] }
 0x439   :  { %760 = vperm.xlu1 %3108, %v2804_v39  }
 0x43a   :  { %v741_v41 = vpop.permute.xlu0 %740 }
 0x43b   :  { %v743_v43 = vmul.f32 %v3142_v40, %v741_v41  ;;  %v956_v41 = vld [vmem:[#allocation3 + $0x14] sm:$0xf] }
 0x43d   :  { %745 = vrot.lane.b32.xlu0 %v743_v43, %s3322_s1  ;;  %823 = vperm.xlu1 %3108, %v2805_v42  }
 0x441   :  { %863 = vperm.xlu0 %3107, %v860_v44  }
 0x445   :  { %871 = vperm.xlu0 %3107, %v868_v45  }
 0x4a7   :  { %v671_v46 = vpop.permute.xlu1 %670 }
 0x4a8   :  { %v673_v47 = vadd.f32 %v671_v46, %v609_v22 }
 0x4aa   :  { %3143 = vtanh.f32 %v673_v47 }
 0x4af   :  { %v746_v48 = vpop.permute.xlu0 %745 }
 0x4b0   :  { %v748_v49 = vadd.f32 %v746_v48, %v684_v25 }
 0x4b2   :  { %3145 = vtanh.f32 %v748_v49 }
 0x4b4   :  { %v3144_v52 = vpop.eup %3143 }
 0x4b5   :  { %677 = vrot.lane.b32.xlu1 %v3144_v52, %s3328_s26 }
 0x4b8   :  { %v761_v54 = vpop.permute.xlu1 %760 }
 0x4bc   :  { %v3146_v53 = vpop.eup %3145  ;;  %v824_v55 = vpop.permute.xlu1 %823 }
 0x4bd   :  { %752 = vrot.lane.b32.xlu0 %v3146_v53, %s3328_s26  ;;  %v2810_v53 = vld [vmem:[%s4225_s25 + $0x8] sm:$0xf] }
 0x4c0   :  { %v864_v56 = vpop.permute.xlu0 %863 }
 0x4c1   :  { %v866_v3 = vmul.f32 %v864_v56, %v3564_v51  ;;  %v2811_v56 = vld [vmem:[%s4225_s25 + $0x14] sm:$0xf] }
 0x4c4   :  { %v872_v2 = vpop.permute.xlu0 %871 }
 0x4c5   :  { %v874_v13 = vmul.f32 %v872_v2, %v3573_v1 }
 0x527   :  { %v678_v59 = vpop.permute.xlu1 %677 }
 0x528   :  { %v680_v62 = vmul.f32 %v678_v59, %v675_v58  ;;  %v1132_v59 = vsub.f32 1.0, %v2810_v53 }
 0x52a   :  { %v682_v63 = vadd.f32 %v681_v61, %v680_v62  ;;  %v1140_v61 = vsub.f32 1.0, %v2811_v56 }
 0x52c   :  { %v3614_v4 = vmul.f32 %v761_v54, %v682_v63 }
 0x52e   :  { %v3617_v6 = vadd.f32 %v866_v3, %v3614_v4 }
 0x52f   :  { %v753_v8 = vpop.permute.xlu0 %752 }
 0x530   :  { %v755_v10 = vmul.f32 %v753_v8, %v750_v7  ;;  %v882_v11 = vpack.c.bf16 %v3617_v6, %v3617_v6 }
 0x532   :  { %v757_v12 = vadd.f32 %v756_v9, %v755_v10  ;;  %884 = vrot.lane.b32.xlu1 %v882_v11, %s3328_s26 }
 0x534   :  { %v826_v14 = vmul.f32 %v824_v55, %v757_v12 }
 0x536   :  { %v834_v51 = vrot.slane %v826_v14, %v3570_v60  ;;  %v3625_v15 = vadd.f32 %v874_v13, %v826_v14 }
 0x538   :  { %v835_v16 = vcombine.high %v834_v51, %v834_v51  ;;  %v842_v18 = vrot.slane %v834_v51, %v3570_v60  ;;  %v957_v19 = vpack.c.bf16 %v3625_v15, %v3625_v15 }
 0x53a   :  { %v849_v20 = vrot.slane %v835_v16, %v3570_v60  ;;  %v850_v21 = vcombine.high %v842_v18, %v842_v18  ;;  %959 = vrot.lane.b32.xlu0 %v957_v19, %s3328_s26  ;;  %856 = vst.msk [vmem:[#allocation7 + $0x6] sm:$0x1] %vm583_vm3, %v842_v18 }
 0x53c   :  { %857 = vst.msk [vmem:[#allocation7 + $0xe] sm:$0x1] %vm583_vm3, %v849_v20  ;;  %858 = vst.msk [vmem:[#allocation7 + $0x16] sm:$0x1] %vm583_vm3, %v850_v21  ;;  %v851_v1 = vcombine.high %v849_v20, %v849_v20 }
 0x53e   :  { %859 = vst.msk [vmem:[#allocation7 + $0x1e] sm:$0x1] %vm583_vm3, %v851_v1 }
 0x5a4   :  { %v885_v22 = vpop.permute.xlu1 %884 }
 0x5a5   :  { %2974 = vmatmul.mubr.msk.bf16.vlgmr.msra.gmra.mrb[8].mxu0 %vm328_vm4, %v885_v22 }
 0x5a6   :  { %2986 = vmatpush3.bf16.msra.mxu0 %v3474_v27  ;;  %2989 = vmatprep.mubr.msk.bf16.mxu0 %vm3327_vm1, %v3326_v17 }
 0x5a7   :  { %2987 = vmatprep.subr.bf16.mxu0 %v3326_v17 }
 0x5aa   :  { %2988 = vmatpush3.bf16.msra.mxu0 %v3479_v29 }
 0x5ab   :  { %3001 = vmatprep.subr.bf16.mxu0 %v3326_v17 }
 0x5ac   :  { %v960_v23 = vpop.permute.xlu0 %959 }
 0x5ad   :  { %2982 = vmatmul.mubr.msk.bf16.vlgmr.msra.gmra.mrb[16].mxu1 %vm328_vm4, %v960_v23 }
 0x5ae   :  { %2994 = vmatpush3.bf16.msra.mxu1 %v3493_v30  ;;  %2997 = vmatprep.mubr.msk.bf16.mxu1 %vm3327_vm1, %v3326_v17 }
 0x5af   :  { %2995 = vmatprep.subr.bf16.mxu1 %v3326_v17 }
 0x5b2   :  { %2996 = vmatpush3.bf16.msra.mxu1 %v3502_v31 }
 0x5b3   :  { %3009 = vmatprep.subr.bf16.mxu1 %v3326_v17 }
 0x678   :  { %v923_v24 = vpop.f32.mrb[8].mxu0 }
 0x679   :  { %v924_v25 = vadd.f32 %v3535_v57, %v923_v24  ;;  %v2975_v26 = vpop.f32.mrb[9].mxu0 }
 0x67a   :  { %v926_v28 = vpop.f32.mrb[10].mxu0 }
 0x67b   :  { %937 = vrot.lane.b32.xlu1 %v924_v25, %s3322_s1  ;;  %v2976_v32 = vpop.f32.mrb[11].mxu0  ;;  %v929_v39 = vadd.f32 %v924_v25, %v881_v38 }
 0x67d   :  { %v2813_v40 = vmul.f32 -1.442695, %v929_v39 }
 0x67f   :  { %3147 = vpow2.f32 %v2813_v40 }
 0x680   :  { %v998_v33 = vpop.f32.mrb[16].mxu1 }
 0x681   :  { %v999_v34 = vadd.f32 %v3547_v0, %v998_v33  ;;  %v2983_v35 = vpop.f32.mrb[17].mxu1 }
 0x682   :  { %v1001_v36 = vpop.f32.mrb[18].mxu1 }
 0x683   :  { %1012 = vrot.lane.b32.xlu0 %v999_v34, %s3322_s1  ;;  %v2984_v37 = vpop.f32.mrb[19].mxu1  ;;  %v1004_v42 = vadd.f32 %v999_v34, %v956_v41 }
 0x685   :  { %v2815_v43 = vmul.f32 -1.442695, %v1004_v42 }
 0x687   :  { %3149 = vpow2.f32 %v2815_v43 }
 0x689   :  { %v3148_v44 = vpop.eup %3147 }
 0x68a   :  { %v933_v45 = vadd.f32 1.0, %v3148_v44 }
 0x68c   :  { %3151 = vrcp.f32 %v933_v45 }
 0x691   :  { %v3150_v46 = vpop.eup %3149 }
 0x692   :  { %v1008_v47 = vadd.f32 1.0, %v3150_v46 }
 0x694   :  { %3153 = vrcp.f32 %v1008_v47 }
 0x696   :  { %v3152_v48 = vpop.eup %3151 }
 0x697   :  { %v947_v12 = vsub.f32 1.0, %v3152_v48  ;;  %v953_v14 = vmul.f32 %v3152_v48, %v3617_v6 }
 0x69e   :  { %v3154_v54 = vpop.eup %3153 }
 0x69f   :  { %v1022_v1 = vsub.f32 1.0, %v3154_v54  ;;  %v1028_v23 = vmul.f32 %v3154_v54, %v3625_v15 }
 0x6ed   :  { %v938_v49 = vpop.permute.xlu1 %937 }
 0x6ee   :  { %v940_v52 = vmul.f32 %v3152_v48, %v938_v49 }
 0x6f0   :  { %942 = vrot.lane.b32.xlu1 %v940_v52, %s3322_s1 }
 0x6f4   :  { %1032 = vperm.xlu1 %3108, %v2810_v53   ;;  %v1153_v53 = vld [vmem:[#allocation2 + $0xc] sm:$0xf] }
 0x6f5   :  { %v1013_v55 = vpop.permute.xlu0 %1012 }
 0x6f6   :  { %v1015_v58 = vmul.f32 %v3154_v54, %v1013_v55 }
 0x6f8   :  { %1017 = vrot.lane.b32.xlu0 %v1015_v58, %s3322_s1  ;;  %1095 = vperm.xlu1 %3108, %v2811_v56   ;;  %v1228_v56 = vld [vmem:[#allocation3 + $0x10] sm:$0xf] }
 0x6fc   :  { %1135 = vperm.xlu0 %3107, %v1132_v59  }
 0x700   :  { %1143 = vperm.xlu0 %3107, %v1140_v61  }
 0x762   :  { %v943_v62 = vpop.permute.xlu1 %942 }
 0x763   :  { %v945_v63 = vadd.f32 %v943_v62, %v881_v38 }
 0x765   :  { %3155 = vtanh.f32 %v945_v63 }
 0x76a   :  { %v1018_v2 = vpop.permute.xlu0 %1017 }
 0x76b   :  { %v1020_v3 = vadd.f32 %v1018_v2, %v956_v41 }
 0x76d   :  { %3157 = vtanh.f32 %v1020_v3 }
 0x76f   :  { %v3156_v7 = vpop.eup %3155 }
 0x770   :  { %949 = vrot.lane.b32.xlu1 %v3156_v7, %s3328_s26 }
 0x773   :  { %v1033_v9 = vpop.permute.xlu1 %1032 }
 0x777   :  { %v3158_v8 = vpop.eup %3157  ;;  %v1096_v10 = vpop.permute.xlu1 %1095 }
 0x778   :  { %1024 = vrot.lane.b32.xlu0 %v3158_v8, %s3328_s26 }
 0x77b   :  { %v1136_v11 = vpop.permute.xlu0 %1135 }
 0x77c   :  { %v1138_v19 = vmul.f32 %v1136_v11, %v3617_v6 }
 0x77f   :  { %v1144_v18 = vpop.permute.xlu0 %1143 }
 0x780   :  { %v1146_v28 = vmul.f32 %v1144_v18, %v3625_v15 }
 0x7e2   :  { %v950_v13 = vpop.permute.xlu1 %949 }
 0x7e3   :  { %v952_v51 = vmul.f32 %v950_v13, %v947_v12  ;;  %v2817_v12 = vld [vmem:[%s4225_s25 + $0x10] sm:$0xf] }
 0x7e5   :  { %v954_v16 = vadd.f32 %v953_v14, %v952_v51  ;;  %v1412_v51 = vsub.f32 1.0, %v2817_v12 }
 0x7e7   :  { %v3666_v20 = vmul.f32 %v1033_v9, %v954_v16  ;;  %v2816_v9 = vld [vmem:[%s4225_s25 + $0xc] sm:$0xf] }
 0x7e8   :  { %v1404_v14 = vsub.f32 1.0, %v2816_v9 }
 0x7e9   :  { %v3669_v21 = vadd.f32 %v1138_v19, %v3666_v20 }
 0x7ea   :  { %v1025_v22 = vpop.permute.xlu0 %1024 }
 0x7eb   :  { %v1027_v24 = vmul.f32 %v1025_v22, %v1022_v1  ;;  %v1154_v25 = vpack.c.bf16 %v3669_v21, %v3669_v21 }
 0x7ed   :  { %v1029_v26 = vadd.f32 %v1028_v23, %v1027_v24  ;;  %1156 = vrot.lane.b32.xlu1 %v1154_v25, %s3328_s26 }
 0x7ef   :  { %v1098_v32 = vmul.f32 %v1096_v10, %v1029_v26 }
 0x7f1   :  { %v1106_v6 = vrot.slane %v1098_v32, %v3570_v60  ;;  %v3677_v33 = vadd.f32 %v1146_v28, %v1098_v32 }
 0x7f3   :  { %v1107_v34 = vcombine.high %v1106_v6, %v1106_v6  ;;  %v1114_v35 = vrot.slane %v1106_v6, %v3570_v60  ;;  %v1229_v36 = vpack.c.bf16 %v3677_v33, %v3677_v33 }
 0x7f5   :  { %v1121_v37 = vrot.slane %v1107_v34, %v3570_v60  ;;  %v1122_v38 = vcombine.high %v1114_v35, %v1114_v35  ;;  %1231 = vrot.lane.b32.xlu0 %v1229_v36, %s3328_s26  ;;  %1128 = vst.msk [vmem:[#allocation7 + $0x5] sm:$0x1] %vm583_vm3, %v1114_v35 }
 0x7f7   :  { %1129 = vst.msk [vmem:[#allocation7 + $0xd] sm:$0x1] %vm583_vm3, %v1121_v37  ;;  %1130 = vst.msk [vmem:[#allocation7 + $0x15] sm:$0x1] %vm583_vm3, %v1122_v38  ;;  %v1123_v15 = vcombine.high %v1121_v37, %v1121_v37 }
 0x7f9   :  { %1131 = vst.msk [vmem:[#allocation7 + $0x1d] sm:$0x1] %vm583_vm3, %v1123_v15 }
 0x85f   :  { %v1157_v39 = vpop.permute.xlu1 %1156 }
 0x860   :  { %2990 = vmatmul.mubr.msk.bf16.vlgmr.msra.gmra.mrb[12].mxu0 %vm328_vm4, %v1157_v39 }
 0x861   :  { %3002 = vmatpush3.bf16.msra.mxu0 %v3474_v27  ;;  %3005 = vmatprep.mubr.msk.bf16.mxu0 %vm3327_vm1, %v3326_v17 }
 0x862   :  { %3003 = vmatprep.subr.bf16.mxu0 %v3326_v17 }
 0x865   :  { %3004 = vmatpush3.bf16.msra.mxu0 %v3479_v29 }
 0x866   :  { %3017 = vmatprep.subr.bf16.mxu0 %v3326_v17 }
 0x867   :  { %v1232_v40 = vpop.permute.xlu0 %1231 }
 0x868   :  { %2998 = vmatmul.mubr.msk.bf16.vlgmr.msra.gmra.mrb[20].mxu1 %vm328_vm4, %v1232_v40 }
 0x869   :  { %3010 = vmatpush3.bf16.msra.mxu1 %v3493_v30  ;;  %3013 = vmatprep.mubr.msk.bf16.mxu1 %vm3327_vm1, %v3326_v17 }
 0x86a   :  { %3011 = vmatprep.subr.bf16.mxu1 %v3326_v17 }
 0x86d   :  { %3012 = vmatpush3.bf16.msra.mxu1 %v3502_v31 }
 0x86e   :  { %3025 = vmatprep.subr.bf16.mxu1 %v3326_v17 }
 0x933   :  { %v1195_v41 = vpop.f32.mrb[12].mxu0 }
 0x934   :  { %v1196_v42 = vadd.f32 %v3535_v57, %v1195_v41  ;;  %v2991_v43 = vpop.f32.mrb[13].mxu0 }
 0x935   :  { %v1198_v44 = vpop.f32.mrb[14].mxu0 }
 0x936   :  { %1209 = vrot.lane.b32.xlu1 %v1196_v42, %s3322_s1  ;;  %v2992_v45 = vpop.f32.mrb[15].mxu0  ;;  %v1201_v54 = vadd.f32 %v1196_v42, %v1153_v53 }
 0x938   :  { %v2819_v55 = vmul.f32 -1.442695, %v1201_v54 }
 0x93a   :  { %3159 = vpow2.f32 %v2819_v55 }
 0x93b   :  { %v1270_v46 = vpop.f32.mrb[20].mxu1 }
 0x93c   :  { %v1271_v47 = vadd.f32 %v3547_v0, %v1270_v46  ;;  %v2999_v48 = vpop.f32.mrb[21].mxu1 }
 0x93d   :  { %v1273_v49 = vpop.f32.mrb[22].mxu1 }
 0x93e   :  { %1284 = vrot.lane.b32.xlu0 %v1271_v47, %s3322_s1  ;;  %v3000_v52 = vpop.f32.mrb[23].mxu1  ;;  %v1276_v58 = vadd.f32 %v1271_v47, %v1228_v56 }
 0x940   :  { %v2821_v59 = vmul.f32 -1.442695, %v1276_v58 }
 0x942   :  { %3161 = vpow2.f32 %v2821_v59 }
 0x944   :  { %v3160_v61 = vpop.eup %3159 }
 0x945   :  { %v1205_v62 = vadd.f32 1.0, %v3160_v61 }
 0x947   :  { %3163 = vrcp.f32 %v1205_v62 }
 0x94c   :  { %v3162_v63 = vpop.eup %3161 }
 0x94d   :  { %v1280_v2 = vadd.f32 1.0, %v3162_v63 }
 0x94f   :  { %3165 = vrcp.f32 %v1280_v2 }
 0x951   :  { %v3164_v3 = vpop.eup %3163 }
 0x952   :  { %v1219_v28 = vsub.f32 1.0, %v3164_v3  ;;  %v1225_v6 = vmul.f32 %v3164_v3, %v3669_v21 }
 0x959   :  { %v3166_v10 = vpop.eup %3165 }
 0x95a   :  { %v1294_v39 = vsub.f32 1.0, %v3166_v10  ;;  %v1300_v41 = vmul.f32 %v3166_v10, %v3677_v33 }
 0x9a8   :  { %v1210_v7 = vpop.permute.xlu1 %1209 }
 0x9a9   :  { %v1212_v8 = vmul.f32 %v3164_v3, %v1210_v7  ;;  %v1423_v7 = vld [vmem:[#allocation2 + $0x10] sm:$0xf] }
 0x9ab   :  { %1214 = vrot.lane.b32.xlu1 %v1212_v8, %s3322_s1 }
 0x9af   :  { %1304 = vperm.xlu1 %3108, %v2816_v9   ;;  %v1498_v9 = vld [vmem:[#allocation3 + $0xc] sm:$0xf] }
 0x9b0   :  { %v1285_v11 = vpop.permute.xlu0 %1284 }
 0x9b1   :  { %v1287_v13 = vmul.f32 %v3166_v10, %v1285_v11 }
 0x9b3   :  { %1289 = vrot.lane.b32.xlu0 %v1287_v13, %s3322_s1  ;;  %1367 = vperm.xlu1 %3108, %v2817_v12  }
 0x9b7   :  { %1407 = vperm.xlu0 %3107, %v1404_v14  }
 0x9bb   :  { %1415 = vperm.xlu0 %3107, %v1412_v51  }
 0xa1d   :  { %v1215_v16 = vpop.permute.xlu1 %1214 }
 0xa1e   :  { %v1217_v18 = vadd.f32 %v1215_v16, %v1153_v53 }
 0xa20   :  { %3167 = vtanh.f32 %v1217_v18 }
 0xa25   :  { %v1290_v19 = vpop.permute.xlu0 %1289 }
 0xa26   :  { %v1292_v1 = vadd.f32 %v1290_v19, %v1228_v56 }
 0xa28   :  { %3169 = vtanh.f32 %v1292_v1  ;;  %v2822_v1 = vld [vmem:[%s4225_s25 + $0x10] sm:$0xf] }
 0xa2a   :  { %v3168_v22 = vpop.eup %3167 }
 0xa2b   :  { %1221 = vrot.lane.b32.xlu1 %v3168_v22, %s3328_s26 }
 0xa2e   :  { %v1305_v24 = vpop.permute.xlu1 %1304 }
 0xa32   :  { %v3170_v23 = vpop.eup %3169  ;;  %v1368_v25 = vpop.permute.xlu1 %1367 }
 0xa33   :  { %1296 = vrot.lane.b32.xlu0 %v3170_v23, %s3328_s26 }
 0xa36   :  { %v1408_v26 = vpop.permute.xlu0 %1407 }
 0xa37   :  { %v1410_v37 = vmul.f32 %v1408_v26, %v3669_v21  ;;  %v1674_v26 = vsub.f32 1.0, %v2822_v1 }
 0xa3a   :  { %v1416_v36 = vpop.permute.xlu0 %1415 }
 0xa3b   :  { %v1418_v45 = vmul.f32 %v1416_v36, %v3677_v33 }
 0xa9d   :  { %v1222_v32 = vpop.permute.xlu1 %1221 }
 0xa9e   :  { %v1224_v34 = vmul.f32 %v1222_v32, %v1219_v28 }
 0xaa0   :  { %v1226_v35 = vadd.f32 %v1225_v6, %v1224_v34 }
 0xaa2   :  { %v3718_v38 = vmul.f32 %v1305_v24, %v1226_v35  ;;  %v2823_v24 = vld [vmem:[%s4225_s25 + $0xc] sm:$0xf] }
 0xaa3   :  { %v1682_v28 = vsub.f32 1.0, %v2823_v24 }
 0xaa4   :  { %v3721_v15 = vadd.f32 %v1410_v37, %v3718_v38 }
 0xaa5   :  { %v1297_v40 = vpop.permute.xlu0 %1296 }
 0xaa6   :  { %v1299_v42 = vmul.f32 %v1297_v40, %v1294_v39  ;;  %v1424_v43 = vpack.c.bf16 %v3721_v15, %v3721_v15 }
 0xaa8   :  { %v1301_v44 = vadd.f32 %v1300_v41, %v1299_v42  ;;  %1426 = vrot.lane.b32.xlu1 %v1424_v43, %s3328_s26 }
 0xaaa   :  { %v1370_v46 = vmul.f32 %v1368_v25, %v1301_v44 }
 0xaac   :  { %v1378_v21 = vrot.slane %v1370_v46, %v3570_v60  ;;  %v3729_v47 = vadd.f32 %v1418_v45, %v1370_v46 }
 0xaae   :  { %v1379_v48 = vcombine.high %v1378_v21, %v1378_v21  ;;  %v1386_v49 = vrot.slane %v1378_v21, %v3570_v60  ;;  %v1499_v52 = vpack.c.bf16 %v3729_v47, %v3729_v47 }
 0xab0   :  { %v1393_v53 = vrot.slane %v1379_v48, %v3570_v60  ;;  %v1394_v54 = vcombine.high %v1386_v49, %v1386_v49  ;;  %1501 = vrot.lane.b32.xlu0 %v1499_v52, %s3328_s26  ;;  %1400 = vst.msk [vmem:[#allocation7 + $0x4] sm:$0x1] %vm583_vm3, %v1386_v49 }
 0xab2   :  { %1401 = vst.msk [vmem:[#allocation7 + $0xc] sm:$0x1] %vm583_vm3, %v1393_v53  ;;  %1402 = vst.msk [vmem:[#allocation7 + $0x14] sm:$0x1] %vm583_vm3, %v1394_v54  ;;  %v1395_v33 = vcombine.high %v1393_v53, %v1393_v53 }
 0xab4   :  { %1403 = vst.msk [vmem:[#allocation7 + $0x1c] sm:$0x1] %vm583_vm3, %v1395_v33 }
 0xb1a   :  { %v1427_v55 = vpop.permute.xlu1 %1426 }
 0xb1b   :  { %3006 = vmatmul.mubr.msk.bf16.vlgmr.msra.gmra.mrb[16].mxu0 %vm328_vm4, %v1427_v55 }
 0xb1c   :  { %3018 = vmatpush3.bf16.msra.mxu0 %v3474_v27  ;;  %3021 = vmatprep.mubr.msk.bf16.mxu0 %vm3327_vm1, %v3326_v17 }
 0xb1d   :  { %3019 = vmatprep.subr.bf16.mxu0 %v3326_v17 }
 0xb20   :  { %3020 = vmatpush3.bf16.msra.mxu0 %v3479_v29 }
 0xb21   :  { %3033 = vmatprep.subr.bf16.mxu0 %v3326_v17 }
 0xb22   :  { %v1502_v56 = vpop.permute.xlu0 %1501 }
 0xb23   :  { %3014 = vmatmul.mubr.msk.bf16.vlgmr.msra.gmra.mrb[24].mxu1 %vm328_vm4, %v1502_v56 }
 0xb24   :  { %3026 = vmatpush3.bf16.msra.mxu1 %v3493_v30  ;;  %3029 = vmatprep.mubr.msk.bf16.mxu1 %vm3327_vm1, %v3326_v17 }
 0xb25   :  { %3027 = vmatprep.subr.bf16.mxu1 %v3326_v17 }
 0xb28   :  { %3028 = vmatpush3.bf16.msra.mxu1 %v3502_v31 }
 0xb29   :  { %3041 = vmatprep.subr.bf16.mxu1 %v3326_v17 }
 0xbee   :  { %v1465_v27 = vpop.f32.mrb[16].mxu0 }
 0xbef   :  { %v1466_v58 = vadd.f32 %v3535_v57, %v1465_v27  ;;  %v3007_v29 = vpop.f32.mrb[17].mxu0 }
 0xbf0   :  { %v1468_v59 = vpop.f32.mrb[18].mxu0 }
 0xbf1   :  { %1479 = vrot.lane.b32.xlu1 %v1466_v58, %s3322_s1  ;;  %v3008_v61 = vpop.f32.mrb[19].mxu0  ;;  %v1471_v31 = vadd.f32 %v1466_v58, %v1423_v7 }
 0xbf3   :  { %v2825_v8 = vmul.f32 -1.442695, %v1471_v31 }
 0xbf5   :  { %3171 = vpow2.f32 %v2825_v8 }
 0xbf6   :  { %v1540_v62 = vpop.f32.mrb[24].mxu1 }
 0xbf7   :  { %v1541_v30 = vadd.f32 %v3547_v0, %v1540_v62  ;;  %v3015_v63 = vpop.f32.mrb[25].mxu1  ;;  %v3792_v62 = vld [vmem:[%s4205_s3] sm:$0xff]  }
 0xbf8   :  { %v1543_v2 = vpop.f32.mrb[26].mxu1  ;;  %v3809_v63 = vld [vmem:[%s4209_s7] sm:$0xff]  }
 0xbf9   :  { %1554 = vrot.lane.b32.xlu0 %v1541_v30, %s3322_s1  ;;  %v3016_v3 = vpop.f32.mrb[27].mxu1  ;;  %v1546_v10 = vadd.f32 %v1541_v30, %v1498_v9  ;;  %v3818_v2 = vld [vmem:[%s4209_s7 + $0x8] sm:$0xff]  }
 0xbfb   :  { %v2827_v11 = vmul.f32 -1.442695, %v1546_v10 }
 0xbfd   :  { %3173 = vpow2.f32 %v2827_v11 }
 0xbff   :  { %v3172_v12 = vpop.eup %3171 }
 0xc00   :  { %v1475_v13 = vadd.f32 1.0, %v3172_v12 }
 0xc02   :  { %3175 = vrcp.f32 %v1475_v13 }
 0xc07   :  { %v3174_v14 = vpop.eup %3173 }
 0xc08   :  { %v1550_v51 = vadd.f32 1.0, %v3174_v14 }
 0xc0a   :  { %3177 = vrcp.f32 %v1550_v51  ;;  %v1693_v51 = vld [vmem:[#allocation2 + $0x14] sm:$0xf] }
 0xc0c   :  { %v3176_v16 = vpop.eup %3175 }
 0xc0d   :  { %v1489_v42 = vsub.f32 1.0, %v3176_v16  ;;  %v1495_v44 = vmul.f32 %v3176_v16, %v3721_v15 }
 0xc14   :  { %v3178_v22 = vpop.eup %3177 }
 0xc15   :  { %v1564_v53 = vsub.f32 1.0, %v3178_v22  ;;  %v1570_v33 = vmul.f32 %v3178_v22, %v3729_v47 }
 0xc63   :  { %v1480_v18 = vpop.permute.xlu1 %1479 }
 0xc64   :  { %v1482_v19 = vmul.f32 %v3176_v16, %v1480_v18 }
 0xc66   :  { %1484 = vrot.lane.b32.xlu1 %v1482_v19, %s3322_s1  ;;  %v1768_v19 = vld [vmem:[#allocation3 + $0x8] sm:$0xf] }
 0xc6a   :  { %1574 = vperm.xlu1 %3108, %v2822_v1  }
 0xc6b   :  { %v1555_v23 = vpop.permute.xlu0 %1554 }
 0xc6c   :  { %v1557_v25 = vmul.f32 %v3178_v22, %v1555_v23 }
 0xc6e   :  { %1559 = vrot.lane.b32.xlu0 %v1557_v25, %s3322_s1  ;;  %1637 = vperm.xlu1 %3108, %v2823_v24  }
 0xc72   :  { %1677 = vperm.xlu0 %3107, %v1674_v26  }
 0xc76   :  { %1685 = vperm.xlu0 %3107, %v1682_v28  }
 0xcd8   :  { %v1485_v32 = vpop.permute.xlu1 %1484 }
 0xcd9   :  { %v1487_v6 = vadd.f32 %v1485_v32, %v1423_v7  ;;  %v2828_v32 = vld [vmem:[%s4225_s25 + $0x14] sm:$0xf] }
 0xcdb   :  { %3179 = vtanh.f32 %v1487_v6 }
 0xce0   :  { %v1560_v34 = vpop.permute.xlu0 %1559 }
 0xce1   :  { %v1562_v35 = vadd.f32 %v1560_v34, %v1498_v9 }
 0xce3   :  { %3181 = vtanh.f32 %v1562_v35  ;;  %v2829_v35 = vld [vmem:[%s4225_s25 + $0x8] sm:$0xf] }
 0xce5   :  { %v3180_v36 = vpop.eup %3179 }
 0xce6   :  { %1491 = vrot.lane.b32.xlu1 %v3180_v36, %s3328_s26 }
 0xce9   :  { %v1575_v39 = vpop.permute.xlu1 %1574 }
 0xced   :  { %v3182_v37 = vpop.eup %3181  ;;  %v1638_v40 = vpop.permute.xlu1 %1637 }
 0xcee   :  { %1566 = vrot.lane.b32.xlu0 %v3182_v37, %s3328_s26  ;;  %v1944_v37 = vsub.f32 1.0, %v2828_v32 }
 0xcf1   :  { %v1678_v41 = vpop.permute.xlu0 %1677 }
 0xcf2   :  { %v1680_v48 = vmul.f32 %v1678_v41, %v3721_v15 }
 0xcf5   :  { %v1686_v21 = vpop.permute.xlu0 %1685 }
 0xcf6   :  { %v1688_v58 = vmul.f32 %v1686_v21, %v3729_v47  ;;  %v3801_v47 = vld [vmem:[%s4205_s3 + $0x8] sm:$0xff]  }
 0xd58   :  { %v1492_v43 = vpop.permute.xlu1 %1491 }
 0xd59   :  { %v1494_v45 = vmul.f32 %v1492_v43, %v1489_v42 }
 0xd5b   :  { %v1496_v46 = vadd.f32 %v1495_v44, %v1494_v45 }
 0xd5d   :  { %v3770_v49 = vmul.f32 %v1575_v39, %v1496_v46  ;;  %v1952_v39 = vsub.f32 1.0, %v2829_v35 }
 0xd5f   :  { %v3773_v52 = vadd.f32 %v1680_v48, %v3770_v49 }
 0xd60   :  { %v1567_v54 = vpop.permute.xlu0 %1566 }
 0xd61   :  { %v1569_v55 = vmul.f32 %v1567_v54, %v1564_v53  ;;  %v1694_v56 = vpack.c.bf16 %v3773_v52, %v3773_v52 }
 0xd63   :  { %v1571_v27 = vadd.f32 %v1570_v33, %v1569_v55  ;;  %1696 = vrot.lane.b32.xlu1 %v1694_v56, %s3328_s26 }
 0xd65   :  { %v3780_v29 = vmul.f32 %v1638_v40, %v1571_v27 }
 0xd67   :  { %v3783_v15 = vadd.f32 %v1688_v58, %v3780_v29 }
 0xd69   :  { %v1769_v59 = vpack.c.bf16 %v3783_v15, %v3783_v15 }
 0xd6b   :  { %1771 = vrot.lane.b32.xlu0 %v1769_v59, %s3328_s26 }
 0xdd5   :  { %v1697_v61 = vpop.permute.xlu1 %1696 }
 0xdd6   :  { %3022 = vmatmul.mubr.msk.bf16.vlgmr.msra.gmra.mrb[20].mxu0 %vm328_vm4, %v1697_v61 }
 0xdd7   :  { %3034 = vmatpush3.bf16.msra.mxu0 %v3792_v62  ;;  %3037 = vmatprep.mubr.msk.bf16.mxu0 %vm3327_vm1, %v3326_v17 }
 0xdd8   :  { %3035 = vmatprep.subr.bf16.mxu0 %v3326_v17 }
 0xddb   :  { %3036 = vmatpush3.bf16.msra.mxu0 %v3801_v47 }
 0xddc   :  { %3049 = vmatprep.subr.bf16.mxu0 %v3326_v17 }
 0xddd   :  { %v1772_v30 = vpop.permute.xlu0 %1771 }
 0xdde   :  { %3030 = vmatmul.mubr.msk.bf16.vlgmr.msra.gmra.mrb[28].mxu1 %vm328_vm4, %v1772_v30 }
 0xddf   :  { %3042 = vmatpush3.bf16.msra.mxu1 %v3809_v63  ;;  %3045 = vmatprep.mubr.msk.bf16.mxu1 %vm3327_vm1, %v3326_v17 }
 0xde0   :  { %3043 = vmatprep.subr.bf16.mxu1 %v3326_v17 }
 0xde3   :  { %3044 = vmatpush3.bf16.msra.mxu1 %v3818_v2 }
 0xde4   :  { %3057 = vmatprep.subr.bf16.mxu1 %v3326_v17 }
 0xea9   :  { %v1735_v3 = vpop.f32.mrb[20].mxu0 }
 0xeaa   :  { %v1736_v7 = vadd.f32 %v3535_v57, %v1735_v3  ;;  %v3023_v31 = vpop.f32.mrb[21].mxu0 }
 0xeab   :  { %v1738_v8 = vpop.f32.mrb[22].mxu0 }
 0xeac   :  { %1749 = vrot.lane.b32.xlu1 %v1736_v7, %s3322_s1  ;;  %v3024_v9 = vpop.f32.mrb[23].mxu0  ;;  %v1741_v16 = vadd.f32 %v1736_v7, %v1693_v51 }
 0xeae   :  { %v2831_v18 = vmul.f32 -1.442695, %v1741_v16 }
 0xeb0   :  { %3183 = vpow2.f32 %v2831_v18 }
 0xeb1   :  { %v1810_v10 = vpop.f32.mrb[28].mxu1 }
 0xeb2   :  { %v1811_v11 = vadd.f32 %v3547_v0, %v1810_v10  ;;  %v3031_v12 = vpop.f32.mrb[29].mxu1 }
 0xeb3   :  { %v1813_v13 = vpop.f32.mrb[30].mxu1 }
 0xeb4   :  { %1824 = vrot.lane.b32.xlu0 %v1811_v11, %s3322_s1  ;;  %v3032_v14 = vpop.f32.mrb[31].mxu1  ;;  %v1816_v1 = vadd.f32 %v1811_v11, %v1768_v19 }
 0xeb6   :  { %v2833_v57 = vmul.f32 -1.442695, %v1816_v1 }
 0xeb8   :  { %3185 = vpow2.f32 %v2833_v57 }
 0xeba   :  { %v3184_v22 = vpop.eup %3183 }
 0xebb   :  { %v1745_v23 = vadd.f32 1.0, %v3184_v22 }
 0xebd   :  { %3187 = vrcp.f32 %v1745_v23  ;;  %v1963_v23 = vld [vmem:[#allocation2 + $0x18] sm:$0xf] }
 0xec2   :  { %v3186_v24 = vpop.eup %3185 }
 0xec3   :  { %v1820_v25 = vadd.f32 1.0, %v3186_v24 }
 0xec5   :  { %3189 = vrcp.f32 %v1820_v25 }
 0xec7   :  { %v3188_v0 = vpop.eup %3187 }
 0xec8   :  { %v1759_v53 = vsub.f32 1.0, %v3188_v0  ;;  %v1765_v33 = vmul.f32 %v3188_v0, %v3773_v52 }
 0xecf   :  { %v3190_v6 = vpop.eup %3189 }
 0xed0   :  { %v1834_v30 = vsub.f32 1.0, %v3190_v6  ;;  %v1840_v7 = vmul.f32 %v3190_v6, %v3783_v15 }
 0xf1e   :  { %v1750_v26 = vpop.permute.xlu1 %1749 }
 0xf1f   :  { %v1752_v28 = vmul.f32 %v3188_v0, %v1750_v26  ;;  %v2038_v0 = vld [vmem:[#allocation3 + $0x4] sm:$0xf] }
 0xf21   :  { %1754 = vrot.lane.b32.xlu1 %v1752_v28, %s3322_s1 }
 0xf25   :  { %1844 = vperm.xlu1 %3108, %v2828_v32  }
 0xf26   :  { %v1825_v34 = vpop.permute.xlu0 %1824 }
 0xf27   :  { %v1827_v36 = vmul.f32 %v3190_v6, %v1825_v34 }
 0xf29   :  { %1829 = vrot.lane.b32.xlu0 %v1827_v36, %s3322_s1  ;;  %1907 = vperm.xlu1 %3108, %v2829_v35  }
 0xf2d   :  { %1947 = vperm.xlu0 %3107, %v1944_v37  }
 0xf31   :  { %1955 = vperm.xlu0 %3107, %v1952_v39  }
 0xf93   :  { %v1755_v40 = vpop.permute.xlu1 %1754 }
 0xf94   :  { %v1757_v41 = vadd.f32 %v1755_v40, %v1693_v51  ;;  %v2834_v40 = vld [vmem:[%s4225_s25 + $0x18] sm:$0xf] }
 0xf96   :  { %3191 = vtanh.f32 %v1757_v41 }
 0xf9b   :  { %v1830_v42 = vpop.permute.xlu0 %1829 }
 0xf9c   :  { %v1832_v43 = vadd.f32 %v1830_v42, %v1768_v19 }
 0xf9e   :  { %3193 = vtanh.f32 %v1832_v43  ;;  %v2835_v43 = vld [vmem:[%s4225_s25 + $0x4] sm:$0xf] }
 0xfa0   :  { %v3192_v44 = vpop.eup %3191 }
 0xfa1   :  { %1761 = vrot.lane.b32.xlu1 %v3192_v44, %s3328_s26 }
 0xfa4   :  { %v1845_v46 = vpop.permute.xlu1 %1844 }
 0xfa8   :  { %v3194_v45 = vpop.eup %3193  ;;  %v1908_v21 = vpop.permute.xlu1 %1907 }
 0xfa9   :  { %1836 = vrot.lane.b32.xlu0 %v3194_v45, %s3328_s26  ;;  %v2214_v45 = vsub.f32 1.0, %v2834_v40 }
 0xfac   :  { %v1948_v48 = vpop.permute.xlu0 %1947 }
 0xfad   :  { %v1950_v58 = vmul.f32 %v1948_v48, %v3773_v52 }
 0xfb0   :  { %v1956_v27 = vpop.permute.xlu0 %1955 }
 0xfb1   :  { %v1958_v10 = vmul.f32 %v1956_v27, %v3783_v15 }
0x1013   :  { %v1762_v54 = vpop.permute.xlu1 %1761 }
0x1014   :  { %v1764_v55 = vmul.f32 %v1762_v54, %v1759_v53 }
0x1016   :  { %v1766_v56 = vadd.f32 %v1765_v33, %v1764_v55 }
0x1018   :  { %v3838_v59 = vmul.f32 %v1845_v46, %v1766_v56  ;;  %v2222_v46 = vsub.f32 1.0, %v2835_v43 }
0x101a   :  { %v3841_v61 = vadd.f32 %v1950_v58, %v3838_v59 }
0x101b   :  { %v1837_v3 = vpop.permute.xlu0 %1836 }
0x101c   :  { %v1839_v31 = vmul.f32 %v1837_v3, %v1834_v30  ;;  %v1964_v8 = vpack.c.bf16 %v3841_v61, %v3841_v61 }
0x101e   :  { %v1841_v9 = vadd.f32 %v1840_v7, %v1839_v31  ;;  %1966 = vrot.lane.b32.xlu1 %v1964_v8, %s3328_s26 }
0x1020   :  { %v3848_v11 = vmul.f32 %v1908_v21, %v1841_v9 }
0x1022   :  { %v3851_v52 = vadd.f32 %v1958_v10, %v3848_v11 }
0x1024   :  { %v2039_v12 = vpack.c.bf16 %v3851_v52, %v3851_v52 }
0x1026   :  { %2041 = vrot.lane.b32.xlu0 %v2039_v12, %s3328_s26 }
0x1090   :  { %v1967_v13 = vpop.permute.xlu1 %1966 }
0x1091   :  { %3038 = vmatmul.mubr.msk.bf16.vlgmr.msra.gmra.mrb[24].mxu0 %vm328_vm4, %v1967_v13 }
0x1092   :  { %3050 = vmatpush3.bf16.msra.mxu0 %v3792_v62  ;;  %3053 = vmatprep.mubr.msk.bf16.mxu0 %vm3327_vm1, %v3326_v17 }
0x1093   :  { %3051 = vmatprep.subr.bf16.mxu0 %v3326_v17 }
0x1096   :  { %3052 = vmatpush3.bf16.msra.mxu0 %v3801_v47  ;;  %v3873_v47 = vld [vmem:[%s4207_s5] ss:$0 sm:$0xff]  ;;  %s2746_s5 = sshll.u32 %s3330_s2, 4  ;;  %s2747_s5 = int_to_ptr.vmem [resolvable:$true] %s2746_s5 }
0x1097   :  { %3065 = vmatprep.subr.bf16.mxu0 %v3326_v17  ;;  %p3254_p9 = scmp.lt.s32.totalorder %s2747_s5, %s2747_s5 }
0x1098   :  { %v2042_v15 = vpop.permute.xlu0 %2041 }
0x1099   :  { %3046 = vmatmul.mubr.msk.bf16.vlgmr.msra.gmra.mrb[32].mxu1 %vm328_vm4, %v2042_v15 }
0x109a   :  { %3058 = vmatpush3.bf16.msra.mxu1 %v3809_v63  ;;  %3061 = vmatprep.mubr.msk.bf16.mxu1 %vm3327_vm1, %v3326_v17 }
0x109b   :  { %3059 = vmatprep.subr.bf16.mxu1 %v3326_v17 }
0x109e   :  { %3060 = vmatpush3.bf16.msra.mxu1 %v3818_v2  ;;  %v3880_v2 = vld [vmem:[%s4211_s9] ss:$0 sm:$0xff]  ;;  %s3249_s9 = scalar_lea.vmem %s2747_s5, 512 }
0x109f   :  { %3073 = vmatprep.subr.bf16.mxu1 %v3326_v17  ;;  %p3250_p8 = scmp.ne.s32.totalorder %s2747_s5, %s3249_s9  ;;  %p3255_p10 = scmp.lt.s32.totalorder %s3249_s9, %s3249_s9 }
0x10a1   :  { %p3256_p11 = por %p3255_p10, %p3254_p9 }
0x10a3   :  { %p3257_p12 = pnand %p3256_p11, %p3250_p8 }
0x1164   :  { %v2005_v62 = vpop.f32.mrb[24].mxu0 }
0x1165   :  { %v2006_v14 = vadd.f32 %v3873_v47, %v2005_v62  ;;  %v3039_v51 = vpop.f32.mrb[25].mxu0 }
0x1166   :  { %v2008_v16 = vpop.f32.mrb[26].mxu0 }
0x1167   :  { %2019 = vrot.lane.b32.xlu1 %v2006_v14, %s3322_s1  ;;  %v3040_v63 = vpop.f32.mrb[27].mxu0  ;;  %v2011_v24 = vadd.f32 %v2006_v14, %v1963_v23 }
0x1169   :  { %v2837_v25 = vmul.f32 -1.442695, %v2011_v24 }
0x116b   :  { %3195 = vpow2.f32 %v2837_v25 }
0x116c   :  { %v2080_v18 = vpop.f32.mrb[32].mxu1 }
0x116d   :  { %v2081_v19 = vadd.f32 %v3880_v2, %v2080_v18  ;;  %v3047_v1 = vpop.f32.mrb[33].mxu1 }
0x116e   :  { %v2083_v57 = vpop.f32.mrb[34].mxu1 }
0x116f   :  { %2094 = vrot.lane.b32.xlu0 %v2081_v19, %s3322_s1  ;;  %v3048_v22 = vpop.f32.mrb[35].mxu1  ;;  %v2086_v26 = vadd.f32 %v2081_v19, %v2038_v0 }
0x1171   :  { %v2839_v28 = vmul.f32 -1.442695, %v2086_v26 }
0x1173   :  { %3197 = vpow2.f32 %v2839_v28 }
0x1175   :  { %v3196_v32 = vpop.eup %3195 }
0x1176   :  { %v2015_v6 = vadd.f32 1.0, %v3196_v32 }
0x1178   :  { %3199 = vrcp.f32 %v2015_v6 }
0x117d   :  { %v3198_v34 = vpop.eup %3197 }
0x117e   :  { %v2090_v35 = vadd.f32 1.0, %v3198_v34 }
0x1180   :  { %3201 = vrcp.f32 %v2090_v35  ;;  %v2233_v35 = vld [vmem:[#allocation2 + $0x1c] sm:$0xf] }
0x1182   :  { %v3200_v36 = vpop.eup %3199 }
0x1183   :  { %v2029_v30 = vsub.f32 1.0, %v3200_v36  ;;  %v2035_v7 = vmul.f32 %v3200_v36, %v3841_v61 }
0x118a   :  { %v3202_v41 = vpop.eup %3201 }
0x118b   :  { %v2104_v15 = vsub.f32 1.0, %v3202_v41  ;;  %v2110_v14 = vmul.f32 %v3202_v41, %v3851_v52 }
0x11d9   :  { %v2020_v37 = vpop.permute.xlu1 %2019 }
0x11da   :  { %v2022_v39 = vmul.f32 %v3200_v36, %v2020_v37 }
0x11dc   :  { %2024 = vrot.lane.b32.xlu1 %v2022_v39, %s3322_s1  ;;  %v2307_v39 = vld [vmem:[#allocation3] sm:$0xf] }
0x11e0   :  { %2114 = vperm.xlu1 %3108, %v2834_v40  }
0x11e1   :  { %v2095_v42 = vpop.permute.xlu0 %2094 }
0x11e2   :  { %v2097_v44 = vmul.f32 %v3202_v41, %v2095_v42 }
0x11e4   :  { %2099 = vrot.lane.b32.xlu0 %v2097_v44, %s3322_s1  ;;  %2177 = vperm.xlu1 %3108, %v2835_v43  }
0x11e8   :  { %2217 = vperm.xlu0 %3107, %v2214_v45  }
0x11ec   :  { %2225 = vperm.xlu0 %3107, %v2222_v46  }
0x124e   :  { %v2025_v21 = vpop.permute.xlu1 %2024 }
0x124f   :  { %v2027_v48 = vadd.f32 %v2025_v21, %v1963_v23  ;;  %v2840_v21 = vld [vmem:[%s4225_s25 + $0x1c] sm:$0xf] }
0x1251   :  { %3203 = vtanh.f32 %v2027_v48  ;;  %v2231_v48 = vld [vmem:[%s4225_s25] sm:$0xf] }
0x1256   :  { %v2100_v53 = vpop.permute.xlu0 %2099 }
0x1257   :  { %v2102_v54 = vadd.f32 %v2100_v53, %v2038_v0  ;;  %v2491_v53 = vsub.f32 1.0, %v2231_v48 }
0x1259   :  { %3205 = vtanh.f32 %v2102_v54 }
0x125b   :  { %v3204_v33 = vpop.eup %3203 }
0x125c   :  { %2031 = vrot.lane.b32.xlu1 %v3204_v33, %s3328_s26 }
0x125f   :  { %v2115_v56 = vpop.permute.xlu1 %2114 }
0x1263   :  { %v3206_v55 = vpop.eup %3205  ;;  %v2178_v27 = vpop.permute.xlu1 %2177 }
0x1264   :  { %2106 = vrot.lane.b32.xlu0 %v3206_v55, %s3328_s26 }
0x1267   :  { %v2218_v58 = vpop.permute.xlu0 %2217 }
0x1268   :  { %v2220_v10 = vmul.f32 %v2218_v58, %v3841_v61 }
0x126b   :  { %v2226_v9 = vpop.permute.xlu0 %2225 }
0x126c   :  { %v2228_v18 = vmul.f32 %v2226_v9, %v3851_v52 }
0x12ce   :  { %v2032_v3 = vpop.permute.xlu1 %2031 }
0x12cf   :  { %v2034_v31 = vmul.f32 %v2032_v3, %v2029_v30  ;;  %v497_v3 = vrot.slane %v3561_v50, %v3570_v60  ;;  %v1043_v50 = vrot.slane %v3666_v20, %v3570_v60 }
0x12d1   :  { %v2036_v8 = vadd.f32 %v2035_v7, %v2034_v31  ;;  %v2483_v31 = vsub.f32 1.0, %v2840_v21  ;;  %v498_v9 = vcombine.high %v497_v3, %v497_v3 }
0x12d3   :  { %v3896_v12 = vmul.f32 %v2115_v56, %v2036_v8  ;;  %v771_v8 = vrot.slane %v3614_v4, %v3570_v60 }
0x12d5   :  { %v3899_v13 = vadd.f32 %v2220_v10, %v3896_v12  ;;  %v3944_v10 = vsub.s32 0, %v3439_v5 }
0x12d6   :  { %v2107_v62 = vpop.permute.xlu0 %2106 }
0x12d7   :  { %v2109_v51 = vmul.f32 %v2107_v62, %v2104_v15  ;;  %v2234_v16 = vpack.c.bf16 %v3899_v13, %v3899_v13  ;;  %v505_v15 = vrot.slane %v497_v3, %v3570_v60  ;;  %v512_v62 = vrot.slane %v498_v9, %v3570_v60 }
0x12d9   :  { %v2111_v63 = vadd.f32 %v2110_v14, %v2109_v51  ;;  %2236 = vrot.lane.b32.xlu1 %v2234_v16, %s3328_s26  ;;  %v772_v14 = vcombine.high %v771_v8, %v771_v8  ;;  %v518_v51 = vrot.slane %v505_v15, %v3944_v10  ;;  %v779_v16 = vrot.slane %v771_v8, %v3570_v60 }
0x12da   :  { %v522_v5 = vrot.slane %v512_v62, %v3944_v10 }
0x12db   :  { %v3906_v19 = vmul.f32 %v2178_v27, %v2111_v63  ;;  %v786_v4 = vrot.slane %v772_v14, %v3570_v60  ;;  %v792_v20 = vrot.slane %v779_v16, %v3944_v10 }
0x12dd   :  { %v3909_v61 = vadd.f32 %v2228_v18, %v3906_v19  ;;  %v1044_v18 = vcombine.high %v1043_v50, %v1043_v50 }
0x12df   :  { %v2308_v1 = vpack.c.bf16 %v3909_v61, %v3909_v61 }
0x12e1   :  { %2310 = vrot.lane.b32.xlu0 %v2308_v1, %s3328_s26  ;;  %v1051_v1 = vrot.slane %v1043_v50, %v3570_v60 }
0x134b   :  { %v2237_v57 = vpop.permute.xlu1 %2236 }
0x134c   :  { %3054 = vmatmul.mubr.msk.bf16.vlgmr.msra.gmra.mrb[28].mxu0 %vm328_vm4, %v2237_v57  ;;  %v1315_v57 = vrot.slane %v3718_v38, %v3570_v60  ;;  %v513_v38 = vcombine.high %v505_v15, %v505_v15 }
0x134d   :  { %3069 = vmatprep.mubr.msk.bf16.mxu0 %vm3327_vm1, %v3326_v17 }
0x1353   :  { %v2311_v22 = vpop.permute.xlu0 %2310 }
0x1354   :  { %3062 = vmatmul.mubr.msk.bf16.vlgmr.msra.gmra.mrb[36].mxu1 %vm328_vm4, %v2311_v22  ;;  %v796_v22 = vrot.slane %v786_v4, %v3944_v10 }
0x1355   :  { %3077 = vmatprep.mubr.msk.bf16.mxu1 %vm3327_vm1, %v3326_v17 }
0x141f   :  { %v2275_v52 = vpop.f32.mrb[28].mxu0 }
0x1420   :  { %v2276_v23 = vadd.f32 %v3873_v47, %v2275_v52  ;;  %v3055_v24 = vpop.f32.mrb[29].mxu0  ;;  %v1316_v52 = vcombine.high %v1315_v57, %v1315_v57 }
0x1421   :  { %v2278_v25 = vpop.f32.mrb[30].mxu0  ;;  %v1064_v24 = vrot.slane %v1051_v1, %v3944_v10 }
0x1422   :  { %2289 = vrot.lane.b32.xlu1 %v2276_v23, %s3322_s1  ;;  %v3056_v0 = vpop.f32.mrb[31].mxu0  ;;  %v2281_v36 = vadd.f32 %v2276_v23, %v2233_v35  ;;  %v1323_v23 = vrot.slane %v1315_v57, %v3570_v60  ;;  %v1058_v25 = vrot.slane %v1044_v18, %v3570_v60 }
0x1424   :  { %v2842_v37 = vmul.f32 -1.442695, %v2281_v36  ;;  %v1336_v0 = vrot.slane %v1323_v23, %v3944_v10  ;;  %v788_v36 = vcombine.high %v786_v4, %v786_v4 }
0x1426   :  { %3207 = vpow2.f32 %v2842_v37 }
0x1427   :  { %v2349_v26 = vpop.f32.mrb[36].mxu1 }
0x1428   :  { %v2350_v28 = vadd.f32 %v3880_v2, %v2349_v26  ;;  %v3063_v32 = vpop.f32.mrb[37].mxu1  ;;  %v1068_v26 = vrot.slane %v1058_v25, %v3944_v10 }
0x1429   :  { %v2352_v6 = vpop.f32.mrb[38].mxu1  ;;  %v514_v32 = vcombine.high %v512_v62, %v512_v62 }
0x142a   :  { %2363 = vrot.lane.b32.xlu0 %v2350_v28, %s3322_s1  ;;  %v3064_v34 = vpop.f32.mrb[39].mxu1  ;;  %v2355_v40 = vadd.f32 %v2350_v28, %v2307_v39  ;;  %v1330_v28 = vrot.slane %v1316_v52, %v3570_v60  ;;  %v787_v6 = vcombine.high %v779_v16, %v779_v16 }
0x142b   :  { %v526_v34 = vrot.slane %v513_v38, %v3944_v10 }
0x142c   :  { %v2844_v47 = vmul.f32 -1.442695, %v2355_v40  ;;  %v800_v37 = vrot.slane %v787_v6, %v3944_v10  ;;  %v1059_v40 = vcombine.high %v1051_v1, %v1051_v1 }
0x142e   :  { %3209 = vpow2.f32 %v2844_v47  ;;  %v1585_v47 = vrot.slane %v3770_v49, %v3570_v60 }
0x1430   :  { %v3208_v41 = vpop.eup %3207 }
0x1431   :  { %v2285_v42 = vadd.f32 1.0, %v3208_v41  ;;  %v1072_v41 = vrot.slane %v1059_v40, %v3944_v10 }
0x1433   :  { %3211 = vrcp.f32 %v2285_v42  ;;  %v804_v42 = vrot.slane %v788_v36, %v3944_v10 }
0x1438   :  { %v3210_v43 = vpop.eup %3209 }
0x1439   :  { %v2359_v44 = vadd.f32 1.0, %v3210_v43  ;;  %v1331_v43 = vcombine.high %v1323_v23, %v1323_v23 }
0x143b   :  { %3213 = vrcp.f32 %v2359_v44  ;;  %v1060_v44 = vcombine.high %v1058_v25, %v1058_v25 }
0x143d   :  { %v3924_v2 = vpop.eup %3211  ;;  %v1076_v49 = vrot.slane %v1060_v44, %v3944_v10 }
0x143e   :  { %v2299_v23 = vsub.f32 1.0, %v3924_v2  ;;  %v2305_v25 = vmul.f32 %v3924_v2, %v3899_v13 }
0x1445   :  { %v3934_v54 = vpop.eup %3213 }
0x1446   :  { %v2373_v36 = vsub.f32 1.0, %v3934_v54 }
0x1494   :  { %v2290_v45 = vpop.permute.xlu1 %2289 }
0x1495   :  { %v2292_v46 = vmul.f32 %v3924_v2, %v2290_v45  ;;  %v1586_v45 = vcombine.high %v1585_v47, %v1585_v47  ;;  %v4047_v2 = vld [vmem:[%s4215_s13] sm:$0xff]  }
0x1497   :  { %2294 = vrot.lane.b32.xlu1 %v2292_v46, %s3322_s1  ;;  %v1332_v46 = vcombine.high %v1330_v28, %v1330_v28 }
0x149b   :  { %2383 = vperm.xlu1 %3108, %v2840_v21   ;;  %v1593_v21 = vrot.slane %v1585_v47, %v3570_v60 }
0x149c   :  { %v2364_v33 = vpop.permute.xlu0 %2363 }
0x149d   :  { %v2366_v55 = vmul.f32 %v3934_v54, %v2364_v33  ;;  %v1348_v33 = vrot.slane %v1332_v46, %v3944_v10  ;;  %v1601_v15 = vcombine.high %v1593_v21, %v1593_v21 }
0x149f   :  { %2368 = vrot.lane.b32.xlu0 %v2366_v55, %s3322_s1  ;;  %2494 = vperm.xlu1 %3108, %v2491_v53   ;;  %v1344_v53 = vrot.slane %v1331_v43, %v3944_v10  ;;  %v1600_v55 = vrot.slane %v1586_v45, %v3570_v60  ;;  %v1614_v14 = vrot.slane %v1601_v15, %v3944_v10 }
0x14a1   :  { %v1602_v16 = vcombine.high %v1600_v55, %v1600_v55 }
0x14a3   :  { %2446 = vperm.xlu0 %3107, %v2231_v48   ;;  %v1855_v48 = vrot.slane %v3838_v59, %v3570_v60  ;;  %v1606_v59 = vrot.slane %v1593_v21, %v3944_v10 }
0x1509   :  { %v2295_v56 = vpop.permute.xlu1 %2294 }
0x150a   :  { %v2297_v27 = vadd.f32 %v2295_v56, %v2233_v35  ;;  %v1340_v35 = vrot.slane %v1330_v28, %v3944_v10  ;;  %v1856_v56 = vcombine.high %v1855_v48, %v1855_v48 }
0x150c   :  { %3215 = vtanh.f32 %v2297_v27  ;;  %v1863_v27 = vrot.slane %v1855_v48, %v3570_v60  ;;  %v1870_v8 = vrot.slane %v1856_v56, %v3570_v60 }
0x150e   :  { %v1880_v9 = vrot.slane %v1870_v8, %v3944_v10  ;;  %v1872_v18 = vcombine.high %v1870_v8, %v1870_v8 }
0x1510   :  { %v1888_v57 = vrot.slane %v1872_v18, %v3944_v10 }
0x1511   :  { %v2369_v58 = vpop.permute.xlu0 %2368 }
0x1512   :  { %v2371_v30 = vadd.f32 %v2369_v58, %v2307_v39  ;;  %v530_v39 = vrot.slane %v514_v32, %v3944_v10  ;;  %v2125_v58 = vrot.slane %v3896_v12, %v3570_v60  ;;  %v3117_v32 = vld [vmem:[%s4212_s10] sm:$0xff]  }
0x1513   :  { %3074 = vmatpush3.bf16.msra.mxu1 %v3117_v32 }
0x1514   :  { %3217 = vtanh.f32 %v2371_v30  ;;  %v1610_v30 = vrot.slane %v1600_v55, %v3944_v10  ;;  %v2126_v3 = vcombine.high %v2125_v58, %v2125_v58  ;;  %3075 = vmatprep.subr.bf16.mxu1 %v3326_v17 }
0x1516   :  { %v3216_v7 = vpop.eup %3215  ;;  %v4011_v62 = vrot.slane %v2126_v3, %v3570_v60 }
0x1517   :  { %2301 = vrot.lane.b32.xlu0 %v3216_v7, %s3328_s26  ;;  %v2133_v7 = vrot.slane %v2125_v58, %v3570_v60 }
0x1518   :  { %v2150_v50 = vrot.slane %v4011_v62, %v3944_v10  ;;  %v2142_v3 = vcombine.high %v4011_v62, %v4011_v62 }
0x1519   :  { %v2146_v12 = vrot.slane %v2133_v7, %v3944_v10  ;;  %v2141_v4 = vcombine.high %v2133_v7, %v2133_v7 }
0x151a   :  { %v2384_v52 = vpop.permute.xlu1 %2383 }
0x151b   :  { %2486 = vperm.xlu0 %3107, %v2483_v31   ;;  %v1876_v31 = vrot.slane %v1863_v27, %v3944_v10  ;;  %v2154_v1 = vrot.slane %v2141_v4, %v3944_v10 }
0x151e   :  { %v3218_v63 = vpop.eup %3217  ;;  %v2495_v28 = vpop.permute.xlu1 %2494 }
0x151f   :  { %2375 = vrot.lane.b32.xlu1 %v3218_v63, %s3328_s26  ;;  %531 = vrot.lane.b32.xlu0 %v518_v51, %s3328_s26  ;;  %v1871_v51 = vcombine.high %v1863_v27, %v1863_v27  ;;  %v2497_v48 = vmul.f32 %v2495_v28, %v3909_v61 }
0x1521   :  { %v1884_v63 = vrot.slane %v1871_v51, %v3944_v10 }
0x1523   :  { %533 = vrot.lane.b32.xlu1 %v522_v5, %s3328_s26  ;;  %805 = vrot.lane.b32.xlu0 %v792_v20, %s3328_s26  ;;  %v1618_v5 = vrot.slane %v1602_v16, %v3944_v10  ;;  %v3115_v20 = vld [vmem:[%s4213_s11] sm:$0xff]  }
0x1524   :  { %3066 = vmatpush3.bf16.msra.mxu0 %v3115_v20 }
0x1525   :  { %3067 = vmatprep.subr.bf16.mxu0 %v3326_v17 }
0x1527   :  { %1077 = vrot.lane.b32.xlu0 %v1064_v24, %s3328_s26  ;;  %807 = vrot.lane.b32.xlu1 %v796_v22, %s3328_s26  ;;  %v2447_v22 = vpop.permute.xlu0 %2446 }
0x152b   :  { %1349 = vrot.lane.b32.xlu0 %v1336_v0, %s3328_s26  ;;  %1079 = vrot.lane.b32.xlu1 %v1068_v26, %s3328_s26  ;;  %v3116_v0 = vld [vmem:[%s4213_s11 + $0x8] sm:$0xff]  }
0x152c   :  { %3068 = vmatpush3.bf16.msra.mxu0 %v3116_v0 }
0x152d   :  { %3081 = vmatprep.subr.bf16.mxu0 %v4047_v2 }
0x152f   :  { %535 = vrot.lane.b32.xlu0 %v526_v34, %s3328_s26  ;;  %1351 = vrot.lane.b32.xlu1 %v1340_v35, %s3328_s26  ;;  %v3118_v34 = vld [vmem:[%s4212_s10 + $0x8] sm:$0xff]  }
0x1530   :  { %3076 = vmatpush3.bf16.msra.mxu1 %v3118_v34 }
0x1533   :  { %809 = vrot.lane.b32.xlu0 %v800_v37, %s3328_s26  ;;  %537 = vrot.lane.b32.xlu1 %v530_v39, %s3328_s26  ;;  %v2188_v37 = vrot.slane %v3906_v19, %v3570_v60  ;;  %v1918_v19 = vrot.slane %v3848_v11, %v3570_v60  ;;  %v1648_v11 = vrot.slane %v3780_v29, %v3570_v60 }
0x1535   :  { %v2189_v46 = vcombine.high %v2188_v37, %v2188_v37  ;;  %v1919_v56 = vcombine.high %v1918_v19, %v1918_v19 }
0x1537   :  { %1081 = vrot.lane.b32.xlu0 %v1072_v41, %s3328_s26  ;;  %811 = vrot.lane.b32.xlu1 %v804_v42, %s3328_s26  ;;  %v2379_v41 = vmul.f32 %v3934_v54, %v3909_v61  ;;  %v2203_v61 = vrot.slane %v2189_v46, %v3570_v60  ;;  %v1933_v8 = vrot.slane %v1919_v56, %v3570_v60 }
0x153b   :  { %1353 = vrot.lane.b32.xlu0 %v1344_v53, %s3328_s26  ;;  %1083 = vrot.lane.b32.xlu1 %v1076_v49, %s3328_s26 }
0x153f   :  { %1619 = vrot.lane.b32.xlu0 %v1606_v59, %s3328_s26  ;;  %1355 = vrot.lane.b32.xlu1 %v1348_v33, %s3328_s26 }
0x1543   :  { %1889 = vrot.lane.b32.xlu0 %v1876_v31, %s3328_s26  ;;  %1621 = vrot.lane.b32.xlu1 %v1610_v30, %s3328_s26  ;;  %v1649_v31 = vcombine.high %v1648_v11, %v1648_v11 }
0x1545   :  { %v1663_v51 = vrot.slane %v1649_v31, %v3570_v60 }
0x1547   :  { %2159 = vrot.lane.b32.xlu0 %v2146_v12, %s3328_s26  ;;  %1891 = vrot.lane.b32.xlu1 %v1880_v9, %s3328_s26 }
0x154b   :  { %1623 = vrot.lane.b32.xlu0 %v1614_v14, %s3328_s26  ;;  %2161 = vrot.lane.b32.xlu1 %v2150_v50, %s3328_s26  ;;  %v2158_v14 = vrot.slane %v2142_v3, %v3944_v10 }
0x154f   :  { %1893 = vrot.lane.b32.xlu0 %v1884_v63, %s3328_s26  ;;  %1625 = vrot.lane.b32.xlu1 %v1618_v5, %s3328_s26  ;;  %v2196_v63 = vrot.slane %v2188_v37, %v3570_v60 }
0x1551   :  { %v2204_v28 = vcombine.high %v2196_v63, %v2196_v63 }
0x1553   :  { %2163 = vrot.lane.b32.xlu0 %v2154_v1, %s3328_s26  ;;  %1895 = vrot.lane.b32.xlu1 %v1888_v57, %s3328_s26  ;;  %v1926_v57 = vrot.slane %v1918_v19, %v3570_v60 }
0x1555   :  { %v1934_v34 = vcombine.high %v1926_v57, %v1926_v57 }
0x1589   :  { %v2302_v24 = vpop.permute.xlu0 %2301 }
0x158a   :  { %v2304_v38 = vmul.f32 %v2302_v24, %v2299_v23  ;;  %v1935_v24 = vcombine.high %v1933_v8, %v1933_v8 }
0x158c   :  { %v2306_v26 = vadd.f32 %v2305_v25, %v2304_v38 }
0x158e   :  { %v2386_v6 = vmul.f32 %v2384_v52, %v2306_v26  ;;  %v1656_v52 = vrot.slane %v1648_v11, %v3570_v60 }
0x1590   :  { %v2394_v35 = vrot.slane %v2386_v6, %v3570_v60  ;;  %v1664_v37 = vcombine.high %v1656_v52, %v1656_v52 }
0x1591   :  { %v2376_v39 = vpop.permute.xlu1 %2375 }
0x1592   :  { %v2395_v40 = vcombine.high %v2394_v35, %v2394_v35  ;;  %v2402_v47 = vrot.slane %v2394_v35, %v3570_v60  ;;  %v2378_v42 = vmul.f32 %v2376_v39, %v2373_v36 }
0x1594   :  { %v2380_v43 = vadd.f32 %v2379_v41, %v2378_v42  ;;  %v2415_v44 = vrot.slane %v2402_v47, %v3944_v10  ;;  %v2409_v17 = vrot.slane %v2395_v40, %v3570_v60  ;;  %v2410_v45 = vcombine.high %v2402_v47, %v2402_v47 }
0x1595   :  { %v534_v21 = vpop.permute.xlu1 %533 }
0x1596   :  { %v2449_v53 = vmul.f32 %v2447_v22, %v2380_v43  ;;  %545 = vst.msk [vmem:[#allocation7 + $0x8] sm:$0x1] %vm543_vm5, %v534_v21  ;;  %2428 = vrot.lane.b32.xlu0 %v2415_v44, %s3328_s26  ;;  %v2419_v54 = vrot.slane %v2409_v17, %v3944_v10  ;;  %v2423_v55 = vrot.slane %v2410_v45, %v3944_v10 }
0x1597   :  { %v2411_v50 = vcombine.high %v2409_v17, %v2409_v17 }
0x1598   :  { %v2457_v49 = vrot.slane %v2449_v53, %v3570_v60  ;;  %v2498_v33 = vadd.f32 %v2497_v48, %v2449_v53  ;;  %2430 = vrot.lane.b32.xlu1 %v2419_v54, %s3328_s26  ;;  %v3120_v53 = vld [vmem:[%s4215_s13 + $0x8] sm:$0xff]  }
0x1599   :  { %v808_v27 = vpop.permute.xlu1 %807  ;;  %v2427_v4 = vrot.slane %v2411_v50, %v3944_v10  ;;  %v2205_v10 = vcombine.high %v2203_v61, %v2203_v61 }
0x159a   :  { %v2458_v58 = vcombine.high %v2457_v49, %v2457_v49  ;;  %v2504_v59 = vpack.c.bf16 %v2498_v33, %v2498_v33  ;;  %818 = vst.msk [vmem:[#allocation7 + $0x9] sm:$0x1] %vm543_vm5, %v808_v27  ;;  %v2487_v30 = vpop.permute.xlu0 %2486  ;;  %2432 = vrot.lane.b32.xlu0 %v2423_v55, %s3328_s26  ;;  %v2465_v15 = vrot.slane %v2457_v49, %v3570_v60  ;;  %v3121_v49 = vld [vmem:[%s4215_s13 + $0x10] sm:$0xff]  }
0x159b   :  { %2211 = vst.msk [vmem:[#allocation7 + $0x9] sm:$0x1] %vm583_vm3, %v2203_v61  ;;  %v2489_v7 = vmul.f32 %v2487_v30, %v3899_v13 }
0x159c   :  { %v2472_v29 = vrot.slane %v2458_v58, %v3570_v60  ;;  %2510 = vrot.lane.b32.xlu1 %v2504_v59, %s3328_s26  ;;  %v2473_v38 = vcombine.high %v2465_v15, %v2465_v15  ;;  %v1665_v60 = vcombine.high %v1663_v51, %v1663_v51 }
0x159d   :  { %v2490_v12 = vadd.f32 %v2489_v7, %v2386_v6  ;;  %v1080_v9 = vpop.permute.xlu1 %1079 }
0x159e   :  { %2480 = vst.msk [vmem:[#allocation7 + $0x8] sm:$0x1] %vm583_vm3, %v2472_v29  ;;  %v532_v62 = vpop.permute.xlu0 %531  ;;  %v2474_v18 = vcombine.high %v2472_v29, %v2472_v29 }
0x159f   :  { %1090 = vst.msk [vmem:[#allocation7 + $0xa] sm:$0x1] %vm543_vm5, %v1080_v9  ;;  %v2499_v13 = vpack.c.bf16 %v2490_v12, %v2490_v12  ;;  %544 = vst.msk [vmem:[#allocation7] sm:$0x1] %vm543_vm5, %v532_v62 }
0x15a0   :  { %1941 = vst.msk [vmem:[#allocation7 + $0xa] sm:$0x1] %vm583_vm3, %v1933_v8  ;;  %2479 = vst.msk [vmem:[#allocation7] sm:$0x1] %vm583_vm3, %v2465_v15  ;;  %2165 = vrot.lane.b32.xlu1 %v2158_v14, %s3328_s26 }
0x15a1   :  { %2568 = vrot.lane.b32.xlu0 %v2499_v13, %s3328_s26  ;;  %v1352_v16 = vpop.permute.xlu1 %1351 }
0x15a2   :  { %1362 = vst.msk [vmem:[#allocation7 + $0xb] sm:$0x1] %vm543_vm5, %v1352_v16  ;;  %v806_v5 = vpop.permute.xlu0 %805 }
0x15a3   :  { %1671 = vst.msk [vmem:[#allocation7 + $0xb] sm:$0x1] %vm583_vm3, %v1663_v51 }
0x15a4   :  { %817 = vst.msk [vmem:[#allocation7 + $0x1] sm:$0x1] %vm543_vm5, %v806_v5  ;;  %2434 = vrot.lane.b32.xlu1 %v2427_v4, %s3328_s26 }
0x15a5   :  { %2210 = vst.msk [vmem:[#allocation7 + $0x1] sm:$0x1] %vm583_vm3, %v2196_v63  ;;  %v538_v1 = vpop.permute.xlu1 %537 }
0x15a6   :  { %547 = vst.msk [vmem:[#allocation7 + $0x18] sm:$0x1] %vm543_vm5, %v538_v1  ;;  %v1078_v20 = vpop.permute.xlu0 %1077 }
0x15a7   :  { %2482 = vst.msk [vmem:[#allocation7 + $0x18] sm:$0x1] %vm583_vm3, %v2474_v18 }
0x15a8   :  { %1089 = vst.msk [vmem:[#allocation7 + $0x2] sm:$0x1] %vm543_vm5, %v1078_v20 }
0x15a9   :  { %1940 = vst.msk [vmem:[#allocation7 + $0x2] sm:$0x1] %vm583_vm3, %v1926_v57  ;;  %v812_v22 = vpop.permute.xlu1 %811 }
0x15aa   :  { %820 = vst.msk [vmem:[#allocation7 + $0x19] sm:$0x1] %vm543_vm5, %v812_v22  ;;  %v1350_v23 = vpop.permute.xlu0 %1349 }
0x15ab   :  { %2213 = vst.msk [vmem:[#allocation7 + $0x19] sm:$0x1] %vm583_vm3, %v2205_v10 }
0x15ac   :  { %1361 = vst.msk [vmem:[#allocation7 + $0x3] sm:$0x1] %vm543_vm5, %v1350_v23 }
0x15ad   :  { %1670 = vst.msk [vmem:[#allocation7 + $0x3] sm:$0x1] %vm583_vm3, %v1656_v52  ;;  %v1084_v25 = vpop.permute.xlu1 %1083 }
0x15ae   :  { %1092 = vst.msk [vmem:[#allocation7 + $0x1a] sm:$0x1] %vm543_vm5, %v1084_v25  ;;  %v536_v0 = vpop.permute.xlu0 %535 }
0x15af   :  { %1943 = vst.msk [vmem:[#allocation7 + $0x1a] sm:$0x1] %vm583_vm3, %v1935_v24 }
0x15b0   :  { %546 = vst.msk [vmem:[#allocation7 + $0x10] sm:$0x1] %vm543_vm5, %v536_v0 }
0x15b1   :  { %2481 = vst.msk [vmem:[#allocation7 + $0x10] sm:$0x1] %vm583_vm3, %v2473_v38  ;;  %v1356_v26 = vpop.permute.xlu1 %1355 }
0x15b2   :  { %1364 = vst.msk [vmem:[#allocation7 + $0x1b] sm:$0x1] %vm543_vm5, %v1356_v26  ;;  %v810_v32 = vpop.permute.xlu0 %809 }
0x15b3   :  { %1673 = vst.msk [vmem:[#allocation7 + $0x1b] sm:$0x1] %vm583_vm3, %v1665_v60 }
0x15b4   :  { %819 = vst.msk [vmem:[#allocation7 + $0x11] sm:$0x1] %vm543_vm5, %v810_v32 }
0x15b5   :  { %2212 = vst.msk [vmem:[#allocation7 + $0x11] sm:$0x1] %vm583_vm3, %v2204_v28  ;;  %v1622_v6 = vpop.permute.xlu1 %1621 }
0x15b6   :  { %1632 = vst.msk [vmem:[#allocation7 + $0xc] sm:$0x1] %vm543_vm5, %v1622_v6  ;;  %v1082_v35 = vpop.permute.xlu0 %1081 }
0x15b7   :  { %1091 = vst.msk [vmem:[#allocation7 + $0x12] sm:$0x1] %vm543_vm5, %v1082_v35 }
0x15b8   :  { %1942 = vst.msk [vmem:[#allocation7 + $0x12] sm:$0x1] %vm583_vm3, %v1934_v34 }
0x15b9   :  { %v1892_v36 = vpop.permute.xlu1 %1891 }
0x15ba   :  { %1902 = vst.msk [vmem:[#allocation7 + $0xd] sm:$0x1] %vm543_vm5, %v1892_v36  ;;  %v1354_v39 = vpop.permute.xlu0 %1353 }
0x15bb   :  { %1363 = vst.msk [vmem:[#allocation7 + $0x13] sm:$0x1] %vm543_vm5, %v1354_v39 }
0x15bc   :  { %1672 = vst.msk [vmem:[#allocation7 + $0x13] sm:$0x1] %vm583_vm3, %v1664_v37 }
0x15bd   :  { %v2162_v40 = vpop.permute.xlu1 %2161 }
0x15be   :  { %2172 = vst.msk [vmem:[#allocation7 + $0xe] sm:$0x1] %vm543_vm5, %v2162_v40  ;;  %v1620_v47 = vpop.permute.xlu0 %1619 }
0x15bf   :  { %1631 = vst.msk [vmem:[#allocation7 + $0x4] sm:$0x1] %vm543_vm5, %v1620_v47 }
0x15c1   :  { %v1626_v41 = vpop.permute.xlu1 %1625 }
0x15c2   :  { %1634 = vst.msk [vmem:[#allocation7 + $0x1c] sm:$0x1] %vm543_vm5, %v1626_v41  ;;  %v1890_v42 = vpop.permute.xlu0 %1889 }
0x15c3   :  { %1901 = vst.msk [vmem:[#allocation7 + $0x5] sm:$0x1] %vm543_vm5, %v1890_v42 }
0x15c5   :  { %v1896_v43 = vpop.permute.xlu1 %1895 }
0x15c6   :  { %1904 = vst.msk [vmem:[#allocation7 + $0x1d] sm:$0x1] %vm543_vm5, %v1896_v43  ;;  %v2160_v44 = vpop.permute.xlu0 %2159 }
0x15c7   :  { %2171 = vst.msk [vmem:[#allocation7 + $0x6] sm:$0x1] %vm543_vm5, %v2160_v44 }
0x15ca   :  { %v1624_v17 = vpop.permute.xlu0 %1623 }
0x15cb   :  { %1633 = vst.msk [vmem:[#allocation7 + $0x14] sm:$0x1] %vm543_vm5, %v1624_v17 }
0x15ce   :  { %v1894_v45 = vpop.permute.xlu0 %1893 }
0x15cf   :  { %1903 = vst.msk [vmem:[#allocation7 + $0x15] sm:$0x1] %vm543_vm5, %v1894_v45 }
0x15d2   :  { %v2164_v19 = vpop.permute.xlu0 %2163 }
0x15d3   :  { %2173 = vst.msk [vmem:[#allocation7 + $0x16] sm:$0x1] %vm543_vm5, %v2164_v19 }
0x1608   :  { %v2429_v46 = vpop.permute.xlu0 %2428 }
0x1609   :  { %2440 = vst.msk [vmem:[#allocation7 + $0x7] sm:$0x1] %vm543_vm5, %v2429_v46 }
0x160a   :  { %v2431_v21 = vpop.permute.xlu1 %2430 }
0x160b   :  { %2441 = vst.msk [vmem:[#allocation7 + $0xf] sm:$0x1] %vm543_vm5, %v2431_v21 }
0x160c   :  { %v2433_v48 = vpop.permute.xlu0 %2432 }
0x160d   :  { %2442 = vst.msk [vmem:[#allocation7 + $0x17] sm:$0x1] %vm543_vm5, %v2433_v48 }
0x160e   :  { %v2511_v54 = vpop.permute.xlu1 %2510 }
0x160f   :  { %3070 = vmatmul.mubr.msk.bf16.vlgmr.msra.gmra.mrb[32].mxu0 %vm328_vm4, %v2511_v54 }
0x1610   :  { %3082 = vmatpush3.bf16.msra.mxu0 %v4047_v2  ;;  %v2636_v55 = vld [vmem:[#allocation7] sm:$0xff]  ;;  %v3122_v2 = vld [vmem:[%s4215_s13 + $0x18] sm:$0xff]  }
0x1611   :  { %3083 = vmatprep.subr.bf16.mxu0 %v3120_v53 }
0x1612   :  { %v2166_v33 = vpop.permute.xlu1 %2165  ;;  %v2637_v11 = vld [vmem:[#allocation7 + $0x8] sm:$0xff] }
0x1613   :  { %2174 = vst.msk [vmem:[#allocation7 + $0x1e] sm:$0x1] %vm543_vm5, %v2166_v33  ;;  %v2569_v56 = vpop.permute.xlu0 %2568  ;;  %v2640_v61 = vpack.c.bf16 %v2637_v11, %v2636_v55 }
0x1614   :  { %3078 = vmatmul.mubr.msk.bf16.vlgmr.msra.gmra.mrb[40].mxu1 %vm328_vm4, %v2569_v56  ;;  %3084 = vmatpush3.bf16.msra.mxu0 %v3120_v53  ;;  %v2638_v58 = vld [vmem:[#allocation7 + $0x10] sm:$0xff] }
0x1615   :  { %3089 = vmatprep.mubr.msk.bf16.mxu0 %vm2681_vm6, %v2640_v61  ;;  %3085 = vmatprep.subr.bf16.mxu0 %v3121_v49 }
0x1616   :  { %v2435_v27 = vpop.permute.xlu1 %2434 }
0x1617   :  { %2443 = vst.msk [vmem:[#allocation7 + $0x1f] sm:$0x1] %vm543_vm5, %v2435_v27 }
0x1618   :  { %3086 = vmatpush3.bf16.msra.mxu0 %v3121_v49 }
0x1619   :  { %3087 = vmatprep.subr.bf16.mxu0 %v3122_v2 }
0x161c   :  { %3088 = vmatpush3.bf16.msra.mxu0 %v3122_v2 }
0x161e   :  { %v2639_v59 = vld [vmem:[#allocation7 + $0x18] sm:$0xff] }
0x161f   :  { %v2641_v30 = vpack.c.bf16 %v2639_v59, %v2638_v58 }
0x1621   :  { %3090 = vmatmul.mubr.msk.bf16.vlgmr.msra.gmra.mrb[36].mxu0 %vm2681_vm6, %v2641_v30 }
0x1622   :  { %3260 = shalt.err (!%p3257_p12)
}
0x1623   :  { %s3261_s28 = scalar_lea.hbm %s4217_s15, 512 }
0x1624   :  { %p3262_p13 = scmp.ne.s32.totalorder %s4217_s15, %s3261_s28  ;;  %p3265_p0 = scmp.lt.u32.totalorder %s3261_s28, %s4217_s15 }
0x1626   :  { %p3267_p1 = pnand %p3265_p0, %p3262_p13 }
0x1628   :  { %3270 = shalt.err (!%p3267_p1)
}
0x1629   :  { %s3331_s1 = smov 128   ;;  %s3332_s25 = smov 8   ;;  %v2851_v12 = vld [vmem:[%s4214_s12] ss:$0 sm:$0xff]  ;;  %vm2634_vm7 = vcmask 257024  }
0x162a   :  { %2752 = dma.vmem_to_hbm [thread:$0]  %s2747_s5, 512, %s4217_s15, [#allocation6], %s3331_s1, %s3331_s1, %s3332_s25  }
0x162b   :  { %v2852_v13 = vld [vmem:[%s4216_s14] ss:$0 sm:$0xff]  ;;  %s3333_s15 = smov [#allocation8]   ;;  %s3334_s12 = smov [#allocation10]  }
0x162c   :  { %s2758_s4 = sshll.u32 %s3333_s15, 4  ;;  %s2771_s8 = sshll.u32 %s3334_s12, 4  ;;  %s2759_s4 = int_to_ptr.vmem [resolvable:$true] %s2758_s4  ;;  %s2772_s8 = int_to_ptr.vmem [resolvable:$true] %s2771_s8 }
0x162d   :  { %s3271_s14 = scalar_lea.vmem %s2759_s4, 512  ;;  %p3276_p3 = scmp.lt.s32.totalorder %s2759_s4, %s2759_s4 }
0x162e   :  { %p3272_p2 = scmp.ne.s32.totalorder %s2759_s4, %s3271_s14  ;;  %p3277_p4 = scmp.lt.s32.totalorder %s3271_s14, %s3271_s14 }
0x1630   :  { %p3278_p5 = por %p3277_p4, %p3276_p3 }
0x1632   :  { %p3279_p6 = pnand %p3278_p5, %p3272_p2 }
0x16e2   :  { %v2561_v3 = vpop.f32.mrb[32].mxu0 }
0x16e3   :  { %v3071_v7 = vpop.f32.mrb[33].mxu0 }
0x16e4   :  { %v2564_v29 = vpop.f32.mrb[34].mxu0 }
0x16e5   :  { %v3072_v31 = vpop.f32.mrb[35].mxu0 }
0x16e7   :  { %v2619_v8 = vpop.f32.mrb[40].mxu1 }
0x16e8   :  { %v2620_v9 = vadd.f32 %v2619_v8, %v2561_v3  ;;  %v3079_v15 = vpop.f32.mrb[41].mxu1 }
0x16e9   :  { %v2622_v62 = vpop.f32.mrb[42].mxu1 }
0x16ea   :  { %v2632_v14 = vadd.f32 %v2851_v12, %v2620_v9  ;;  %v3080_v50 = vpop.f32.mrb[43].mxu1 }
0x16ec   :  { %3219 = vtanh.f32 %v2632_v14 }
0x16f4   :  { %v3091_v51 = vpop.f32.mrb[36].mxu0 }
0x16f5   :  { %v2731_v16 = vadd.f32 %v3091_v51, %v2852_v13  ;;  %v2722_v63 = vpop.f32.mrb[37].mxu0 }
0x16f6   :  { %v3220_v5 = vpop.eup %3219  ;;  %v2723_v4 = vadd.f32 %v2852_v13, %v2722_v63  ;;  %v3092_v18 = vpop.f32.mrb[38].mxu0 }
0x16f7   :  { %2739 = vst.msk [vmem:[#allocation8 + $0x10] sm:$0xff] %vm328_vm4, %v2731_v16  ;;  %v2734_v1 = vadd.f32 %v3092_v18, %v2852_v13  ;;  %v2725_v57 = vpop.f32.mrb[39].mxu0 }
0x16f8   :  { %2635 = vst.msk [vmem:[#allocation10] sm:$0xf] %vm2634_vm7, %v3220_v5  ;;  %v2726_v20 = vadd.f32 %v2852_v13, %v2725_v57 }
0x16f9   :  { %2737 = vst.msk [vmem:[#allocation8] sm:$0xff] %vm328_vm4, %v2723_v4  ;;  %2740 = vst.msk [vmem:[#allocation8 + $0x18] sm:$0xff] %vm328_vm4, %v2734_v1 }
0x16fa   :  { %2738 = vst.msk [vmem:[#allocation8 + $0x8] sm:$0xff] %vm328_vm4, %v2726_v20 }
0x16fb   :  { %3282 = shalt.err (!%p3279_p6)
}
0x16fc   :  { %s3283_s26 = scalar_lea.hbm %s4218_s16, 512 }
0x16fd   :  { %p3284_p7 = scmp.ne.s32.totalorder %s4218_s16, %s3283_s26  ;;  %p3287_p8 = scmp.lt.u32.totalorder %s3283_s26, %s4218_s16 }
0x16ff   :  { %p3289_p9 = pnand %p3287_p8, %p3284_p7 }
0x1701   :  { %3292 = shalt.err (!%p3289_p9)
}
0x1702   :  { %2764 = dma.vmem_to_hbm [thread:$0]  %s2759_s4, 512, %s4218_s16, [#allocation9], %s3331_s1, %s3331_s1, %s3332_s25  }
0x1703   :  { %s3293_s13 = scalar_lea.vmem %s2772_s8, 64  ;;  %p3298_p11 = scmp.lt.s32.totalorder %s2772_s8, %s2772_s8 }
0x1704   :  { %p3294_p10 = scmp.ne.s32.totalorder %s2772_s8, %s3293_s13  ;;  %p3299_p12 = scmp.lt.s32.totalorder %s3293_s13, %s3293_s13 }
0x1706   :  { %p3300_p13 = por %p3299_p12, %p3298_p11 }
0x1708   :  { %p3301_p0 = pnand %p3300_p13, %p3294_p10 }
0x170a   :  { %3304 = shalt.err (!%p3301_p0)
}
0x170b   :  { %s3305_s29 = scalar_lea.hbm %s4219_s17, 64 }
0x170c   :  { %p3306_p1 = scmp.ne.s32.totalorder %s4219_s17, %s3305_s29  ;;  %p3309_p2 = scmp.lt.u32.totalorder %s3305_s29, %s4219_s17 }
0x170e   :  { %p3311_p3 = pnand %p3309_p2, %p3306_p1 }
0x1710   :  { %3314 = shalt.err (!%p3311_p3)
}
0x1711   :  { %2774 = dma.vmem_to_hbm [thread:$0]  %s2772_s8, 64, %s4219_s17, [#allocation9]  }
0x1712   :  { %3317 = dma.done.wait [#allocation6], 512  }
0x1713   :  { %3318 = vsyncadd [#allocation6], 4294966784 }
0x1714   :  { %3319 = dma.done.wait [#allocation9], 576  }
0x1715   :  { %3320 = vsyncadd [#allocation9], 4294966720 }
0x1716   :  { %2784 = vsyncpa [#allocation5], 1 }
0x1717   :  { %2785 = vsyncpa [#allocation6], 1 }
0x1718   :  { %2786 = vsyncpa [#allocation9], 1 }

</bundles_post_ra>
